<compile_context>
chip_gen: v6e
topology: v6e:2x2x1
jax: 0.10.0
libtpu: 0.0.40
codegen_flags: <defaults>
</compile_context>

<pallas_src>
import functools

import jax
import jax.numpy as jnp
from jax import lax
from jax.experimental import pallas as pl
from jax.experimental.pallas import tpu as pltpu

MAX_ITER = 20  # fixed-point iterations (stands in for tol-based stopping)


def _round_up(v, m):
    return (v + m - 1) // m * m


def _vmem_limit_bytes():
    """Generation-aware VMEM request (~85% of physical per-core capacity)."""
    try:
        cap = pltpu.get_tpu_info().vmem_capacity_bytes
        return int(cap * 0.85)
    except Exception:
        return 48 << 20  # conservative fallback (fits v5e/v6e/v7x)


def _model_kernel(scal_ref,      # SMEM  [2]            : (beta, gamma)
                  x_ref,         # VMEM  [Np, Cip]  bf16
                  s_ref,         # VMEM  [Np, Np]   bf16  dense adjacency
                  u0_in_ref,     # VMEM  [Np, Hp]   f32   initial u (zeros if u0=None)
                  wenc_ref,      # VMEM  [Cip, Hp]  bf16  enc weight (transposed vs torch)
                  wb_ref,        # VMEM  [Hp, Hp]   bf16  bias_module weight
                  wimp_ref,      # VMEM  [Hp, Hp]   bf16  implicit-layer weight
                  wdec_ref,      # VMEM  [Hp, Cop]  bf16  dec weight
                  out_ref,       # VMEM  [Np, Cop]  f32   model output (padded)
                  u0_out_ref,    # VMEM  [Np, Hp]   f32   fixed point (self.igl.u0, padded)
                  wimp_scr,      # VMEM scratch [Hp, Hp] bf16 : beta * W_imp
                  gb_scr,        # VMEM scratch [Np, Hp] f32  : gamma * (h @ W_b)
                  *, unroll):
    beta = scal_ref[0]
    gamma = scal_ref[1]

    # enc: x @ Wenc (Linear, no bias); dropout = identity (eval mode).
    # bf16 feeds, f32 accumulate.
    h = jnp.dot(x_ref[...], wenc_ref[...], preferred_element_type=jnp.float32)

    # Hoisted out of the fixed-point loop and parked in VMEM scratch so they
    # don't pin vregs across the whole unrolled chain.
    gb_scr[...] = gamma * jnp.dot(h.astype(jnp.bfloat16), wb_ref[...],
                                  preferred_element_type=jnp.float32)
    wimp_scr[...] = (beta * wimp_ref[...].astype(jnp.float32)).astype(jnp.bfloat16)

    # Implicit layer: Picard fixed-point iteration.
    def body(_, u):
        u_bf = u.astype(jnp.bfloat16)
        su = jnp.dot(s_ref[...], u_bf, preferred_element_type=jnp.float32)      # graph prop
        v = jnp.dot(su.astype(jnp.bfloat16), wimp_scr[...],
                    preferred_element_type=jnp.float32)
        return jnp.maximum(v + gb_scr[...], 0.0)                                 # nonlin_module

    u_star = lax.fori_loop(0, MAX_ITER, body, u0_in_ref[...], unroll=unroll)
    u0_out_ref[...] = u_star

    # Outer ReLU is a no-op (u_star >= 0 already); feed straight into dec.
    out_ref[...] = jnp.dot(u_star.astype(jnp.bfloat16), wdec_ref[...],
                           preferred_element_type=jnp.float32)


def build_dense_adjacency(edge_index, edge_weight, n, n_p):
    """COO -> dense padded adjacency (cache this when the graph is static)."""
    # TODO(synk): for realistic graph sizes replace dense S with a CSR
    # scalar-prefetch SpMM and row-tile S over a grid so it streams from HBM.
    s = jnp.zeros((n_p, n_p), jnp.float32).at[edge_index[0], edge_index[1]].add(
        edge_weight.astype(jnp.float32))
    return s.astype(jnp.bfloat16)


def pad_params(params, c_in_p, h_p, co_p):
    """Zero-pad + bf16-cast the weights (cache this when params are static)."""
    c_in, hidden = params["w_enc"].shape
    c_out = params["w_dec"].shape[1]
    w_enc = jnp.zeros((c_in_p, h_p), jnp.float32).at[:c_in, :hidden].set(params["w_enc"])
    w_b = jnp.zeros((h_p, h_p), jnp.float32).at[:hidden, :hidden].set(params["w_b"])
    w_imp = jnp.zeros((h_p, h_p), jnp.float32).at[:hidden, :hidden].set(params["w_imp"])
    w_dec = jnp.zeros((h_p, co_p), jnp.float32).at[:hidden, :c_out].set(params["w_dec"])
    scal = jnp.array([params["beta"], params["gamma"]], jnp.float32)
    return (w_enc.astype(jnp.bfloat16), w_b.astype(jnp.bfloat16),
            w_imp.astype(jnp.bfloat16), w_dec.astype(jnp.bfloat16), scal)


def model_forward(params, x, edge_index, edge_weight, batch=None, u0=None):
    """Glue: build dense adjacency, pad to lane-dense shapes, launch kernel."""
    del batch  # unused, matches the PyTorch forward signature
    n, c_in = x.shape
    hidden = params["w_b"].shape[0]
    c_out = params["w_dec"].shape[1]

    # Lane-dense padded sizes: N and C_in to 128 so S and the contractions are
    # lane-dense / unmasked; hidden and out features to 128 lanes.
    # TODO(synk): pad hidden to 256 on v6e/v7x once hidden sizes are realistic
    # (fills the 2x256x256 MXU); 128 is fine for the 4x128x128 v5e MXU.
    n_p = _round_up(n, 128)
    c_in_p = _round_up(c_in, 128)
    h_p = _round_up(hidden, 128)
    co_p = _round_up(c_out, 128)

    s = build_dense_adjacency(edge_index, edge_weight, n, n_p)
    w_enc, w_b, w_imp, w_dec, scal = pad_params(params, c_in_p, h_p, co_p)

    x_p = jnp.zeros((n_p, c_in_p), jnp.float32).at[:n, :c_in].set(
        x.astype(jnp.float32)).astype(jnp.bfloat16)

    if u0 is None:
        u_init = jnp.zeros((n_p, h_p), jnp.float32)
    else:
        u_init = jnp.zeros((n_p, h_p), jnp.float32).at[:n, :hidden].set(
            u0.astype(jnp.float32))

    # Fully unroll the short chain at Hp<=128; partial unroll otherwise to keep
    # vreg pressure bounded.
    unroll = True if h_p <= 128 else 4

    # Advisory cost estimate for the XLA scheduler.
    flops = (2 * n_p * c_in_p * h_p            # enc
             + 2 * n_p * h_p * h_p             # bias module
             + MAX_ITER * (2 * n_p * n_p * h_p + 2 * n_p * h_p * h_p)
             + 2 * n_p * h_p * co_p)           # dec
    bytes_accessed = (2 * (n_p * c_in_p + n_p * n_p + c_in_p * h_p
                           + 2 * h_p * h_p + h_p * co_p)          # bf16 inputs
                      + 4 * (n_p * h_p                             # u_init
                             + n_p * co_p + n_p * h_p))            # f32 outputs
    cost = pl.CostEstimate(flops=flops, transcendentals=0,
                           bytes_accessed=bytes_accessed)

    vmem = pl.BlockSpec(memory_space=pltpu.MemorySpace.VMEM)
    smem = pl.BlockSpec(memory_space=pltpu.MemorySpace.SMEM)

    # TODO(synk): at Np >= a few hundred, row-split S across the two v7x
    # TensorCores (pl.core_map + VMEM_SHARED exchange per Picard iteration) and
    # stream S in 512-row tiles from HBM once dense S approaches the VMEM wall.
    out_p, u_star_p = pl.pallas_call(
        functools.partial(_model_kernel, unroll=unroll),
        out_shape=(
            jax.ShapeDtypeStruct((n_p, co_p), jnp.float32),
            jax.ShapeDtypeStruct((n_p, h_p), jnp.float32),
        ),
        in_specs=[smem, vmem, vmem, vmem, vmem, vmem, vmem, vmem],
        out_specs=(vmem, vmem),
        scratch_shapes=[
            pltpu.VMEM((h_p, h_p), jnp.bfloat16),   # beta * W_imp
            pltpu.VMEM((n_p, h_p), jnp.float32),    # gamma * (h @ W_b)
        ],
        input_output_aliases={3: 1},  # u_init buffer -> u_star output buffer
        compiler_params=pltpu.CompilerParams(
            vmem_limit_bytes=_vmem_limit_bytes()),
        cost_estimate=cost,
    )(scal, x_p, s, u_init, w_enc, w_b, w_imp, w_dec)

    # Slice back to true (unpadded) shapes.
    return out_p[:n, :c_out], u_star_p[:n, :hidden]


def _reference(params, x, s, u_init):
    """Pure-JAX f32 reference for correctness checking."""
    beta, gamma = params["beta"], params["gamma"]
    h = x @ params["w_enc"]
    b = h @ params["w_b"]
    u = u_init
    for _ in range(MAX_ITER):
        u = jnp.maximum(beta * (s @ u @ params["w_imp"]) + gamma * b, 0.0)
    y = jnp.maximum(u, 0.0)
    return y @ params["w_dec"], u


if __name__ == "__main__":
    # small, deterministic problem
    N, C_IN, H, C_OUT, E = 32, 8, 32, 4, 96
    BETA_INIT, GAMMA_INIT = 0.5, 1.0

    key = jax.random.PRNGKey(0)
    k_x, k_ei, k_ew, k_enc, k_b, k_imp, k_dec = jax.random.split(key, 7)

    x = jax.random.normal(k_x, (N, C_IN), jnp.float32)
    edge_index = jax.random.randint(k_ei, (2, E), 0, N, jnp.int32)
    edge_weight = jax.random.uniform(k_ew, (E,), jnp.float32) / N  # keep S contractive

    def init_w(k, fan_in, fan_out, scale=0.2):
        return scale * jax.random.normal(k, (fan_in, fan_out), jnp.float32)

    params = {
        "w_enc": init_w(k_enc, C_IN, H),
        "w_b":   init_w(k_b, H, H),
        "w_imp": init_w(k_imp, H, H),
        "w_dec": init_w(k_dec, H, C_OUT),
        "beta":  BETA_INIT,
        "gamma": GAMMA_INIT,
    }

    out, u0 = model_forward(params, x, edge_index, edge_weight, batch=None, u0=None)
    out, u0 = jax.block_until_ready(out), jax.block_until_ready(u0)

    # sanity check against pure-JAX f32 reference (bf16 MXU feeds -> looser tol)
    s_dense = jnp.zeros((N, N), jnp.float32).at[edge_index[0], edge_index[1]].add(edge_weight)
    ref_out, ref_u0 = _reference(params, x, s_dense, jnp.zeros((N, H), jnp.float32))
    assert out.shape == (N, C_OUT) and u0.shape == (N, H)
    assert jnp.allclose(out, ref_out, atol=3e-2, rtol=3e-2), (
        float(jnp.max(jnp.abs(out - ref_out))))
    assert jnp.allclose(u0, ref_u0, atol=3e-2, rtol=3e-2), (
        float(jnp.max(jnp.abs(u0 - ref_u0))))

    print("KERNEL_OK")
</pallas_src>

<mosaic_0001>
module attributes {stable_mosaic.version = 11 : i64} {
  func.func @_model_kernel(%arg0: memref<2xf32, #tpu.memory_space<smem>>, %arg1: memref<128x128xbf16, #tpu.memory_space<vmem>>, %arg2: memref<128x128xbf16, #tpu.memory_space<vmem>>, %arg3: memref<128x128xf32, #tpu.memory_space<vmem>>, %arg4: memref<128x128xbf16, #tpu.memory_space<vmem>>, %arg5: memref<128x128xbf16, #tpu.memory_space<vmem>>, %arg6: memref<128x128xbf16, #tpu.memory_space<vmem>>, %arg7: memref<128x128xbf16, #tpu.memory_space<vmem>>, %arg8: memref<128x128xf32, #tpu.memory_space<vmem>>, %arg9: memref<128x128xf32, #tpu.memory_space<vmem>>, %arg10: memref<128x128xbf16, #tpu.memory_space<vmem>>, %arg11: memref<128x128xf32, #tpu.memory_space<vmem>>) attributes {dimension_semantics = [], scalar_prefetch = 0 : i64, scratch_operands = 2 : i64, tpu.core_type = #tpu.core_type<tc>} {
    %c0 = arith.constant 0 : index
    %0 = memref.load %arg0[%c0] : memref<2xf32, #tpu.memory_space<smem>>
    %c1 = arith.constant 1 : index
    %1 = memref.load %arg0[%c1] : memref<2xf32, #tpu.memory_space<smem>>
    %c0_0 = arith.constant 0 : index
    %c0_1 = arith.constant 0 : index
    %2 = vector.load %arg1[%c0_0, %c0_1] : memref<128x128xbf16, #tpu.memory_space<vmem>>, vector<128x128xbf16>
    %c0_2 = arith.constant 0 : index
    %c0_3 = arith.constant 0 : index
    %3 = vector.load %arg4[%c0_2, %c0_3] : memref<128x128xbf16, #tpu.memory_space<vmem>>, vector<128x128xbf16>
    %cst = arith.constant dense<0.000000e+00> : vector<128x128xf32>
    %4 = tpu.matmul %2, %3, %cst {dimension_numbers = #tpu.dot_dimension_numbers<[1], [0], [0], [1], [0, 0, 1, 1], [], []>} : vector<128x128xbf16>, vector<128x128xbf16>, vector<128x128xf32> -> vector<128x128xf32>
    %5 = arith.truncf %4 : vector<128x128xf32> to vector<128x128xbf16>
    %c0_4 = arith.constant 0 : index
    %c0_5 = arith.constant 0 : index
    %6 = vector.load %arg5[%c0_4, %c0_5] : memref<128x128xbf16, #tpu.memory_space<vmem>>, vector<128x128xbf16>
    %cst_6 = arith.constant dense<0.000000e+00> : vector<128x128xf32>
    %7 = tpu.matmul %5, %6, %cst_6 {dimension_numbers = #tpu.dot_dimension_numbers<[1], [0], [0], [1], [0, 0, 1, 1], [], []>} : vector<128x128xbf16>, vector<128x128xbf16>, vector<128x128xf32> -> vector<128x128xf32>
    %8 = vector.broadcast %1 : f32 to vector<128x128xf32>
    %9 = arith.mulf %8, %7 : vector<128x128xf32>
    %c0_7 = arith.constant 0 : index
    %c0_8 = arith.constant 0 : index
    %10 = vector.load %arg11[%c0_7, %c0_8] : memref<128x128xf32, #tpu.memory_space<vmem>>, vector<128x128xf32>
    tpu.vector_store %arg11[%c0_7, %c0_8], %9 {strides = array<i32>} : memref<128x128xf32, #tpu.memory_space<vmem>>, vector<128x128xf32>,
    %c0_9 = arith.constant 0 : index
    %c0_10 = arith.constant 0 : index
    %11 = vector.load %arg6[%c0_9, %c0_10] : memref<128x128xbf16, #tpu.memory_space<vmem>>, vector<128x128xbf16>
    %12 = arith.extf %11 : vector<128x128xbf16> to vector<128x128xf32>
    %13 = vector.broadcast %0 : f32 to vector<128x128xf32>
    %14 = arith.mulf %13, %12 : vector<128x128xf32>
    %15 = arith.truncf %14 : vector<128x128xf32> to vector<128x128xbf16>
    %c0_11 = arith.constant 0 : index
    %c0_12 = arith.constant 0 : index
    %16 = vector.load %arg10[%c0_11, %c0_12] : memref<128x128xbf16, #tpu.memory_space<vmem>>, vector<128x128xbf16>
    tpu.vector_store %arg10[%c0_11, %c0_12], %15 {strides = array<i32>} : memref<128x128xbf16, #tpu.memory_space<vmem>>, vector<128x128xbf16>,
    %c0_13 = arith.constant 0 : index
    %c0_14 = arith.constant 0 : index
    %17 = vector.load %arg3[%c0_13, %c0_14] : memref<128x128xf32, #tpu.memory_space<vmem>>, vector<128x128xf32>
    %c0_i32 = arith.constant 0 : i32
    %18 = arith.truncf %17 : vector<128x128xf32> to vector<128x128xbf16>
    %c0_15 = arith.constant 0 : index
    %c0_16 = arith.constant 0 : index
    %19 = vector.load %arg2[%c0_15, %c0_16] : memref<128x128xbf16, #tpu.memory_space<vmem>>, vector<128x128xbf16>
    %cst_17 = arith.constant dense<0.000000e+00> : vector<128x128xf32>
    %20 = tpu.matmul %19, %18, %cst_17 {dimension_numbers = #tpu.dot_dimension_numbers<[1], [0], [0], [1], [0, 0, 1, 1], [], []>} : vector<128x128xbf16>, vector<128x128xbf16>, vector<128x128xf32> -> vector<128x128xf32>
    %21 = arith.truncf %20 : vector<128x128xf32> to vector<128x128xbf16>
    %c0_18 = arith.constant 0 : index
    %c0_19 = arith.constant 0 : index
    %22 = vector.load %arg10[%c0_18, %c0_19] : memref<128x128xbf16, #tpu.memory_space<vmem>>, vector<128x128xbf16>
    %cst_20 = arith.constant dense<0.000000e+00> : vector<128x128xf32>
    %23 = tpu.matmul %21, %22, %cst_20 {dimension_numbers = #tpu.dot_dimension_numbers<[1], [0], [0], [1], [0, 0, 1, 1], [], []>} : vector<128x128xbf16>, vector<128x128xbf16>, vector<128x128xf32> -> vector<128x128xf32>
    %c0_21 = arith.constant 0 : index
    %c0_22 = arith.constant 0 : index
    %24 = vector.load %arg11[%c0_21, %c0_22] : memref<128x128xf32, #tpu.memory_space<vmem>>, vector<128x128xf32>
    %25 = arith.addf %23, %24 : vector<128x128xf32>
    %cst_23 = arith.constant 0.000000e+00 : f32
    %26 = vector.broadcast %cst_23 : f32 to vector<128x128xf32>
    %27 = arith.maximumf %25, %26 : vector<128x128xf32>
    %c1_i32 = arith.constant 1 : i32
    %28 = arith.truncf %27 : vector<128x128xf32> to vector<128x128xbf16>
    %c0_24 = arith.constant 0 : index
    %c0_25 = arith.constant 0 : index
    %29 = vector.load %arg2[%c0_24, %c0_25] : memref<128x128xbf16, #tpu.memory_space<vmem>>, vector<128x128xbf16>
    %cst_26 = arith.constant dense<0.000000e+00> : vector<128x128xf32>
    %30 = tpu.matmul %29, %28, %cst_26 {dimension_numbers = #tpu.dot_dimension_numbers<[1], [0], [0], [1], [0, 0, 1, 1], [], []>} : vector<128x128xbf16>, vector<128x128xbf16>, vector<128x128xf32> -> vector<128x128xf32>
    %31 = arith.truncf %30 : vector<128x128xf32> to vector<128x128xbf16>
    %c0_27 = arith.constant 0 : index
    %c0_28 = arith.constant 0 : index
    %32 = vector.load %arg10[%c0_27, %c0_28] : memref<128x128xbf16, #tpu.memory_space<vmem>>, vector<128x128xbf16>
    %cst_29 = arith.constant dense<0.000000e+00> : vector<128x128xf32>
    %33 = tpu.matmul %31, %32, %cst_29 {dimension_numbers = #tpu.dot_dimension_numbers<[1], [0], [0], [1], [0, 0, 1, 1], [], []>} : vector<128x128xbf16>, vector<128x128xbf16>, vector<128x128xf32> -> vector<128x128xf32>
    %c0_30 = arith.constant 0 : index
    %c0_31 = arith.constant 0 : index
    %34 = vector.load %arg11[%c0_30, %c0_31] : memref<128x128xf32, #tpu.memory_space<vmem>>, vector<128x128xf32>
    %35 = arith.addf %33, %34 : vector<128x128xf32>
    %cst_32 = arith.constant 0.000000e+00 : f32
    %36 = vector.broadcast %cst_32 : f32 to vector<128x128xf32>
    %37 = arith.maximumf %35, %36 : vector<128x128xf32>
    %c2_i32 = arith.constant 2 : i32
    %38 = arith.truncf %37 : vector<128x128xf32> to vector<128x128xbf16>
    %c0_33 = arith.constant 0 : index
    %c0_34 = arith.constant 0 : index
    %39 = vector.load %arg2[%c0_33, %c0_34] : memref<128x128xbf16, #tpu.memory_space<vmem>>, vector<128x128xbf16>
    %cst_35 = arith.constant dense<0.000000e+00> : vector<128x128xf32>
    %40 = tpu.matmul %39, %38, %cst_35 {dimension_numbers = #tpu.dot_dimension_numbers<[1], [0], [0], [1], [0, 0, 1, 1], [], []>} : vector<128x128xbf16>, vector<128x128xbf16>, vector<128x128xf32> -> vector<128x128xf32>
    %41 = arith.truncf %40 : vector<128x128xf32> to vector<128x128xbf16>
    %c0_36 = arith.constant 0 : index
    %c0_37 = arith.constant 0 : index
    %42 = vector.load %arg10[%c0_36, %c0_37] : memref<128x128xbf16, #tpu.memory_space<vmem>>, vector<128x128xbf16>
    %cst_38 = arith.constant dense<0.000000e+00> : vector<128x128xf32>
    %43 = tpu.matmul %41, %42, %cst_38 {dimension_numbers = #tpu.dot_dimension_numbers<[1], [0], [0], [1], [0, 0, 1, 1], [], []>} : vector<128x128xbf16>, vector<128x128xbf16>, vector<128x128xf32> -> vector<128x128xf32>
    %c0_39 = arith.constant 0 : index
    %c0_40 = arith.constant 0 : index
    %44 = vector.load %arg11[%c0_39, %c0_40] : memref<128x128xf32, #tpu.memory_space<vmem>>, vector<128x128xf32>
    %45 = arith.addf %43, %44 : vector<128x128xf32>
    %cst_41 = arith.constant 0.000000e+00 : f32
    %46 = vector.broadcast %cst_41 : f32 to vector<128x128xf32>
    %47 = arith.maximumf %45, %46 : vector<128x128xf32>
    %c3_i32 = arith.constant 3 : i32
    %48 = arith.truncf %47 : vector<128x128xf32> to vector<128x128xbf16>
    %c0_42 = arith.constant 0 : index
    %c0_43 = arith.constant 0 : index
    %49 = vector.load %arg2[%c0_42, %c0_43] : memref<128x128xbf16, #tpu.memory_space<vmem>>, vector<128x128xbf16>
    %cst_44 = arith.constant dense<0.000000e+00> : vector<128x128xf32>
    %50 = tpu.matmul %49, %48, %cst_44 {dimension_numbers = #tpu.dot_dimension_numbers<[1], [0], [0], [1], [0, 0, 1, 1], [], []>} : vector<128x128xbf16>, vector<128x128xbf16>, vector<128x128xf32> -> vector<128x128xf32>
    %51 = arith.truncf %50 : vector<128x128xf32> to vector<128x128xbf16>
    %c0_45 = arith.constant 0 : index
    %c0_46 = arith.constant 0 : index
    %52 = vector.load %arg10[%c0_45, %c0_46] : memref<128x128xbf16, #tpu.memory_space<vmem>>, vector<128x128xbf16>
    %cst_47 = arith.constant dense<0.000000e+00> : vector<128x128xf32>
    %53 = tpu.matmul %51, %52, %cst_47 {dimension_numbers = #tpu.dot_dimension_numbers<[1], [0], [0], [1], [0, 0, 1, 1], [], []>} : vector<128x128xbf16>, vector<128x128xbf16>, vector<128x128xf32> -> vector<128x128xf32>
    %c0_48 = arith.constant 0 : index
    %c0_49 = arith.constant 0 : index
    %54 = vector.load %arg11[%c0_48, %c0_49] : memref<128x128xf32, #tpu.memory_space<vmem>>, vector<128x128xf32>
    %55 = arith.addf %53, %54 : vector<128x128xf32>
    %cst_50 = arith.constant 0.000000e+00 : f32
    %56 = vector.broadcast %cst_50 : f32 to vector<128x128xf32>
    %57 = arith.maximumf %55, %56 : vector<128x128xf32>
    %c4_i32 = arith.constant 4 : i32
    %58 = arith.truncf %57 : vector<128x128xf32> to vector<128x128xbf16>
    %c0_51 = arith.constant 0 : index
    %c0_52 = arith.constant 0 : index
    %59 = vector.load %arg2[%c0_51, %c0_52] : memref<128x128xbf16, #tpu.memory_space<vmem>>, vector<128x128xbf16>
    %cst_53 = arith.constant dense<0.000000e+00> : vector<128x128xf32>
    %60 = tpu.matmul %59, %58, %cst_53 {dimension_numbers = #tpu.dot_dimension_numbers<[1], [0], [0], [1], [0, 0, 1, 1], [], []>} : vector<128x128xbf16>, vector<128x128xbf16>, vector<128x128xf32> -> vector<128x128xf32>
    %61 = arith.truncf %60 : vector<128x128xf32> to vector<128x128xbf16>
    %c0_54 = arith.constant 0 : index
    %c0_55 = arith.constant 0 : index
    %62 = vector.load %arg10[%c0_54, %c0_55] : memref<128x128xbf16, #tpu.memory_space<vmem>>, vector<128x128xbf16>
    %cst_56 = arith.constant dense<0.000000e+00> : vector<128x128xf32>
    %63 = tpu.matmul %61, %62, %cst_56 {dimension_numbers = #tpu.dot_dimension_numbers<[1], [0], [0], [1], [0, 0, 1, 1], [], []>} : vector<128x128xbf16>, vector<128x128xbf16>, vector<128x128xf32> -> vector<128x128xf32>
    %c0_57 = arith.constant 0 : index
    %c0_58 = arith.constant 0 : index
    %64 = vector.load %arg11[%c0_57, %c0_58] : memref<128x128xf32, #tpu.memory_space<vmem>>, vector<128x128xf32>
    %65 = arith.addf %63, %64 : vector<128x128xf32>
    %cst_59 = arith.constant 0.000000e+00 : f32
    %66 = vector.broadcast %cst_59 : f32 to vector<128x128xf32>
    %67 = arith.maximumf %65, %66 : vector<128x128xf32>
    %c5_i32 = arith.constant 5 : i32
    %68 = arith.truncf %67 : vector<128x128xf32> to vector<128x128xbf16>
    %c0_60 = arith.constant 0 : index
    %c0_61 = arith.constant 0 : index
    %69 = vector.load %arg2[%c0_60, %c0_61] : memref<128x128xbf16, #tpu.memory_space<vmem>>, vector<128x128xbf16>
    %cst_62 = arith.constant dense<0.000000e+00> : vector<128x128xf32>
    %70 = tpu.matmul %69, %68, %cst_62 {dimension_numbers = #tpu.dot_dimension_numbers<[1], [0], [0], [1], [0, 0, 1, 1], [], []>} : vector<128x128xbf16>, vector<128x128xbf16>, vector<128x128xf32> -> vector<128x128xf32>
    %71 = arith.truncf %70 : vector<128x128xf32> to vector<128x128xbf16>
    %c0_63 = arith.constant 0 : index
    %c0_64 = arith.constant 0 : index
    %72 = vector.load %arg10[%c0_63, %c0_64] : memref<128x128xbf16, #tpu.memory_space<vmem>>, vector<128x128xbf16>
    %cst_65 = arith.constant dense<0.000000e+00> : vector<128x128xf32>
    %73 = tpu.matmul %71, %72, %cst_65 {dimension_numbers = #tpu.dot_dimension_numbers<[1], [0], [0], [1], [0, 0, 1, 1], [], []>} : vector<128x128xbf16>, vector<128x128xbf16>, vector<128x128xf32> -> vector<128x128xf32>
    %c0_66 = arith.constant 0 : index
    %c0_67 = arith.constant 0 : index
    %74 = vector.load %arg11[%c0_66, %c0_67] : memref<128x128xf32, #tpu.memory_space<vmem>>, vector<128x128xf32>
    %75 = arith.addf %73, %74 : vector<128x128xf32>
    %cst_68 = arith.constant 0.000000e+00 : f32
    %76 = vector.broadcast %cst_68 : f32 to vector<128x128xf32>
    %77 = arith.maximumf %75, %76 : vector<128x128xf32>
    %c6_i32 = arith.constant 6 : i32
    %78 = arith.truncf %77 : vector<128x128xf32> to vector<128x128xbf16>
    %c0_69 = arith.constant 0 : index
    %c0_70 = arith.constant 0 : index
    %79 = vector.load %arg2[%c0_69, %c0_70] : memref<128x128xbf16, #tpu.memory_space<vmem>>, vector<128x128xbf16>
    %cst_71 = arith.constant dense<0.000000e+00> : vector<128x128xf32>
    %80 = tpu.matmul %79, %78, %cst_71 {dimension_numbers = #tpu.dot_dimension_numbers<[1], [0], [0], [1], [0, 0, 1, 1], [], []>} : vector<128x128xbf16>, vector<128x128xbf16>, vector<128x128xf32> -> vector<128x128xf32>
    %81 = arith.truncf %80 : vector<128x128xf32> to vector<128x128xbf16>
    %c0_72 = arith.constant 0 : index
    %c0_73 = arith.constant 0 : index
    %82 = vector.load %arg10[%c0_72, %c0_73] : memref<128x128xbf16, #tpu.memory_space<vmem>>, vector<128x128xbf16>
    %cst_74 = arith.constant dense<0.000000e+00> : vector<128x128xf32>
    %83 = tpu.matmul %81, %82, %cst_74 {dimension_numbers = #tpu.dot_dimension_numbers<[1], [0], [0], [1], [0, 0, 1, 1], [], []>} : vector<128x128xbf16>, vector<128x128xbf16>, vector<128x128xf32> -> vector<128x128xf32>
    %c0_75 = arith.constant 0 : index
    %c0_76 = arith.constant 0 : index
    %84 = vector.load %arg11[%c0_75, %c0_76] : memref<128x128xf32, #tpu.memory_space<vmem>>, vector<128x128xf32>
    %85 = arith.addf %83, %84 : vector<128x128xf32>
    %cst_77 = arith.constant 0.000000e+00 : f32
    %86 = vector.broadcast %cst_77 : f32 to vector<128x128xf32>
    %87 = arith.maximumf %85, %86 : vector<128x128xf32>
    %c7_i32 = arith.constant 7 : i32
    %88 = arith.truncf %87 : vector<128x128xf32> to vector<128x128xbf16>
    %c0_78 = arith.constant 0 : index
    %c0_79 = arith.constant 0 : index
    %89 = vector.load %arg2[%c0_78, %c0_79] : memref<128x128xbf16, #tpu.memory_space<vmem>>, vector<128x128xbf16>
    %cst_80 = arith.constant dense<0.000000e+00> : vector<128x128xf32>
    %90 = tpu.matmul %89, %88, %cst_80 {dimension_numbers = #tpu.dot_dimension_numbers<[1], [0], [0], [1], [0, 0, 1, 1], [], []>} : vector<128x128xbf16>, vector<128x128xbf16>, vector<128x128xf32> -> vector<128x128xf32>
    %91 = arith.truncf %90 : vector<128x128xf32> to vector<128x128xbf16>
    %c0_81 = arith.constant 0 : index
    %c0_82 = arith.constant 0 : index
    %92 = vector.load %arg10[%c0_81, %c0_82] : memref<128x128xbf16, #tpu.memory_space<vmem>>, vector<128x128xbf16>
    %cst_83 = arith.constant dense<0.000000e+00> : vector<128x128xf32>
    %93 = tpu.matmul %91, %92, %cst_83 {dimension_numbers = #tpu.dot_dimension_numbers<[1], [0], [0], [1], [0, 0, 1, 1], [], []>} : vector<128x128xbf16>, vector<128x128xbf16>, vector<128x128xf32> -> vector<128x128xf32>
    %c0_84 = arith.constant 0 : index
    %c0_85 = arith.constant 0 : index
    %94 = vector.load %arg11[%c0_84, %c0_85] : memref<128x128xf32, #tpu.memory_space<vmem>>, vector<128x128xf32>
    %95 = arith.addf %93, %94 : vector<128x128xf32>
    %cst_86 = arith.constant 0.000000e+00 : f32
    %96 = vector.broadcast %cst_86 : f32 to vector<128x128xf32>
    %97 = arith.maximumf %95, %96 : vector<128x128xf32>
    %c8_i32 = arith.constant 8 : i32
    %98 = arith.truncf %97 : vector<128x128xf32> to vector<128x128xbf16>
    %c0_87 = arith.constant 0 : index
    %c0_88 = arith.constant 0 : index
    %99 = vector.load %arg2[%c0_87, %c0_88] : memref<128x128xbf16, #tpu.memory_space<vmem>>, vector<128x128xbf16>
    %cst_89 = arith.constant dense<0.000000e+00> : vector<128x128xf32>
    %100 = tpu.matmul %99, %98, %cst_89 {dimension_numbers = #tpu.dot_dimension_numbers<[1], [0], [0], [1], [0, 0, 1, 1], [], []>} : vector<128x128xbf16>, vector<128x128xbf16>, vector<128x128xf32> -> vector<128x128xf32>
    %101 = arith.truncf %100 : vector<128x128xf32> to vector<128x128xbf16>
    %c0_90 = arith.constant 0 : index
    %c0_91 = arith.constant 0 : index
    %102 = vector.load %arg10[%c0_90, %c0_91] : memref<128x128xbf16, #tpu.memory_space<vmem>>, vector<128x128xbf16>
    %cst_92 = arith.constant dense<0.000000e+00> : vector<128x128xf32>
    %103 = tpu.matmul %101, %102, %cst_92 {dimension_numbers = #tpu.dot_dimension_numbers<[1], [0], [0], [1], [0, 0, 1, 1], [], []>} : vector<128x128xbf16>, vector<128x128xbf16>, vector<128x128xf32> -> vector<128x128xf32>
    %c0_93 = arith.constant 0 : index
    %c0_94 = arith.constant 0 : index
    %104 = vector.load %arg11[%c0_93, %c0_94] : memref<128x128xf32, #tpu.memory_space<vmem>>, vector<128x128xf32>
    %105 = arith.addf %103, %104 : vector<128x128xf32>
    %cst_95 = arith.constant 0.000000e+00 : f32
    %106 = vector.broadcast %cst_95 : f32 to vector<128x128xf32>
    %107 = arith.maximumf %105, %106 : vector<128x128xf32>
    %c9_i32 = arith.constant 9 : i32
    %108 = arith.truncf %107 : vector<128x128xf32> to vector<128x128xbf16>
    %c0_96 = arith.constant 0 : index
    %c0_97 = arith.constant 0 : index
    %109 = vector.load %arg2[%c0_96, %c0_97] : memref<128x128xbf16, #tpu.memory_space<vmem>>, vector<128x128xbf16>
    %cst_98 = arith.constant dense<0.000000e+00> : vector<128x128xf32>
    %110 = tpu.matmul %109, %108, %cst_98 {dimension_numbers = #tpu.dot_dimension_numbers<[1], [0], [0], [1], [0, 0, 1, 1], [], []>} : vector<128x128xbf16>, vector<128x128xbf16>, vector<128x128xf32> -> vector<128x128xf32>
    %111 = arith.truncf %110 : vector<128x128xf32> to vector<128x128xbf16>
    %c0_99 = arith.constant 0 : index
    %c0_100 = arith.constant 0 : index
    %112 = vector.load %arg10[%c0_99, %c0_100] : memref<128x128xbf16, #tpu.memory_space<vmem>>, vector<128x128xbf16>
    %cst_101 = arith.constant dense<0.000000e+00> : vector<128x128xf32>
    %113 = tpu.matmul %111, %112, %cst_101 {dimension_numbers = #tpu.dot_dimension_numbers<[1], [0], [0], [1], [0, 0, 1, 1], [], []>} : vector<128x128xbf16>, vector<128x128xbf16>, vector<128x128xf32> -> vector<128x128xf32>
    %c0_102 = arith.constant 0 : index
    %c0_103 = arith.constant 0 : index
    %114 = vector.load %arg11[%c0_102, %c0_103] : memref<128x128xf32, #tpu.memory_space<vmem>>, vector<128x128xf32>
    %115 = arith.addf %113, %114 : vector<128x128xf32>
    %cst_104 = arith.constant 0.000000e+00 : f32
    %116 = vector.broadcast %cst_104 : f32 to vector<128x128xf32>
    %117 = arith.maximumf %115, %116 : vector<128x128xf32>
    %c10_i32 = arith.constant 10 : i32
    %118 = arith.truncf %117 : vector<128x128xf32> to vector<128x128xbf16>
    %c0_105 = arith.constant 0 : index
    %c0_106 = arith.constant 0 : index
    %119 = vector.load %arg2[%c0_105, %c0_106] : memref<128x128xbf16, #tpu.memory_space<vmem>>, vector<128x128xbf16>
    %cst_107 = arith.constant dense<0.000000e+00> : vector<128x128xf32>
    %120 = tpu.matmul %119, %118, %cst_107 {dimension_numbers = #tpu.dot_dimension_numbers<[1], [0], [0], [1], [0, 0, 1, 1], [], []>} : vector<128x128xbf16>, vector<128x128xbf16>, vector<128x128xf32> -> vector<128x128xf32>
    %121 = arith.truncf %120 : vector<128x128xf32> to vector<128x128xbf16>
    %c0_108 = arith.constant 0 : index
    %c0_109 = arith.constant 0 : index
    %122 = vector.load %arg10[%c0_108, %c0_109] : memref<128x128xbf16, #tpu.memory_space<vmem>>, vector<128x128xbf16>
    %cst_110 = arith.constant dense<0.000000e+00> : vector<128x128xf32>
    %123 = tpu.matmul %121, %122, %cst_110 {dimension_numbers = #tpu.dot_dimension_numbers<[1], [0], [0], [1], [0, 0, 1, 1], [], []>} : vector<128x128xbf16>, vector<128x128xbf16>, vector<128x128xf32> -> vector<128x128xf32>
    %c0_111 = arith.constant 0 : index
    %c0_112 = arith.constant 0 : index
    %124 = vector.load %arg11[%c0_111, %c0_112] : memref<128x128xf32, #tpu.memory_space<vmem>>, vector<128x128xf32>
    %125 = arith.addf %123, %124 : vector<128x128xf32>
    %cst_113 = arith.constant 0.000000e+00 : f32
    %126 = vector.broadcast %cst_113 : f32 to vector<128x128xf32>
    %127 = arith.maximumf %125, %126 : vector<128x128xf32>
    %c11_i32 = arith.constant 11 : i32
    %128 = arith.truncf %127 : vector<128x128xf32> to vector<128x128xbf16>
    %c0_114 = arith.constant 0 : index
    %c0_115 = arith.constant 0 : index
    %129 = vector.load %arg2[%c0_114, %c0_115] : memref<128x128xbf16, #tpu.memory_space<vmem>>, vector<128x128xbf16>
    %cst_116 = arith.constant dense<0.000000e+00> : vector<128x128xf32>
    %130 = tpu.matmul %129, %128, %cst_116 {dimension_numbers = #tpu.dot_dimension_numbers<[1], [0], [0], [1], [0, 0, 1, 1], [], []>} : vector<128x128xbf16>, vector<128x128xbf16>, vector<128x128xf32> -> vector<128x128xf32>
    %131 = arith.truncf %130 : vector<128x128xf32> to vector<128x128xbf16>
    %c0_117 = arith.constant 0 : index
    %c0_118 = arith.constant 0 : index
    %132 = vector.load %arg10[%c0_117, %c0_118] : memref<128x128xbf16, #tpu.memory_space<vmem>>, vector<128x128xbf16>
    %cst_119 = arith.constant dense<0.000000e+00> : vector<128x128xf32>
    %133 = tpu.matmul %131, %132, %cst_119 {dimension_numbers = #tpu.dot_dimension_numbers<[1], [0], [0], [1], [0, 0, 1, 1], [], []>} : vector<128x128xbf16>, vector<128x128xbf16>, vector<128x128xf32> -> vector<128x128xf32>
    %c0_120 = arith.constant 0 : index
    %c0_121 = arith.constant 0 : index
    %134 = vector.load %arg11[%c0_120, %c0_121] : memref<128x128xf32, #tpu.memory_space<vmem>>, vector<128x128xf32>
    %135 = arith.addf %133, %134 : vector<128x128xf32>
    %cst_122 = arith.constant 0.000000e+00 : f32
    %136 = vector.broadcast %cst_122 : f32 to vector<128x128xf32>
    %137 = arith.maximumf %135, %136 : vector<128x128xf32>
    %c12_i32 = arith.constant 12 : i32
    %138 = arith.truncf %137 : vector<128x128xf32> to vector<128x128xbf16>
    %c0_123 = arith.constant 0 : index
    %c0_124 = arith.constant 0 : index
    %139 = vector.load %arg2[%c0_123, %c0_124] : memref<128x128xbf16, #tpu.memory_space<vmem>>, vector<128x128xbf16>
    %cst_125 = arith.constant dense<0.000000e+00> : vector<128x128xf32>
    %140 = tpu.matmul %139, %138, %cst_125 {dimension_numbers = #tpu.dot_dimension_numbers<[1], [0], [0], [1], [0, 0, 1, 1], [], []>} : vector<128x128xbf16>, vector<128x128xbf16>, vector<128x128xf32> -> vector<128x128xf32>
    %141 = arith.truncf %140 : vector<128x128xf32> to vector<128x128xbf16>
    %c0_126 = arith.constant 0 : index
    %c0_127 = arith.constant 0 : index
    %142 = vector.load %arg10[%c0_126, %c0_127] : memref<128x128xbf16, #tpu.memory_space<vmem>>, vector<128x128xbf16>
    %cst_128 = arith.constant dense<0.000000e+00> : vector<128x128xf32>
    %143 = tpu.matmul %141, %142, %cst_128 {dimension_numbers = #tpu.dot_dimension_numbers<[1], [0], [0], [1], [0, 0, 1, 1], [], []>} : vector<128x128xbf16>, vector<128x128xbf16>, vector<128x128xf32> -> vector<128x128xf32>
    %c0_129 = arith.constant 0 : index
    %c0_130 = arith.constant 0 : index
    %144 = vector.load %arg11[%c0_129, %c0_130] : memref<128x128xf32, #tpu.memory_space<vmem>>, vector<128x128xf32>
    %145 = arith.addf %143, %144 : vector<128x128xf32>
    %cst_131 = arith.constant 0.000000e+00 : f32
    %146 = vector.broadcast %cst_131 : f32 to vector<128x128xf32>
    %147 = arith.maximumf %145, %146 : vector<128x128xf32>
    %c13_i32 = arith.constant 13 : i32
    %148 = arith.truncf %147 : vector<128x128xf32> to vector<128x128xbf16>
    %c0_132 = arith.constant 0 : index
    %c0_133 = arith.constant 0 : index
    %149 = vector.load %arg2[%c0_132, %c0_133] : memref<128x128xbf16, #tpu.memory_space<vmem>>, vector<128x128xbf16>
    %cst_134 = arith.constant dense<0.000000e+00> : vector<128x128xf32>
    %150 = tpu.matmul %149, %148, %cst_134 {dimension_numbers = #tpu.dot_dimension_numbers<[1], [0], [0], [1], [0, 0, 1, 1], [], []>} : vector<128x128xbf16>, vector<128x128xbf16>, vector<128x128xf32> -> vector<128x128xf32>
    %151 = arith.truncf %150 : vector<128x128xf32> to vector<128x128xbf16>
    %c0_135 = arith.constant 0 : index
    %c0_136 = arith.constant 0 : index
    %152 = vector.load %arg10[%c0_135, %c0_136] : memref<128x128xbf16, #tpu.memory_space<vmem>>, vector<128x128xbf16>
    %cst_137 = arith.constant dense<0.000000e+00> : vector<128x128xf32>
    %153 = tpu.matmul %151, %152, %cst_137 {dimension_numbers = #tpu.dot_dimension_numbers<[1], [0], [0], [1], [0, 0, 1, 1], [], []>} : vector<128x128xbf16>, vector<128x128xbf16>, vector<128x128xf32> -> vector<128x128xf32>
    %c0_138 = arith.constant 0 : index
    %c0_139 = arith.constant 0 : index
    %154 = vector.load %arg11[%c0_138, %c0_139] : memref<128x128xf32, #tpu.memory_space<vmem>>, vector<128x128xf32>
    %155 = arith.addf %153, %154 : vector<128x128xf32>
    %cst_140 = arith.constant 0.000000e+00 : f32
    %156 = vector.broadcast %cst_140 : f32 to vector<128x128xf32>
    %157 = arith.maximumf %155, %156 : vector<128x128xf32>
    %c14_i32 = arith.constant 14 : i32
    %158 = arith.truncf %157 : vector<128x128xf32> to vector<128x128xbf16>
    %c0_141 = arith.constant 0 : index
    %c0_142 = arith.constant 0 : index
    %159 = vector.load %arg2[%c0_141, %c0_142] : memref<128x128xbf16, #tpu.memory_space<vmem>>, vector<128x128xbf16>
    %cst_143 = arith.constant dense<0.000000e+00> : vector<128x128xf32>
    %160 = tpu.matmul %159, %158, %cst_143 {dimension_numbers = #tpu.dot_dimension_numbers<[1], [0], [0], [1], [0, 0, 1, 1], [], []>} : vector<128x128xbf16>, vector<128x128xbf16>, vector<128x128xf32> -> vector<128x128xf32>
    %161 = arith.truncf %160 : vector<128x128xf32> to vector<128x128xbf16>
    %c0_144 = arith.constant 0 : index
    %c0_145 = arith.constant 0 : index
    %162 = vector.load %arg10[%c0_144, %c0_145] : memref<128x128xbf16, #tpu.memory_space<vmem>>, vector<128x128xbf16>
    %cst_146 = arith.constant dense<0.000000e+00> : vector<128x128xf32>
    %163 = tpu.matmul %161, %162, %cst_146 {dimension_numbers = #tpu.dot_dimension_numbers<[1], [0], [0], [1], [0, 0, 1, 1], [], []>} : vector<128x128xbf16>, vector<128x128xbf16>, vector<128x128xf32> -> vector<128x128xf32>
    %c0_147 = arith.constant 0 : index
    %c0_148 = arith.constant 0 : index
    %164 = vector.load %arg11[%c0_147, %c0_148] : memref<128x128xf32, #tpu.memory_space<vmem>>, vector<128x128xf32>
    %165 = arith.addf %163, %164 : vector<128x128xf32>
    %cst_149 = arith.constant 0.000000e+00 : f32
    %166 = vector.broadcast %cst_149 : f32 to vector<128x128xf32>
    %167 = arith.maximumf %165, %166 : vector<128x128xf32>
    %c15_i32 = arith.constant 15 : i32
    %168 = arith.truncf %167 : vector<128x128xf32> to vector<128x128xbf16>
    %c0_150 = arith.constant 0 : index
    %c0_151 = arith.constant 0 : index
    %169 = vector.load %arg2[%c0_150, %c0_151] : memref<128x128xbf16, #tpu.memory_space<vmem>>, vector<128x128xbf16>
    %cst_152 = arith.constant dense<0.000000e+00> : vector<128x128xf32>
    %170 = tpu.matmul %169, %168, %cst_152 {dimension_numbers = #tpu.dot_dimension_numbers<[1], [0], [0], [1], [0, 0, 1, 1], [], []>} : vector<128x128xbf16>, vector<128x128xbf16>, vector<128x128xf32> -> vector<128x128xf32>
    %171 = arith.truncf %170 : vector<128x128xf32> to vector<128x128xbf16>
    %c0_153 = arith.constant 0 : index
    %c0_154 = arith.constant 0 : index
    %172 = vector.load %arg10[%c0_153, %c0_154] : memref<128x128xbf16, #tpu.memory_space<vmem>>, vector<128x128xbf16>
    %cst_155 = arith.constant dense<0.000000e+00> : vector<128x128xf32>
    %173 = tpu.matmul %171, %172, %cst_155 {dimension_numbers = #tpu.dot_dimension_numbers<[1], [0], [0], [1], [0, 0, 1, 1], [], []>} : vector<128x128xbf16>, vector<128x128xbf16>, vector<128x128xf32> -> vector<128x128xf32>
    %c0_156 = arith.constant 0 : index
    %c0_157 = arith.constant 0 : index
    %174 = vector.load %arg11[%c0_156, %c0_157] : memref<128x128xf32, #tpu.memory_space<vmem>>, vector<128x128xf32>
    %175 = arith.addf %173, %174 : vector<128x128xf32>
    %cst_158 = arith.constant 0.000000e+00 : f32
    %176 = vector.broadcast %cst_158 : f32 to vector<128x128xf32>
    %177 = arith.maximumf %175, %176 : vector<128x128xf32>
    %c16_i32 = arith.constant 16 : i32
    %178 = arith.truncf %177 : vector<128x128xf32> to vector<128x128xbf16>
    %c0_159 = arith.constant 0 : index
    %c0_160 = arith.constant 0 : index
    %179 = vector.load %arg2[%c0_159, %c0_160] : memref<128x128xbf16, #tpu.memory_space<vmem>>, vector<128x128xbf16>
    %cst_161 = arith.constant dense<0.000000e+00> : vector<128x128xf32>
    %180 = tpu.matmul %179, %178, %cst_161 {dimension_numbers = #tpu.dot_dimension_numbers<[1], [0], [0], [1], [0, 0, 1, 1], [], []>} : vector<128x128xbf16>, vector<128x128xbf16>, vector<128x128xf32> -> vector<128x128xf32>
    %181 = arith.truncf %180 : vector<128x128xf32> to vector<128x128xbf16>
    %c0_162 = arith.constant 0 : index
    %c0_163 = arith.constant 0 : index
    %182 = vector.load %arg10[%c0_162, %c0_163] : memref<128x128xbf16, #tpu.memory_space<vmem>>, vector<128x128xbf16>
    %cst_164 = arith.constant dense<0.000000e+00> : vector<128x128xf32>
    %183 = tpu.matmul %181, %182, %cst_164 {dimension_numbers = #tpu.dot_dimension_numbers<[1], [0], [0], [1], [0, 0, 1, 1], [], []>} : vector<128x128xbf16>, vector<128x128xbf16>, vector<128x128xf32> -> vector<128x128xf32>
    %c0_165 = arith.constant 0 : index
    %c0_166 = arith.constant 0 : index
    %184 = vector.load %arg11[%c0_165, %c0_166] : memref<128x128xf32, #tpu.memory_space<vmem>>, vector<128x128xf32>
    %185 = arith.addf %183, %184 : vector<128x128xf32>
    %cst_167 = arith.constant 0.000000e+00 : f32
    %186 = vector.broadcast %cst_167 : f32 to vector<128x128xf32>
    %187 = arith.maximumf %185, %186 : vector<128x128xf32>
    %c17_i32 = arith.constant 17 : i32
    %188 = arith.truncf %187 : vector<128x128xf32> to vector<128x128xbf16>
    %c0_168 = arith.constant 0 : index
    %c0_169 = arith.constant 0 : index
    %189 = vector.load %arg2[%c0_168, %c0_169] : memref<128x128xbf16, #tpu.memory_space<vmem>>, vector<128x128xbf16>
    %cst_170 = arith.constant dense<0.000000e+00> : vector<128x128xf32>
    %190 = tpu.matmul %189, %188, %cst_170 {dimension_numbers = #tpu.dot_dimension_numbers<[1], [0], [0], [1], [0, 0, 1, 1], [], []>} : vector<128x128xbf16>, vector<128x128xbf16>, vector<128x128xf32> -> vector<128x128xf32>
    %191 = arith.truncf %190 : vector<128x128xf32> to vector<128x128xbf16>
    %c0_171 = arith.constant 0 : index
    %c0_172 = arith.constant 0 : index
    %192 = vector.load %arg10[%c0_171, %c0_172] : memref<128x128xbf16, #tpu.memory_space<vmem>>, vector<128x128xbf16>
    %cst_173 = arith.constant dense<0.000000e+00> : vector<128x128xf32>
    %193 = tpu.matmul %191, %192, %cst_173 {dimension_numbers = #tpu.dot_dimension_numbers<[1], [0], [0], [1], [0, 0, 1, 1], [], []>} : vector<128x128xbf16>, vector<128x128xbf16>, vector<128x128xf32> -> vector<128x128xf32>
    %c0_174 = arith.constant 0 : index
    %c0_175 = arith.constant 0 : index
    %194 = vector.load %arg11[%c0_174, %c0_175] : memref<128x128xf32, #tpu.memory_space<vmem>>, vector<128x128xf32>
    %195 = arith.addf %193, %194 : vector<128x128xf32>
    %cst_176 = arith.constant 0.000000e+00 : f32
    %196 = vector.broadcast %cst_176 : f32 to vector<128x128xf32>
    %197 = arith.maximumf %195, %196 : vector<128x128xf32>
    %c18_i32 = arith.constant 18 : i32
    %198 = arith.truncf %197 : vector<128x128xf32> to vector<128x128xbf16>
    %c0_177 = arith.constant 0 : index
    %c0_178 = arith.constant 0 : index
    %199 = vector.load %arg2[%c0_177, %c0_178] : memref<128x128xbf16, #tpu.memory_space<vmem>>, vector<128x128xbf16>
    %cst_179 = arith.constant dense<0.000000e+00> : vector<128x128xf32>
    %200 = tpu.matmul %199, %198, %cst_179 {dimension_numbers = #tpu.dot_dimension_numbers<[1], [0], [0], [1], [0, 0, 1, 1], [], []>} : vector<128x128xbf16>, vector<128x128xbf16>, vector<128x128xf32> -> vector<128x128xf32>
    %201 = arith.truncf %200 : vector<128x128xf32> to vector<128x128xbf16>
    %c0_180 = arith.constant 0 : index
    %c0_181 = arith.constant 0 : index
    %202 = vector.load %arg10[%c0_180, %c0_181] : memref<128x128xbf16, #tpu.memory_space<vmem>>, vector<128x128xbf16>
    %cst_182 = arith.constant dense<0.000000e+00> : vector<128x128xf32>
    %203 = tpu.matmul %201, %202, %cst_182 {dimension_numbers = #tpu.dot_dimension_numbers<[1], [0], [0], [1], [0, 0, 1, 1], [], []>} : vector<128x128xbf16>, vector<128x128xbf16>, vector<128x128xf32> -> vector<128x128xf32>
    %c0_183 = arith.constant 0 : index
    %c0_184 = arith.constant 0 : index
    %204 = vector.load %arg11[%c0_183, %c0_184] : memref<128x128xf32, #tpu.memory_space<vmem>>, vector<128x128xf32>
    %205 = arith.addf %203, %204 : vector<128x128xf32>
    %cst_185 = arith.constant 0.000000e+00 : f32
    %206 = vector.broadcast %cst_185 : f32 to vector<128x128xf32>
    %207 = arith.maximumf %205, %206 : vector<128x128xf32>
    %c19_i32 = arith.constant 19 : i32
    %208 = arith.truncf %207 : vector<128x128xf32> to vector<128x128xbf16>
    %c0_186 = arith.constant 0 : index
    %c0_187 = arith.constant 0 : index
    %209 = vector.load %arg2[%c0_186, %c0_187] : memref<128x128xbf16, #tpu.memory_space<vmem>>, vector<128x128xbf16>
    %cst_188 = arith.constant dense<0.000000e+00> : vector<128x128xf32>
    %210 = tpu.matmul %209, %208, %cst_188 {dimension_numbers = #tpu.dot_dimension_numbers<[1], [0], [0], [1], [0, 0, 1, 1], [], []>} : vector<128x128xbf16>, vector<128x128xbf16>, vector<128x128xf32> -> vector<128x128xf32>
    %211 = arith.truncf %210 : vector<128x128xf32> to vector<128x128xbf16>
    %c0_189 = arith.constant 0 : index
    %c0_190 = arith.constant 0 : index
    %212 = vector.load %arg10[%c0_189, %c0_190] : memref<128x128xbf16, #tpu.memory_space<vmem>>, vector<128x128xbf16>
    %cst_191 = arith.constant dense<0.000000e+00> : vector<128x128xf32>
    %213 = tpu.matmul %211, %212, %cst_191 {dimension_numbers = #tpu.dot_dimension_numbers<[1], [0], [0], [1], [0, 0, 1, 1], [], []>} : vector<128x128xbf16>, vector<128x128xbf16>, vector<128x128xf32> -> vector<128x128xf32>
    %c0_192 = arith.constant 0 : index
    %c0_193 = arith.constant 0 : index
    %214 = vector.load %arg11[%c0_192, %c0_193] : memref<128x128xf32, #tpu.memory_space<vmem>>, vector<128x128xf32>
    %215 = arith.addf %213, %214 : vector<128x128xf32>
    %cst_194 = arith.constant 0.000000e+00 : f32
    %216 = vector.broadcast %cst_194 : f32 to vector<128x128xf32>
    %217 = arith.maximumf %215, %216 : vector<128x128xf32>
    %c0_195 = arith.constant 0 : index
    %c0_196 = arith.constant 0 : index
    %218 = vector.load %arg9[%c0_195, %c0_196] : memref<128x128xf32, #tpu.memory_space<vmem>>, vector<128x128xf32>
    tpu.vector_store %arg9[%c0_195, %c0_196], %217 {strides = array<i32>} : memref<128x128xf32, #tpu.memory_space<vmem>>, vector<128x128xf32>,
    %219 = arith.truncf %217 : vector<128x128xf32> to vector<128x128xbf16>
    %c0_197 = arith.constant 0 : index
    %c0_198 = arith.constant 0 : index
    %220 = vector.load %arg7[%c0_197, %c0_198] : memref<128x128xbf16, #tpu.memory_space<vmem>>, vector<128x128xbf16>
    %cst_199 = arith.constant dense<0.000000e+00> : vector<128x128xf32>
    %221 = tpu.matmul %219, %220, %cst_199 {dimension_numbers = #tpu.dot_dimension_numbers<[1], [0], [0], [1], [0, 0, 1, 1], [], []>} : vector<128x128xbf16>, vector<128x128xbf16>, vector<128x128xf32> -> vector<128x128xf32>
    %c0_200 = arith.constant 0 : index
    %c0_201 = arith.constant 0 : index
    %222 = vector.load %arg8[%c0_200, %c0_201] : memref<128x128xf32, #tpu.memory_space<vmem>>, vector<128x128xf32>
    tpu.vector_store %arg8[%c0_200, %c0_201], %221 {strides = array<i32>} : memref<128x128xf32, #tpu.memory_space<vmem>>, vector<128x128xf32>,
    return
  }
}

</mosaic_0001>

<bundles_post_ra>
// kernel: tpu_custom_call.1
= control target key start
LH: loop header
LB: loop body
LE: loop exit
PB: predicated region body
PF: predicated region fallthrough
CT: control target
= control target key end

     0   :  { %15 = vsyncpa [#allocation7], 0  ;;  %s9357_s0 = inlined_call_operand.vmem [shape: f32[2], index: 0, kind: input, shape index: {}]   ;;  %s9358_s1 = inlined_call_operand.vmem [shape: bf16[128,128], index: 1, kind: input, shape index: {}]   ;;  %s9359_s2 = inlined_call_operand.vmem [shape: bf16[128,128], index: 2, kind: input, shape index: {}]   ;;  %s9360_s3 = inlined_call_operand.hbm [shape: f32[128,128], index: 3, kind: input, shape index: {}, may-alias: {3,9}]   ;;  %s9361_s4 = inlined_call_operand.vmem [shape: bf16[128,128], index: 4, kind: input, shape index: {}]   ;;  %s9362_s5 = inlined_call_operand.vmem [shape: bf16[128,128], index: 5, kind: input, shape index: {}]   ;;  %s9363_s6 = inlined_call_operand.hbm [shape: bf16[128,128], index: 6, kind: input, shape index: {}]   ;;  %s9364_s7 = inlined_call_operand.hbm [shape: bf16[128,128], index: 7, kind: input, shape index: {}]   ;;  %s9365_s8 = inlined_call_operand.hbm [shape: f32[128,128], index: 8, kind: output, shape index: {0}]   ;;  %s9366_s9 = inlined_call_operand.hbm [shape: f32[128,128], index: 9, kind: output, shape index: {1}, may-alias: {3,9}]  }
   0x1   :  { %16 = vsyncpa [#allocation5], 0 }
   0x2   :  { %17 = vsyncpa [#allocation10], 0 }
   0x3   :  { %18 = vsyncpa [#allocation6], 0 }
   0x4   :  { %19 = vsyncpa [#allocation14], 0  ;;  %s8053_s30 = smov [#allocation9]   ;;  %s26_s13 = sshll.u32 %s9357_s0, 4  ;;  %s27_s13 = int_to_ptr.vmem [resolvable:$true] %s26_s13 }
   0x5   :  { %s55_s10 = sshll.u32 %s8053_s30, 4  ;;  %s56_s10 = int_to_ptr.vmem [resolvable:$true] %s55_s10 }
   0x6   :  { %s7939_s14 = scalar_lea.vmem %s56_s10, 1024  ;;  %p7944_p1 = scmp.lt.s32.totalorder %s56_s10, %s56_s10 }
   0x7   :  { %p7940_p0 = scmp.ne.s32.totalorder %s56_s10, %s7939_s14  ;;  %p7945_p2 = scmp.lt.s32.totalorder %s7939_s14, %s7939_s14 }
   0x9   :  { %p7946_p3 = por %p7945_p2, %p7944_p1 }
   0xb   :  { %p7947_p4 = pnand %p7946_p3, %p7940_p0 }
   0xd   :  { %7950 = shalt.err (!%p7947_p4)
}
   0xe   :  { %s8054_s15 = smov 64   ;;  %s8055_s16 = smov 4  }
   0xf   :  { %61 = dma.hbm_to_vmem [thread:$0]  %s9363_s6, 1024, %s56_s10, [#allocation10], %s8054_s15, %s8054_s15, %s8055_s16  }
  0x10   :  { %s7951_s19 = scalar_lea.vmem %s27_s13, 16  ;;  %p7956_p6 = scmp.lt.s32.totalorder %s27_s13, %s27_s13 }
  0x11   :  { %p7952_p5 = scmp.ne.s32.totalorder %s27_s13, %s7951_s19  ;;  %p7957_p7 = scmp.lt.s32.totalorder %s7951_s19, %s7951_s19 }
  0x13   :  { %p7958_p8 = por %p7957_p7, %p7956_p6 }
  0x15   :  { %p7959_p9 = pnand %p7958_p8, %p7952_p5 }
  0x17   :  { %7962 = shalt.err (!%p7959_p9)
}
  0x18   :  { %s8056_s0 = smov [#allocation4]   ;;  %s8057_s20 = smov [#allocation8]  }
  0x19   :  { %29 = dma.vmem_to_smem %s27_s13, 16, %s8056_s0, [#allocation7]  }
  0x1a   :  { %s39_s21 = sshll.u32 %s8057_s20, 4  ;;  %s40_s21 = int_to_ptr.vmem [resolvable:$true] %s39_s21 }
  0x1b   :  { %s7971_s22 = scalar_lea.vmem %s40_s21, 2048  ;;  %p7976_p11 = scmp.lt.s32.totalorder %s40_s21, %s40_s21 }
  0x1c   :  { %p7972_p10 = scmp.ne.s32.totalorder %s40_s21, %s7971_s22  ;;  %p7977_p12 = scmp.lt.s32.totalorder %s7971_s22, %s7971_s22 }
  0x1e   :  { %p7978_p13 = por %p7977_p12, %p7976_p11 }
  0x20   :  { %p7979_p0 = pnand %p7978_p13, %p7972_p10 }
  0x22   :  { %7982 = shalt.err (!%p7979_p0)
}
  0x23   :  { %s8058_s6 = smov 128   ;;  %s8059_s23 = smov 8  }
  0x24   :  { %45 = dma.hbm_to_vmem [thread:$0]  %s9360_s3, 2048, %s40_s21, [#allocation5], %s8058_s6, %s8058_s6, %s8059_s23  }
  0x25   :  { %s8060_s26 = smov [#allocation11]  }
  0x26   :  { %s67_s27 = sshll.u32 %s8060_s26, 4  ;;  %s68_s27 = int_to_ptr.vmem [resolvable:$true] %s67_s27 }
  0x27   :  { %s7991_s28 = scalar_lea.vmem %s68_s27, 1024  ;;  %p7996_p2 = scmp.lt.s32.totalorder %s68_s27, %s68_s27 }
  0x28   :  { %p7992_p1 = scmp.ne.s32.totalorder %s68_s27, %s7991_s28  ;;  %p7997_p3 = scmp.lt.s32.totalorder %s7991_s28, %s7991_s28 }
  0x2a   :  { %p7998_p4 = por %p7997_p3, %p7996_p2 }
  0x2c   :  { %p7999_p5 = pnand %p7998_p4, %p7992_p1 }
  0x2e   :  { %8002 = shalt.err (!%p7999_p5)
}
  0x2f   :  { %73 = dma.hbm_to_vmem [thread:$0]  %s9364_s7, 1024, %s68_s27, [#allocation10], %s8054_s15, %s8054_s15, %s8055_s16  }
  0x30   :  { %8043 = dma.done.wait [#allocation7], 16  }
  0x31   :  { %8044 = vsyncadd [#allocation7], 4294967280 }
  0x32   :  { %8045 = dma.done.wait [#allocation5], 2048  }
  0x33   :  { %8046 = vsyncadd [#allocation5], 4294965248 }
  0x34   :  { %8047 = dma.done.wait [#allocation10], 2048  }
  0x35   :  { %8048 = vsyncadd [#allocation10], 4294965248 }
  0x36   :  { %86 = sfence }
  0x37   :  { %v7819_v0 = vld [vmem:[%s9361_s4 + $0x38] sm:$0xff]   ;;  %v7820_v1 = vld [vmem:[%s9361_s4 + $0x30] sm:$0xff]   ;;  %v7821_v2 = vld [vmem:[%s9361_s4 + $0x28] sm:$0xff]   ;;  %s88_s19 = sld [smem:[#allocation4]] }
  0x38   :  { %6417 = vmatprep.subr.bf16.mxu0 %v7819_v0  ;;  %v7822_v3 = vld [vmem:[%s9361_s4 + $0x20] sm:$0xff]   ;;  %v7823_v5 = vld [vmem:[%s9361_s4 + $0x18] sm:$0xff]   ;;  %v7824_v6 = vld [vmem:[%s9361_s4 + $0x10] sm:$0xff]  }
  0x39   :  { %6418 = vmatpush3.bf16.msra.mxu0 %v7819_v0  ;;  %v7827_v4 = vld [vmem:[%s9358_s1] sm:$0xff]   ;;  %v7825_v7 = vld [vmem:[%s9361_s4 + $0x8] sm:$0xff]   ;;  %v660_v9 = vld [vmem:[#allocation8 + $0x70] sm:$0xff] }
  0x3a   :  { %6419 = vmatprep.subr.bf16.mxu0 %v7820_v1  ;;  %6433 = vmatprep.mubr.bf16.mxu0 %v7827_v4  ;;  %v7826_v8 = vld [vmem:[%s9361_s4] sm:$0xff]   ;;  %v661_v10 = vld [vmem:[#allocation8 + $0x78] sm:$0xff]  ;;  %v7828_v12 = vld [vmem:[%s9358_s1 + $0x8] sm:$0xff]  }
  0x3b   :  { %v658_v11 = vld [vmem:[#allocation8 + $0x60] sm:$0xff]  ;;  %v669_v13 = vpack.c.bf16 %v661_v10, %v660_v9  ;;  %v659_v14 = vld [vmem:[#allocation8 + $0x68] sm:$0xff]  ;;  %v7829_v15 = vld [vmem:[%s9358_s1 + $0x10] sm:$0xff]  }
  0x3c   :  { %v7843_v16 = vld [vmem:[%s9362_s5 + $0x38] sm:$0xff]   ;;  %v7844_v17 = vld [vmem:[%s9362_s5 + $0x30] sm:$0xff]   ;;  %v668_v18 = vpack.c.bf16 %v659_v14, %v658_v11  ;;  %v7845_v21 = vld [vmem:[%s9362_s5 + $0x28] sm:$0xff]  }
  0x3d   :  { %6420 = vmatpush3.bf16.msra.mxu0 %v7820_v1  ;;  %v656_v19 = vld [vmem:[#allocation8 + $0x50] sm:$0xff]  ;;  %6449 = vmatprep.subr.bf16.mxu1 %v7843_v16  ;;  %v657_v20 = vld [vmem:[#allocation8 + $0x58] sm:$0xff]  ;;  %v654_v22 = vld [vmem:[#allocation8 + $0x40] sm:$0xff]  ;;  %v549_v57 = vstv %s88_s19 }
  0x3e   :  { %6421 = vmatprep.subr.bf16.mxu0 %v7821_v2  ;;  %6450 = vmatpush3.bf16.msra.mxu1 %v7843_v16  ;;  %v655_v23 = vld [vmem:[#allocation8 + $0x48] sm:$0xff]  ;;  %v7830_v24 = vld [vmem:[%s9358_s1 + $0x18] sm:$0xff]   ;;  %v667_v25 = vpack.c.bf16 %v657_v20, %v656_v19  ;;  %v7846_v26 = vld [vmem:[%s9362_s5 + $0x20] sm:$0xff]  }
  0x3f   :  { %6451 = vmatprep.subr.bf16.mxu1 %v7844_v17  ;;  %v7831_v27 = vld [vmem:[%s9358_s1 + $0x20] sm:$0xff]   ;;  %v652_v28 = vld [vmem:[#allocation8 + $0x30] sm:$0xff]  ;;  %v653_v29 = vld [vmem:[#allocation8 + $0x38] sm:$0xff]  ;;  %v666_v30 = vpack.c.bf16 %v655_v23, %v654_v22 }
  0x40   :  { %v7847_v31 = vld [vmem:[%s9362_s5 + $0x18] sm:$0xff]   ;;  %v665_v32 = vpack.c.bf16 %v653_v29, %v652_v28  ;;  %v650_v33 = vld [vmem:[#allocation8 + $0x20] sm:$0xff]  ;;  %v651_v34 = vld [vmem:[#allocation8 + $0x28] sm:$0xff] }
  0x41   :  { %6422 = vmatpush3.bf16.msra.mxu0 %v7821_v2  ;;  %v7832_v35 = vld [vmem:[%s9358_s1 + $0x28] sm:$0xff]   ;;  %v7848_v36 = vld [vmem:[%s9362_s5 + $0x10] sm:$0xff]   ;;  %v664_v38 = vpack.c.bf16 %v651_v34, %v650_v33  ;;  %v649_v40 = vld [vmem:[#allocation8 + $0x18] sm:$0xff] }
  0x42   :  { %6423 = vmatprep.subr.bf16.mxu0 %v7822_v3  ;;  %6452 = vmatpush3.bf16.msra.mxu1 %v7844_v17  ;;  %v7833_v37 = vld [vmem:[%s9358_s1 + $0x30] sm:$0xff]   ;;  %v646_v42 = vld [vmem:[#allocation8] sm:$0xff]  ;;  %v647_v43 = vld [vmem:[#allocation8 + $0x8] sm:$0xff] }
  0x43   :  { %6453 = vmatprep.subr.bf16.mxu1 %v7845_v21  ;;  %v648_v39 = vld [vmem:[#allocation8 + $0x10] sm:$0xff]  ;;  %v7834_v44 = vld [vmem:[%s9358_s1 + $0x38] sm:$0xff]   ;;  %v8203_v45 = vld [vmem:[%s9359_s2] sm:$0xff]   ;;  %v662_v46 = vpack.c.bf16 %v647_v43, %v646_v42 }
  0x44   :  { %v663_v41 = vpack.c.bf16 %v649_v40, %v648_v39  ;;  %v8209_v47 = vld [vmem:[%s9359_s2 + $0x8] sm:$0xff]   ;;  %v8214_v48 = vld [vmem:[%s9359_s2 + $0x10] sm:$0xff]   ;;  %v8221_v49 = vld [vmem:[%s9359_s2 + $0x18] sm:$0xff]  }
  0x45   :  { %6424 = vmatpush3.bf16.msra.mxu0 %v7822_v3  ;;  %v8226_v50 = vld [vmem:[%s9359_s2 + $0x20] sm:$0xff]   ;;  %v8233_v51 = vld [vmem:[%s9359_s2 + $0x28] sm:$0xff]   ;;  %v8238_v52 = vld [vmem:[%s9359_s2 + $0x30] sm:$0xff]  }
  0x46   :  { %6425 = vmatprep.subr.bf16.mxu0 %v7823_v5  ;;  %6454 = vmatpush3.bf16.msra.mxu1 %v7845_v21  ;;  %v8245_v53 = vld [vmem:[%s9359_s2 + $0x38] sm:$0xff]   ;;  %v5720_v60 = vld [vmem:[#allocation9 + $0x30] sm:$0xff]   ;;  %v7849_v0 = vld [vmem:[%s9362_s5 + $0x8] sm:$0xff]  }
  0x47   :  { %6455 = vmatprep.subr.bf16.mxu1 %v7846_v26  ;;  %v5721_v54 = vld [vmem:[#allocation9 + $0x38] sm:$0xff]   ;;  %v5669_v62 = vunpack.c.l.bf16 %v5720_v60  ;;  %v5670_v63 = vunpack.c.h.bf16 %v5720_v60  ;;  %v5719_v3 = vld [vmem:[#allocation9 + $0x28] sm:$0xff]   ;;  %v5718_v10 = vld [vmem:[#allocation9 + $0x20] sm:$0xff]  }
  0x48   :  { %v5673_v55 = vunpack.c.l.bf16 %v5721_v54  ;;  %v5674_v56 = vunpack.c.h.bf16 %v5721_v54  ;;  %v5717_v17 = vld [vmem:[#allocation9 + $0x18] sm:$0xff]   ;;  %v5716_v23 = vld [vmem:[#allocation9 + $0x10] sm:$0xff]   ;;  %v5715_v29 = vld [vmem:[#allocation9 + $0x8] sm:$0xff]  }
  0x49   :  { %6426 = vmatpush3.bf16.msra.mxu0 %v7823_v5  ;;  %v562_v1 = vmul.f32 %v5669_v62, %v549_v57  ;;  %v563_v2 = vmul.f32 %v5670_v63, %v549_v57  ;;  %v5665_v5 = vunpack.c.l.bf16 %v5719_v3  ;;  %v5657_v19 = vunpack.c.l.bf16 %v5717_v17 }
  0x4a   :  { %6427 = vmatprep.subr.bf16.mxu0 %v7824_v6  ;;  %6456 = vmatpush3.bf16.msra.mxu1 %v7846_v26  ;;  %v564_v58 = vmul.f32 %v5673_v55, %v549_v57  ;;  %v565_v59 = vmul.f32 %v5674_v56, %v549_v57  ;;  %v5658_v20 = vunpack.c.h.bf16 %v5717_v17  ;;  %v5654_v26 = vunpack.c.h.bf16 %v5716_v23 }
  0x4b   :  { %6457 = vmatprep.subr.bf16.mxu1 %v7847_v31  ;;  %v5708_v4 = vpack.c.bf16 %v563_v2, %v562_v1  ;;  %v556_v21 = vmul.f32 %v5657_v19, %v549_v57 }
  0x4c   :  { %v5713_v61 = vpack.c.bf16 %v565_v59, %v564_v58  ;;  %v557_v22 = vmul.f32 %v5658_v20, %v549_v57  ;;  %v555_v28 = vmul.f32 %v5654_v26, %v549_v57 }
  0x4d   :  { %6428 = vmatpush3.bf16.msra.mxu0 %v7824_v6  ;;  %v5666_v6 = vunpack.c.h.bf16 %v5719_v3  ;;  %5727 = vst [vmem:[#allocation2 + $0x30] sm:$0xff] %v5708_v4  }
  0x4e   :  { %6429 = vmatprep.subr.bf16.mxu0 %v7825_v7  ;;  %6458 = vmatpush3.bf16.msra.mxu1 %v7847_v31  ;;  %5728 = vst [vmem:[#allocation2 + $0x38] sm:$0xff] %v5713_v61   ;;  %v5649_v31 = vunpack.c.l.bf16 %v5715_v29 }
  0x4f   :  { %6459 = vmatprep.subr.bf16.mxu1 %v7848_v36  ;;  %v561_v9 = vmul.f32 %v5666_v6, %v549_v57 }
  0x50   :  { %v552_v33 = vmul.f32 %v5649_v31, %v549_v57 }
  0x51   :  { %6430 = vmatpush3.bf16.msra.mxu0 %v7825_v7  ;;  %v7850_v7 = vld [vmem:[%s9362_s5] sm:$0xff]   ;;  %s5562_s5 = sld [smem:[#allocation4 + $0x1]] }
  0x52   :  { %6431 = vmatprep.subr.bf16.mxu0 %v7826_v8  ;;  %6460 = vmatpush3.bf16.msra.mxu1 %v7848_v36 }
  0x53   :  { %6461 = vmatprep.subr.bf16.mxu1 %v7849_v0 }
  0x54   :  { %v8258_v58 = vld [vmem:[#allocation2 + $0x30] sm:$0xff]  }
  0x55   :  { %6432 = vmatpush3.bf16.msra.mxu0 %v7826_v8  ;;  %v560_v8 = vmul.f32 %v5665_v5, %v549_v57  ;;  %v8255_v14 = vld [vmem:[#allocation2 + $0x38] sm:$0xff]  }
  0x56   :  { %6481 = vmatprep.subr.bf16.mxu0 %v669_v13  ;;  %6462 = vmatpush3.bf16.msra.mxu1 %v7849_v0 }
  0x57   :  { %6463 = vmatprep.subr.bf16.mxu1 %v7850_v7  ;;  %v5703_v11 = vpack.c.bf16 %v561_v9, %v560_v8 }
  0x58   :  { %6434 = vmatmul.mubr.bf16.vlgmr.msra.gmra.mxu0 %v7828_v12  ;;  %v5661_v12 = vunpack.c.l.bf16 %v5718_v10 }
  0x59   :  { %6482 = vmatpush3.bf16.msra.mxu0 %v669_v13  ;;  %6437 = vmatprep.mubr.bf16.mxu0 %v7829_v15  ;;  %v5662_v13 = vunpack.c.h.bf16 %v5718_v10  ;;  %5726 = vst [vmem:[#allocation2 + $0x28] sm:$0xff] %v5703_v11  }
  0x5a   :  { %6483 = vmatprep.subr.bf16.mxu0 %v668_v18  ;;  %6464 = vmatpush3.bf16.msra.mxu1 %v7850_v7  ;;  %v558_v15 = vmul.f32 %v5661_v12, %v549_v57 }
  0x5b   :  { %v559_v16 = vmul.f32 %v5662_v13, %v549_v57  ;;  %6513 = vmatprep.subr.bf16.mxu1 %v8255_v14 }
  0x5d   :  { %6484 = vmatpush3.bf16.msra.mxu0 %v668_v18  ;;  %v5698_v18 = vpack.c.bf16 %v559_v16, %v558_v15 }
  0x5e   :  { %6485 = vmatprep.subr.bf16.mxu0 %v667_v25 }
  0x5f   :  { %5725 = vst [vmem:[#allocation2 + $0x20] sm:$0xff] %v5698_v18  }
  0x60   :  { %6438 = vmatmul.mubr.bf16.gmra.mxu0 %v7830_v24  ;;  %v5693_v24 = vpack.c.bf16 %v557_v22, %v556_v21 }
  0x61   :  { %6486 = vmatpush3.bf16.msra.mxu0 %v667_v25  ;;  %6441 = vmatprep.mubr.bf16.mxu0 %v7831_v27  ;;  %v5653_v25 = vunpack.c.l.bf16 %v5716_v23 }
  0x62   :  { %6487 = vmatprep.subr.bf16.mxu0 %v666_v30  ;;  %5724 = vst [vmem:[#allocation2 + $0x18] sm:$0xff] %v5693_v24  }
  0x63   :  { %v554_v27 = vmul.f32 %v5653_v25, %v549_v57 }
  0x65   :  { %6488 = vmatpush3.bf16.msra.mxu0 %v666_v30  ;;  %v5688_v30 = vpack.c.bf16 %v555_v28, %v554_v27 }
  0x66   :  { %6489 = vmatprep.subr.bf16.mxu0 %v665_v32  ;;  %v8266_v1 = vld [vmem:[#allocation2 + $0x20] sm:$0xff]  }
  0x67   :  { %5723 = vst [vmem:[#allocation2 + $0x10] sm:$0xff] %v5688_v30  }
  0x68   :  { %6442 = vmatmul.mubr.bf16.gmra.mxu0 %v7832_v35  ;;  %v5644_v35 = vld [vmem:[#allocation9] sm:$0xff]  }
  0x69   :  { %6490 = vmatpush3.bf16.msra.mxu0 %v665_v32  ;;  %6445 = vmatprep.mubr.bf16.mxu0 %v7833_v37  ;;  %v5650_v32 = vunpack.c.h.bf16 %v5715_v29  ;;  %v5645_v37 = vunpack.c.l.bf16 %v5644_v35  ;;  %v8270_v4 = vld [vmem:[#allocation2 + $0x18] sm:$0xff]  }
  0x6a   :  { %6491 = vmatprep.subr.bf16.mxu0 %v664_v38 }
  0x6b   :  { %v553_v34 = vmul.f32 %v5650_v32, %v549_v57  ;;  %v550_v39 = vmul.f32 %v5645_v37, %v549_v57 }
  0x6d   :  { %6492 = vmatpush3.bf16.msra.mxu0 %v664_v38  ;;  %v5683_v36 = vpack.c.bf16 %v553_v34, %v552_v33  ;;  %v5646_v38 = vunpack.c.h.bf16 %v5644_v35 }
  0x6e   :  { %6493 = vmatprep.subr.bf16.mxu0 %v663_v41  ;;  %v8274_v9 = vld [vmem:[#allocation2 + $0x10] sm:$0xff]  }
  0x6f   :  { %5722 = vst [vmem:[#allocation2 + $0x8] sm:$0xff] %v5683_v36   ;;  %v551_v40 = vmul.f32 %v5646_v38, %v549_v57  ;;  %v8262_v57 = vld [vmem:[#allocation2 + $0x28] sm:$0xff]  }
  0x70   :  { %6446 = vmatmul.mubr.bf16.gmra.mxu0 %v7834_v44 }
  0x71   :  { %6494 = vmatpush3.bf16.msra.mxu0 %v663_v41  ;;  %6497 = vmatprep.mubr.bf16.mxu0 %v8203_v45  ;;  %v5678_v41 = vpack.c.bf16 %v551_v40, %v550_v39 }
  0x72   :  { %6495 = vmatprep.subr.bf16.mxu0 %v662_v46 }
  0x73   :  { %5679 = vst [vmem:[#allocation2] sm:$0xff] %v5678_v41  }
  0x75   :  { %6496 = vmatpush3.bf16.msra.mxu0 %v662_v46 }
  0x76   :  { %v8278_v12 = vld [vmem:[#allocation2 + $0x8] sm:$0xff]  }
  0x78   :  { %6498 = vmatmul.mubr.bf16.vlgmr.msra.gmra.mxu0 %v8209_v47 }
  0x79   :  { %6501 = vmatprep.mubr.bf16.mxu0 %v8214_v48 }
  0x7a   :  { %v8282_v18 = vld [vmem:[#allocation2] sm:$0xff]  }
  0x80   :  { %6502 = vmatmul.mubr.bf16.gmra.mxu0 %v8221_v49 }
  0x81   :  { %6505 = vmatprep.mubr.bf16.mxu0 %v8226_v50 }
  0x88   :  { %6506 = vmatmul.mubr.bf16.gmra.mxu0 %v8233_v51 }
  0x89   :  { %6509 = vmatprep.mubr.bf16.mxu0 %v8238_v52 }
  0x90   :  { %6510 = vmatmul.mubr.bf16.gmra.mxu0 %v8245_v53 }
  0x91   :  { %6561 = vmatprep.mubr.bf16.mxu0 %v8203_v45 }
 0x118   :  { %v6435_v42 = vpop.f32.mrf.mxu0 }
 0x11a   :  { %v252_v43 = vpop.f32.mrf.mxu0 }
 0x11c   :  { %v6436_v44 = vpop.f32.mrf.mxu0 }
 0x11d   :  { %v316_v55 = vpack.c.bf16 %v6436_v44, %v6435_v42 }
 0x11e   :  { %v255_v46 = vpop.f32.mrf.mxu0 }
 0x11f   :  { %v315_v54 = vpack.c.bf16 %v255_v46, %v252_v43 }
 0x120   :  { %v6439_v56 = vpop.f32.mrf.mxu0 }
 0x121   :  { %6465 = vmatprep.mubr.bf16.mxu1 %v315_v54 }
 0x122   :  { %v268_v59 = vpop.f32.mrf.mxu0  ;;  %6466 = vmatmul.mubr.bf16.vlgmr.msra.gmra.mxu1 %v316_v55 }
 0x123   :  { %6514 = vmatpush3.bf16.msra.mxu1 %v8255_v14 }
 0x124   :  { %v6440_v60 = vpop.f32.mrf.mxu0  ;;  %6515 = vmatprep.subr.bf16.mxu1 %v8258_v58 }
 0x125   :  { %v318_v63 = vpack.c.bf16 %v6440_v60, %v6439_v56 }
 0x126   :  { %v271_v61 = vpop.f32.mrf.mxu0 }
 0x127   :  { %v317_v62 = vpack.c.bf16 %v271_v61, %v268_v59  ;;  %6516 = vmatpush3.bf16.msra.mxu1 %v8258_v58 }
 0x128   :  { %v6443_v0 = vpop.f32.mrf.mxu0  ;;  %6517 = vmatprep.subr.bf16.mxu1 %v8262_v57 }
 0x129   :  { %6469 = vmatprep.mubr.bf16.mxu1 %v317_v62 }
 0x12a   :  { %v284_v2 = vpop.f32.mrf.mxu0  ;;  %6470 = vmatmul.mubr.bf16.gmra.mxu1 %v318_v63 }
 0x12b   :  { %6518 = vmatpush3.bf16.msra.mxu1 %v8262_v57 }
 0x12c   :  { %v6444_v3 = vpop.f32.mrf.mxu0  ;;  %6519 = vmatprep.subr.bf16.mxu1 %v8266_v1 }
 0x12d   :  { %v320_v7 = vpack.c.bf16 %v6444_v3, %v6443_v0 }
 0x12e   :  { %v287_v5 = vpop.f32.mrf.mxu0 }
 0x12f   :  { %v319_v6 = vpack.c.bf16 %v287_v5, %v284_v2  ;;  %6520 = vmatpush3.bf16.msra.mxu1 %v8266_v1 }
 0x130   :  { %v6447_v8 = vpop.f32.mrf.mxu0  ;;  %6521 = vmatprep.subr.bf16.mxu1 %v8270_v4 }
 0x131   :  { %6473 = vmatprep.mubr.bf16.mxu1 %v319_v6 }
 0x132   :  { %v300_v10 = vpop.f32.mrf.mxu0  ;;  %6474 = vmatmul.mubr.bf16.gmra.mxu1 %v320_v7 }
 0x133   :  { %6522 = vmatpush3.bf16.msra.mxu1 %v8270_v4 }
 0x134   :  { %v6448_v11 = vpop.f32.mrf.mxu0  ;;  %6523 = vmatprep.subr.bf16.mxu1 %v8274_v9 }
 0x135   :  { %v322_v16 = vpack.c.bf16 %v6448_v11, %v6447_v8 }
 0x136   :  { %v303_v13 = vpop.f32.mrf.mxu0 }
 0x137   :  { %v321_v15 = vpack.c.bf16 %v303_v13, %v300_v10  ;;  %6524 = vmatpush3.bf16.msra.mxu1 %v8274_v9 }
 0x138   :  { %v6499_v17 = vpop.f32.mrf.mxu0  ;;  %6525 = vmatprep.subr.bf16.mxu1 %v8278_v12 }
 0x139   :  { %6477 = vmatprep.mubr.bf16.mxu1 %v321_v15 }
 0x13a   :  { %6478 = vmatmul.mubr.bf16.gmra.mxu1 %v322_v16  ;;  %v768_v19 = vpop.f32.mrf.mxu0 }
 0x13b   :  { %6526 = vmatpush3.bf16.msra.mxu1 %v8278_v12 }
 0x13c   :  { %v6500_v20 = vpop.f32.mrf.mxu0  ;;  %6527 = vmatprep.subr.bf16.mxu1 %v8282_v18 }
 0x13d   :  { %v832_v23 = vpack.c.bf16 %v6500_v20, %v6499_v17 }
 0x13e   :  { %v771_v21 = vpop.f32.mrf.mxu0 }
 0x13f   :  { %v831_v22 = vpack.c.bf16 %v771_v21, %v768_v19  ;;  %6528 = vmatpush3.bf16.msra.mxu1 %v8282_v18 }
 0x140   :  { %v6503_v24 = vpop.f32.mrf.mxu0  ;;  %6577 = vmatprep.subr.bf16.mxu1 %v8255_v14 }
 0x141   :  { %6529 = vmatprep.mubr.bf16.mxu1 %v831_v22  ;;  %v484_v22 = vstv %s5562_s5 }
 0x142   :  { %v784_v25 = vpop.f32.mrf.mxu0  ;;  %6530 = vmatmul.mubr.bf16.vlgmr.msra.gmra.mxu1 %v832_v23 }
 0x143   :  { %6578 = vmatpush3.bf16.msra.mxu1 %v8255_v14 }
 0x144   :  { %v6504_v26 = vpop.f32.mrf.mxu0  ;;  %6579 = vmatprep.subr.bf16.mxu1 %v8258_v58 }
 0x145   :  { %v834_v29 = vpack.c.bf16 %v6504_v26, %v6503_v24 }
 0x146   :  { %v787_v27 = vpop.f32.mrf.mxu0 }
 0x147   :  { %v833_v28 = vpack.c.bf16 %v787_v27, %v784_v25  ;;  %6580 = vmatpush3.bf16.msra.mxu1 %v8258_v58 }
 0x148   :  { %v6507_v30 = vpop.f32.mrf.mxu0  ;;  %6581 = vmatprep.subr.bf16.mxu1 %v8262_v57 }
 0x149   :  { %6533 = vmatprep.mubr.bf16.mxu1 %v833_v28 }
 0x14a   :  { %v800_v31 = vpop.f32.mrf.mxu0  ;;  %6534 = vmatmul.mubr.bf16.gmra.mxu1 %v834_v29 }
 0x14b   :  { %6582 = vmatpush3.bf16.msra.mxu1 %v8262_v57 }
 0x14c   :  { %v6508_v32 = vpop.f32.mrf.mxu0  ;;  %6583 = vmatprep.subr.bf16.mxu1 %v8266_v1 }
 0x14d   :  { %v836_v35 = vpack.c.bf16 %v6508_v32, %v6507_v30 }
 0x14e   :  { %v803_v33 = vpop.f32.mrf.mxu0 }
 0x14f   :  { %v835_v34 = vpack.c.bf16 %v803_v33, %v800_v31  ;;  %6584 = vmatpush3.bf16.msra.mxu1 %v8266_v1 }
 0x150   :  { %v6511_v36 = vpop.f32.mrf.mxu0  ;;  %6585 = vmatprep.subr.bf16.mxu1 %v8270_v4 }
 0x151   :  { %6537 = vmatprep.mubr.bf16.mxu1 %v835_v34 }
 0x152   :  { %v816_v37 = vpop.f32.mrf.mxu0  ;;  %6538 = vmatmul.mubr.bf16.gmra.mxu1 %v836_v35 }
 0x153   :  { %6586 = vmatpush3.bf16.msra.mxu1 %v8270_v4 }
 0x154   :  { %v6512_v38 = vpop.f32.mrf.mxu0  ;;  %6587 = vmatprep.subr.bf16.mxu1 %v8274_v9 }
 0x155   :  { %v838_v41 = vpack.c.bf16 %v6512_v38, %v6511_v36 }
 0x156   :  { %v819_v39 = vpop.f32.mrf.mxu0 }
 0x157   :  { %v837_v40 = vpack.c.bf16 %v819_v39, %v816_v37  ;;  %6588 = vmatpush3.bf16.msra.mxu1 %v8274_v9 }
 0x158   :  { %6589 = vmatprep.subr.bf16.mxu1 %v8278_v12 }
 0x159   :  { %6541 = vmatprep.mubr.bf16.mxu1 %v837_v40 }
 0x15a   :  { %6542 = vmatmul.mubr.bf16.gmra.mxu1 %v838_v41 }
 0x15b   :  { %6590 = vmatpush3.bf16.msra.mxu1 %v8278_v12 }
 0x15c   :  { %6591 = vmatprep.subr.bf16.mxu1 %v8282_v18 }
 0x15f   :  { %6592 = vmatpush3.bf16.msra.mxu1 %v8282_v18 }
 0x160   :  { %6641 = vmatprep.subr.bf16.mxu1 %v8255_v14 }
 0x1e2   :  { %v8304_v42 = vpop.f32.mrf.mxu1 }
 0x1e4   :  { %v8306_v43 = vpop.f32.mrf.mxu1 }
 0x1e6   :  { %v8308_v44 = vpop.f32.mrf.mxu1 }
 0x1e8   :  { %v8310_v46 = vpop.f32.mrf.mxu1 }
 0x1ea   :  { %v6471_v54 = vpop.f32.mrf.mxu1 }
 0x1ec   :  { %v8312_v55 = vpop.f32.mrf.mxu1 }
 0x1ee   :  { %v6472_v56 = vpop.f32.mrf.mxu1 }
 0x1f0   :  { %v440_v59 = vpop.f32.mrf.mxu1 }
 0x1f2   :  { %v6475_v60 = vpop.f32.mrf.mxu1 }
 0x1f3   :  { %v8335_v34 = vmul.f32 %v6475_v60, %v484_v22 }
 0x1f4   :  { %v453_v61 = vpop.f32.mrf.mxu1 }
 0x1f6   :  { %v6476_v62 = vpop.f32.mrf.mxu1 }
 0x1f7   :  { %v8329_v30 = vmul.f32 %v6476_v62, %v484_v22 }
 0x1f8   :  { %v456_v63 = vpop.f32.mrf.mxu1 }
 0x1f9   :  { %v8339_v40 = vmul.f32 %v484_v22, %v456_v63  ;;  %v8348_v63 = vmul.f32 %v6471_v54, %v484_v22  ;;  %v8359_v54 = vmul.f32 %v8308_v44, %v484_v22 }
 0x1fa   :  { %v6479_v0 = vpop.f32.mrf.mxu1 }
 0x1fb   :  { %v8322_v24 = vmul.f32 %v6479_v0, %v484_v22 }
 0x1fc   :  { %v469_v2 = vpop.f32.mrf.mxu1 }
 0x1fd   :  { %v8324_v26 = vmul.f32 %v484_v22, %v469_v2 }
 0x1fe   :  { %v6480_v3 = vpop.f32.mrf.mxu1 }
 0x1ff   :  { %v8326_v27 = vmul.f32 %v6480_v3, %v484_v22  ;;  %v8342_v3 = vmul.f32 %v484_v22, %v453_v61  ;;  %v8351_v61 = vmul.f32 %v484_v22, %v440_v59  ;;  %v8363_v59 = vmul.f32 %v8304_v42, %v484_v22 }
 0x200   :  { %v472_v5 = vpop.f32.mrf.mxu1 }
 0x201   :  { %v8331_v31 = vmul.f32 %v484_v22, %v472_v5 }
 0x202   :  { %v8314_v6 = vpop.f32.mrf.mxu1 }
 0x203   :  { %v962_v44 = vadd.f32 %v8314_v6, %v8363_v59 }
 0x204   :  { %v8316_v7 = vpop.f32.mrf.mxu1 }
 0x206   :  { %v8318_v8 = vpop.f32.mrf.mxu1 }
 0x208   :  { %v8320_v10 = vpop.f32.mrf.mxu1 }
 0x20a   :  { %v6535_v11 = vpop.f32.mrf.mxu1 }
 0x20c   :  { %v969_v13 = vpop.f32.mrf.mxu1 }
 0x20e   :  { %v6536_v15 = vpop.f32.mrf.mxu1 }
 0x210   :  { %v972_v16 = vpop.f32.mrf.mxu1 }
 0x212   :  { %v6539_v17 = vpop.f32.mrf.mxu1 }
 0x213   :  { %v994_v41 = vadd.f32 %v6539_v17, %v8335_v34 }
 0x214   :  { %v985_v19 = vpop.f32.mrf.mxu1 }
 0x216   :  { %v6540_v20 = vpop.f32.mrf.mxu1 }
 0x217   :  { %v997_v36 = vadd.f32 %v6540_v20, %v8329_v30  ;;  %v8345_v20 = vmul.f32 %v6472_v56, %v484_v22  ;;  %v8355_v56 = vmul.f32 %v484_v22, %v8312_v55 }
 0x218   :  { %v988_v21 = vpop.f32.mrf.mxu1 }
 0x219   :  { %v1027_v5 = vmax.f32 %v997_v36, 0.0  ;;  %v989_v60 = vadd.f32 %v988_v21, %v8339_v40  ;;  %v981_v17 = vadd.f32 %v6536_v15, %v8345_v20  ;;  %v978_v21 = vadd.f32 %v6535_v11, %v8348_v63 }
 0x21a   :  { %v6543_v23 = vpop.f32.mrf.mxu1  ;;  %v965_v11 = vadd.f32 %v8318_v8, %v8359_v54  ;;  %v1018_v8 = vmax.f32 %v962_v44, 0.0 }
 0x21b   :  { %v1010_v28 = vadd.f32 %v6543_v23, %v8322_v24  ;;  %v1022_v15 = vmax.f32 %v978_v21, 0.0 }
 0x21c   :  { %v1001_v25 = vpop.f32.mrf.mxu1 }
 0x21d   :  { %v1002_v32 = vadd.f32 %v1001_v25, %v8324_v26  ;;  %v1030_v37 = vmax.f32 %v1010_v28, 0.0  ;;  %v1026_v25 = vmax.f32 %v994_v41, 0.0  ;;  %v986_v28 = vadd.f32 %v985_v19, %v8342_v3 }
 0x21e   :  { %v6544_v29 = vpop.f32.mrf.mxu1  ;;  %v973_v19 = vadd.f32 %v972_v16, %v8351_v61  ;;  %v8368_v16 = vmul.f32 %v484_v22, %v8310_v46  ;;  %v1019_v41 = vmax.f32 %v965_v11, 0.0 }
 0x21f   :  { %v1013_v33 = vadd.f32 %v6544_v29, %v8326_v27  ;;  %v1028_v62 = vmax.f32 %v1002_v32, 0.0  ;;  %v1037_v29 = vpack.c.bf16 %v1027_v5, %v1026_v25  ;;  %v1025_v32 = vmax.f32 %v989_v60, 0.0 }
 0x220   :  { %v1004_v35 = vpop.f32.mrf.mxu1  ;;  %v957_v42 = vadd.f32 %v8320_v10, %v8368_v16  ;;  %v1033_v46 = vpack.c.bf16 %v1019_v41, %v1018_v8 }
 0x221   :  { %v1031_v38 = vmax.f32 %v1013_v33, 0.0  ;;  %v1005_v39 = vadd.f32 %v1004_v35, %v8331_v31  ;;  %v1024_v33 = vmax.f32 %v986_v28, 0.0  ;;  %v1023_v35 = vmax.f32 %v981_v17, 0.0 }
 0x223   :  { %v1039_v0 = vpack.c.bf16 %v1031_v38, %v1030_v37  ;;  %v1029_v2 = vmax.f32 %v1005_v39, 0.0  ;;  %v1036_v36 = vpack.c.bf16 %v1025_v32, %v1024_v33  ;;  %v970_v37 = vadd.f32 %v969_v13, %v8355_v56 }
 0x224   :  { %v1035_v55 = vpack.c.bf16 %v1023_v35, %v1022_v15  ;;  %v1021_v38 = vmax.f32 %v973_v19, 0.0  ;;  %v8373_v13 = vmul.f32 %v484_v22, %v8306_v43 }
 0x225   :  { %6545 = vmatprep.subr.bf16.mxu0 %v1039_v0  ;;  %v1038_v23 = vpack.c.bf16 %v1029_v2, %v1028_v62  ;;  %v1020_v39 = vmax.f32 %v970_v37, 0.0  ;;  %v1017_v2 = vmax.f32 %v957_v42, 0.0 }
 0x226   :  { %6546 = vmatpush3.bf16.msra.mxu0 %v1039_v0  ;;  %v954_v0 = vadd.f32 %v8316_v7, %v8373_v13 }
 0x227   :  { %6547 = vmatprep.subr.bf16.mxu0 %v1038_v23  ;;  %v1034_v62 = vpack.c.bf16 %v1021_v38, %v1020_v39 }
 0x228   :  { %v1016_v6 = vmax.f32 %v954_v0, 0.0 }
 0x22a   :  { %6548 = vmatpush3.bf16.msra.mxu0 %v1038_v23  ;;  %v1032_v5 = vpack.c.bf16 %v1017_v2, %v1016_v6 }
 0x22b   :  { %6549 = vmatprep.subr.bf16.mxu0 %v1037_v29 }
 0x22e   :  { %6550 = vmatpush3.bf16.msra.mxu0 %v1037_v29 }
 0x22f   :  { %6551 = vmatprep.subr.bf16.mxu0 %v1036_v36 }
 0x232   :  { %6552 = vmatpush3.bf16.msra.mxu0 %v1036_v36 }
 0x233   :  { %6553 = vmatprep.subr.bf16.mxu0 %v1035_v55 }
 0x236   :  { %6554 = vmatpush3.bf16.msra.mxu0 %v1035_v55 }
 0x237   :  { %6555 = vmatprep.subr.bf16.mxu0 %v1034_v62 }
 0x23a   :  { %6556 = vmatpush3.bf16.msra.mxu0 %v1034_v62 }
 0x23b   :  { %6557 = vmatprep.subr.bf16.mxu0 %v1033_v46 }
 0x23e   :  { %6558 = vmatpush3.bf16.msra.mxu0 %v1033_v46 }
 0x23f   :  { %6559 = vmatprep.subr.bf16.mxu0 %v1032_v5 }
 0x242   :  { %6560 = vmatpush3.bf16.msra.mxu0 %v1032_v5 }
 0x245   :  { %6562 = vmatmul.mubr.bf16.vlgmr.msra.gmra.mxu0 %v8209_v47 }
 0x246   :  { %6565 = vmatprep.mubr.bf16.mxu0 %v8214_v48 }
 0x24d   :  { %6566 = vmatmul.mubr.bf16.gmra.mxu0 %v8221_v49 }
 0x24e   :  { %6569 = vmatprep.mubr.bf16.mxu0 %v8226_v50 }
 0x255   :  { %6570 = vmatmul.mubr.bf16.gmra.mxu0 %v8233_v51 }
 0x256   :  { %6573 = vmatprep.mubr.bf16.mxu0 %v8238_v52 }
 0x25d   :  { %6574 = vmatmul.mubr.bf16.gmra.mxu0 %v8245_v53 }
 0x25e   :  { %6625 = vmatprep.mubr.bf16.mxu0 %v8203_v45 }
 0x305   :  { %v6563_v43 = vpop.f32.mrf.mxu0 }
 0x307   :  { %v1074_v7 = vpop.f32.mrf.mxu0 }
 0x309   :  { %v6564_v10 = vpop.f32.mrf.mxu0 }
 0x30a   :  { %v1138_v23 = vpack.c.bf16 %v6564_v10, %v6563_v43 }
 0x30b   :  { %v1077_v22 = vpop.f32.mrf.mxu0 }
 0x30c   :  { %v1137_v60 = vpack.c.bf16 %v1077_v22, %v1074_v7 }
 0x30d   :  { %v6567_v25 = vpop.f32.mrf.mxu0 }
 0x30e   :  { %6593 = vmatprep.mubr.bf16.mxu1 %v1137_v60 }
 0x30f   :  { %v1090_v28 = vpop.f32.mrf.mxu0  ;;  %6594 = vmatmul.mubr.bf16.vlgmr.msra.gmra.mxu1 %v1138_v23 }
 0x310   :  { %6642 = vmatpush3.bf16.msra.mxu1 %v8255_v14 }
 0x311   :  { %v6568_v17 = vpop.f32.mrf.mxu0  ;;  %6643 = vmatprep.subr.bf16.mxu1 %v8258_v58 }
 0x312   :  { %v1140_v21 = vpack.c.bf16 %v6568_v17, %v6567_v25 }
 0x313   :  { %v1093_v29 = vpop.f32.mrf.mxu0 }
 0x314   :  { %v1139_v32 = vpack.c.bf16 %v1093_v29, %v1090_v28  ;;  %6644 = vmatpush3.bf16.msra.mxu1 %v8258_v58 }
 0x315   :  { %v6571_v33 = vpop.f32.mrf.mxu0  ;;  %6645 = vmatprep.subr.bf16.mxu1 %v8262_v57 }
 0x316   :  { %6597 = vmatprep.mubr.bf16.mxu1 %v1139_v32 }
 0x317   :  { %v1106_v35 = vpop.f32.mrf.mxu0  ;;  %6598 = vmatmul.mubr.bf16.gmra.mxu1 %v1140_v21 }
 0x318   :  { %6646 = vmatpush3.bf16.msra.mxu1 %v8262_v57 }
 0x319   :  { %v6572_v19 = vpop.f32.mrf.mxu0  ;;  %6647 = vmatprep.subr.bf16.mxu1 %v8266_v1 }
 0x31a   :  { %v1142_v37 = vpack.c.bf16 %v6572_v19, %v6571_v33 }
 0x31b   :  { %v1109_v36 = vpop.f32.mrf.mxu0 }
 0x31c   :  { %v1141_v15 = vpack.c.bf16 %v1109_v36, %v1106_v35  ;;  %6648 = vmatpush3.bf16.msra.mxu1 %v8266_v1 }
 0x31d   :  { %v6575_v11 = vpop.f32.mrf.mxu0  ;;  %6649 = vmatprep.subr.bf16.mxu1 %v8270_v4 }
 0x31e   :  { %6601 = vmatprep.mubr.bf16.mxu1 %v1141_v15 }
 0x31f   :  { %v1122_v55 = vpop.f32.mrf.mxu0  ;;  %6602 = vmatmul.mubr.bf16.gmra.mxu1 %v1142_v37 }
 0x320   :  { %6650 = vmatpush3.bf16.msra.mxu1 %v8270_v4 }
 0x321   :  { %v6576_v38 = vpop.f32.mrf.mxu0  ;;  %6651 = vmatprep.subr.bf16.mxu1 %v8274_v9 }
 0x322   :  { %v1144_v41 = vpack.c.bf16 %v6576_v38, %v6575_v11 }
 0x323   :  { %v1125_v44 = vpop.f32.mrf.mxu0 }
 0x324   :  { %v1143_v39 = vpack.c.bf16 %v1125_v44, %v1122_v55  ;;  %6652 = vmatpush3.bf16.msra.mxu1 %v8274_v9 }
 0x325   :  { %6653 = vmatprep.subr.bf16.mxu1 %v8278_v12 }
 0x326   :  { %6605 = vmatprep.mubr.bf16.mxu1 %v1143_v39 }
 0x327   :  { %6606 = vmatmul.mubr.bf16.gmra.mxu1 %v1144_v41 }
 0x328   :  { %6654 = vmatpush3.bf16.msra.mxu1 %v8278_v12 }
 0x329   :  { %6655 = vmatprep.subr.bf16.mxu1 %v8282_v18 }
 0x32c   :  { %6656 = vmatpush3.bf16.msra.mxu1 %v8282_v18 }
 0x32d   :  { %6705 = vmatprep.subr.bf16.mxu1 %v8255_v14 }
 0x3cf   :  { %v6595_v42 = vpop.f32.mrf.mxu1 }
 0x3d1   :  { %v1179_v62 = vpop.f32.mrf.mxu1 }
 0x3d3   :  { %v6596_v8 = vpop.f32.mrf.mxu1 }
 0x3d5   :  { %v1182_v0 = vpop.f32.mrf.mxu1 }
 0x3d7   :  { %v6599_v46 = vpop.f32.mrf.mxu1 }
 0x3d9   :  { %v1195_v2 = vpop.f32.mrf.mxu1 }
 0x3db   :  { %v6600_v6 = vpop.f32.mrf.mxu1 }
 0x3dd   :  { %v1198_v5 = vpop.f32.mrf.mxu1 }
 0x3df   :  { %v6603_v43 = vpop.f32.mrf.mxu1 }
 0x3e0   :  { %v1220_v36 = vadd.f32 %v6603_v43, %v8335_v34  ;;  %v1204_v43 = vadd.f32 %v6599_v46, %v8348_v63 }
 0x3e1   :  { %v1211_v7 = vpop.f32.mrf.mxu1 }
 0x3e2   :  { %v1252_v39 = vmax.f32 %v1220_v36, 0.0  ;;  %v1212_v41 = vadd.f32 %v1211_v7, %v8342_v3  ;;  %v1191_v7 = vadd.f32 %v6596_v8, %v8359_v54 }
 0x3e3   :  { %v6604_v10 = vpop.f32.mrf.mxu1 }
 0x3e4   :  { %v1223_v21 = vadd.f32 %v6604_v10, %v8329_v30  ;;  %v1207_v10 = vadd.f32 %v6600_v6, %v8345_v20  ;;  %v1245_v46 = vmax.f32 %v1191_v7, 0.0 }
 0x3e5   :  { %v1214_v22 = vpop.f32.mrf.mxu1 }
 0x3e6   :  { %v1253_v55 = vmax.f32 %v1223_v21, 0.0  ;;  %v1215_v38 = vadd.f32 %v1214_v22, %v8339_v40 }
 0x3e7   :  { %v6607_v60 = vpop.f32.mrf.mxu1 }
 0x3e8   :  { %v1236_v25 = vadd.f32 %v6607_v60, %v8322_v24  ;;  %v1263_v60 = vpack.c.bf16 %v1253_v55, %v1252_v39 }
 0x3e9   :  { %v1227_v23 = vpop.f32.mrf.mxu1 }
 0x3ea   :  { %v1228_v17 = vadd.f32 %v1227_v23, %v8324_v26  ;;  %v1256_v33 = vmax.f32 %v1236_v25, 0.0  ;;  %v1251_v23 = vmax.f32 %v1215_v38, 0.0  ;;  %v1250_v25 = vmax.f32 %v1212_v41, 0.0 }
 0x3eb   :  { %v6608_v28 = vpop.f32.mrf.mxu1 }
 0x3ec   :  { %v1239_v29 = vadd.f32 %v6608_v28, %v8326_v27  ;;  %v1254_v15 = vmax.f32 %v1228_v17, 0.0  ;;  %v1249_v28 = vmax.f32 %v1207_v10, 0.0  ;;  %v1199_v17 = vadd.f32 %v1198_v5, %v8351_v61 }
 0x3ed   :  { %v1230_v32 = vpop.f32.mrf.mxu1  ;;  %v1262_v22 = vpack.c.bf16 %v1251_v23, %v1250_v25 }
 0x3ee   :  { %v1257_v35 = vmax.f32 %v1239_v29, 0.0  ;;  %v1231_v19 = vadd.f32 %v1230_v32, %v8331_v31  ;;  %v1248_v29 = vmax.f32 %v1204_v43, 0.0  ;;  %v1196_v32 = vadd.f32 %v1195_v2, %v8355_v56 }
 0x3ef   :  { %v1247_v6 = vmax.f32 %v1199_v17, 0.0 }
 0x3f0   :  { %v1265_v37 = vpack.c.bf16 %v1257_v35, %v1256_v33  ;;  %v1255_v11 = vmax.f32 %v1231_v19, 0.0  ;;  %v1261_v21 = vpack.c.bf16 %v1249_v28, %v1248_v29  ;;  %v1188_v33 = vadd.f32 %v6595_v42, %v8363_v59 }
 0x3f1   :  { %v1246_v35 = vmax.f32 %v1196_v32, 0.0  ;;  %v1183_v19 = vadd.f32 %v1182_v0, %v8368_v16 }
 0x3f2   :  { %6609 = vmatprep.subr.bf16.mxu0 %v1265_v37  ;;  %v1264_v44 = vpack.c.bf16 %v1255_v11, %v1254_v15  ;;  %v1244_v5 = vmax.f32 %v1188_v33, 0.0  ;;  %v1180_v15 = vadd.f32 %v1179_v62, %v8373_v13 }
 0x3f3   :  { %6610 = vmatpush3.bf16.msra.mxu0 %v1265_v37  ;;  %v1260_v36 = vpack.c.bf16 %v1247_v6, %v1246_v35  ;;  %v1243_v37 = vmax.f32 %v1183_v19, 0.0 }
 0x3f4   :  { %6611 = vmatprep.subr.bf16.mxu0 %v1264_v44  ;;  %v1259_v2 = vpack.c.bf16 %v1245_v46, %v1244_v5  ;;  %v1242_v8 = vmax.f32 %v1180_v15, 0.0 }
 0x3f6   :  { %v1258_v11 = vpack.c.bf16 %v1243_v37, %v1242_v8 }
 0x3f7   :  { %6612 = vmatpush3.bf16.msra.mxu0 %v1264_v44 }
 0x3f8   :  { %6613 = vmatprep.subr.bf16.mxu0 %v1263_v60 }
 0x3fb   :  { %6614 = vmatpush3.bf16.msra.mxu0 %v1263_v60 }
 0x3fc   :  { %6615 = vmatprep.subr.bf16.mxu0 %v1262_v22 }
 0x3ff   :  { %6616 = vmatpush3.bf16.msra.mxu0 %v1262_v22 }
 0x400   :  { %6617 = vmatprep.subr.bf16.mxu0 %v1261_v21 }
 0x403   :  { %6618 = vmatpush3.bf16.msra.mxu0 %v1261_v21 }
 0x404   :  { %6619 = vmatprep.subr.bf16.mxu0 %v1260_v36 }
 0x407   :  { %6620 = vmatpush3.bf16.msra.mxu0 %v1260_v36 }
 0x408   :  { %6621 = vmatprep.subr.bf16.mxu0 %v1259_v2 }
 0x40b   :  { %6622 = vmatpush3.bf16.msra.mxu0 %v1259_v2 }
 0x40c   :  { %6623 = vmatprep.subr.bf16.mxu0 %v1258_v11 }
 0x40f   :  { %6624 = vmatpush3.bf16.msra.mxu0 %v1258_v11 }
 0x412   :  { %6626 = vmatmul.mubr.bf16.vlgmr.msra.gmra.mxu0 %v8209_v47 }
 0x413   :  { %6629 = vmatprep.mubr.bf16.mxu0 %v8214_v48 }
 0x41a   :  { %6630 = vmatmul.mubr.bf16.gmra.mxu0 %v8221_v49 }
 0x41b   :  { %6633 = vmatprep.mubr.bf16.mxu0 %v8226_v50 }
 0x422   :  { %6634 = vmatmul.mubr.bf16.gmra.mxu0 %v8233_v51 }
 0x423   :  { %6637 = vmatprep.mubr.bf16.mxu0 %v8238_v52 }
 0x42a   :  { %6638 = vmatmul.mubr.bf16.gmra.mxu0 %v8245_v53 }
 0x42b   :  { %6689 = vmatprep.mubr.bf16.mxu0 %v8203_v45 }
 0x4d2   :  { %v6627_v42 = vpop.f32.mrf.mxu0 }
 0x4d4   :  { %v1300_v62 = vpop.f32.mrf.mxu0 }
 0x4d6   :  { %v6628_v0 = vpop.f32.mrf.mxu0 }
 0x4d7   :  { %v1364_v47 = vpack.c.bf16 %v6628_v0, %v6627_v42 }
 0x4d8   :  { %v1303_v55 = vpop.f32.mrf.mxu0 }
 0x4d9   :  { %v1363_v38 = vpack.c.bf16 %v1303_v55, %v1300_v62 }
 0x4da   :  { %v6631_v44 = vpop.f32.mrf.mxu0 }
 0x4db   :  { %6657 = vmatprep.mubr.bf16.mxu1 %v1363_v38 }
 0x4dc   :  { %v1316_v48 = vpop.f32.mrf.mxu0  ;;  %6658 = vmatmul.mubr.bf16.vlgmr.msra.gmra.mxu1 %v1364_v47 }
 0x4dd   :  { %6706 = vmatpush3.bf16.msra.mxu1 %v8255_v14 }
 0x4de   :  { %v6632_v49 = vpop.f32.mrf.mxu0  ;;  %6707 = vmatprep.subr.bf16.mxu1 %v8258_v58 }
 0x4df   :  { %v1366_v45 = vpack.c.bf16 %v6632_v49, %v6631_v44 }
 0x4e0   :  { %v1319_v50 = vpop.f32.mrf.mxu0 }
 0x4e1   :  { %v1365_v51 = vpack.c.bf16 %v1319_v50, %v1316_v48  ;;  %6708 = vmatpush3.bf16.msra.mxu1 %v8258_v58 }
 0x4e2   :  { %v6635_v52 = vpop.f32.mrf.mxu0  ;;  %6709 = vmatprep.subr.bf16.mxu1 %v8262_v57 }
 0x4e3   :  { %6661 = vmatprep.mubr.bf16.mxu1 %v1365_v51 }
 0x4e4   :  { %v1332_v53 = vpop.f32.mrf.mxu0  ;;  %6662 = vmatmul.mubr.bf16.gmra.mxu1 %v1366_v45 }
 0x4e5   :  { %6710 = vmatpush3.bf16.msra.mxu1 %v8262_v57 }
 0x4e6   :  { %v6636_v39 = vpop.f32.mrf.mxu0  ;;  %6711 = vmatprep.subr.bf16.mxu1 %v8266_v1 }
 0x4e7   :  { %v1368_v60 = vpack.c.bf16 %v6636_v39, %v6635_v52 }
 0x4e8   :  { %v1335_v41 = vpop.f32.mrf.mxu0 }
 0x4e9   :  { %v1367_v10 = vpack.c.bf16 %v1335_v41, %v1332_v53  ;;  %6712 = vmatpush3.bf16.msra.mxu1 %v8266_v1 }
 0x4ea   :  { %v6639_v23 = vpop.f32.mrf.mxu0  ;;  %6713 = vmatprep.subr.bf16.mxu1 %v8270_v4 }
 0x4eb   :  { %6665 = vmatprep.mubr.bf16.mxu1 %v1367_v10 }
 0x4ec   :  { %v1348_v43 = vpop.f32.mrf.mxu0  ;;  %6666 = vmatmul.mubr.bf16.gmra.mxu1 %v1368_v60 }
 0x4ed   :  { %6714 = vmatpush3.bf16.msra.mxu1 %v8270_v4 }
 0x4ee   :  { %v6640_v25 = vpop.f32.mrf.mxu0  ;;  %6715 = vmatprep.subr.bf16.mxu1 %v8274_v9 }
 0x4ef   :  { %v1370_v22 = vpack.c.bf16 %v6640_v25, %v6639_v23 }
 0x4f0   :  { %v1351_v28 = vpop.f32.mrf.mxu0 }
 0x4f1   :  { %v1369_v17 = vpack.c.bf16 %v1351_v28, %v1348_v43  ;;  %6716 = vmatpush3.bf16.msra.mxu1 %v8274_v9 }
 0x4f2   :  { %6717 = vmatprep.subr.bf16.mxu1 %v8278_v12 }
 0x4f3   :  { %6669 = vmatprep.mubr.bf16.mxu1 %v1369_v17 }
 0x4f4   :  { %6670 = vmatmul.mubr.bf16.gmra.mxu1 %v1370_v22 }
 0x4f5   :  { %6718 = vmatpush3.bf16.msra.mxu1 %v8278_v12 }
 0x4f6   :  { %6719 = vmatprep.subr.bf16.mxu1 %v8282_v18 }
 0x4f9   :  { %6720 = vmatpush3.bf16.msra.mxu1 %v8282_v18 }
 0x4fa   :  { %6769 = vmatprep.subr.bf16.mxu1 %v8255_v14 }
 0x59c   :  { %v6659_v29 = vpop.f32.mrf.mxu1 }
 0x59e   :  { %v1405_v32 = vpop.f32.mrf.mxu1 }
 0x5a0   :  { %v6660_v7 = vpop.f32.mrf.mxu1 }
 0x5a2   :  { %v1408_v21 = vpop.f32.mrf.mxu1 }
 0x5a4   :  { %v6663_v6 = vpop.f32.mrf.mxu1 }
 0x5a5   :  { %v1430_v23 = vadd.f32 %v6663_v6, %v8348_v63 }
 0x5a6   :  { %v1421_v33 = vpop.f32.mrf.mxu1 }
 0x5a7   :  { %v1474_v22 = vmax.f32 %v1430_v23, 0.0 }
 0x5a8   :  { %v6664_v35 = vpop.f32.mrf.mxu1 }
 0x5a9   :  { %v1433_v41 = vadd.f32 %v6664_v35, %v8345_v20 }
 0x5aa   :  { %v1424_v46 = vpop.f32.mrf.mxu1 }
 0x5ab   :  { %v1475_v25 = vmax.f32 %v1433_v41, 0.0  ;;  %v1425_v28 = vadd.f32 %v1424_v46, %v8351_v61 }
 0x5ac   :  { %v6667_v19 = vpop.f32.mrf.mxu1 }
 0x5ad   :  { %v1446_v44 = vadd.f32 %v6667_v19, %v8335_v34  ;;  %v1422_v19 = vadd.f32 %v1421_v33, %v8355_v56  ;;  %v1473_v35 = vmax.f32 %v1425_v28, 0.0 }
 0x5ae   :  { %v1437_v36 = vpop.f32.mrf.mxu1 }
 0x5af   :  { %v1478_v53 = vmax.f32 %v1446_v44, 0.0  ;;  %v1438_v39 = vadd.f32 %v1437_v36, %v8342_v3  ;;  %v1417_v36 = vadd.f32 %v6660_v7, %v8359_v54 }
 0x5b0   :  { %v6668_v5 = vpop.f32.mrf.mxu1 }
 0x5b1   :  { %v1449_v0 = vadd.f32 %v6668_v5, %v8329_v30  ;;  %v1476_v43 = vmax.f32 %v1438_v39, 0.0  ;;  %v1487_v5 = vpack.c.bf16 %v1475_v25, %v1474_v22  ;;  %v1471_v6 = vmax.f32 %v1417_v36, 0.0  ;;  %v8507_v39 = vld [vmem:[#allocation2 + $0x38] sm:$0xff]  }
 0x5b2   :  { %v1440_v15 = vpop.f32.mrf.mxu1 }
 0x5b3   :  { %v1479_v51 = vmax.f32 %v1449_v0, 0.0  ;;  %v1441_v45 = vadd.f32 %v1440_v15, %v8339_v40  ;;  %v1414_v15 = vadd.f32 %v6659_v29, %v8363_v59  ;;  %v8462_v29 = vld [vmem:[%s9359_s2 + $0x8] sm:$0xff]  }
 0x5b4   :  { %v6671_v2 = vpop.f32.mrf.mxu1  ;;  %v8486_v0 = vld [vmem:[%s9359_s2 + $0x28] sm:$0xff]  }
 0x5b5   :  { %v1462_v8 = vadd.f32 %v6671_v2, %v8322_v24  ;;  %v1489_v10 = vpack.c.bf16 %v1479_v51, %v1478_v53  ;;  %v1477_v60 = vmax.f32 %v1441_v45, 0.0  ;;  %v1472_v2 = vmax.f32 %v1422_v19, 0.0 }
 0x5b6   :  { %v1453_v37 = vpop.f32.mrf.mxu1  ;;  %v1470_v46 = vmax.f32 %v1414_v15, 0.0 }
 0x5b7   :  { %v1454_v42 = vadd.f32 %v1453_v37, %v8324_v26  ;;  %v1482_v55 = vmax.f32 %v1462_v8, 0.0  ;;  %v1488_v17 = vpack.c.bf16 %v1477_v60, %v1476_v43  ;;  %v1409_v37 = vadd.f32 %v1408_v21, %v8368_v16  ;;  %v8474_v21 = vld [vmem:[%s9359_s2 + $0x18] sm:$0xff]  }
 0x5b8   :  { %v6672_v11 = vpop.f32.mrf.mxu1  ;;  %v1486_v8 = vpack.c.bf16 %v1473_v35, %v1472_v2  ;;  %v1485_v33 = vpack.c.bf16 %v1471_v6, %v1470_v46 }
 0x5b9   :  { %v1465_v14 = vadd.f32 %v6672_v11, %v8326_v27  ;;  %v1480_v48 = vmax.f32 %v1454_v42, 0.0  ;;  %v1406_v11 = vadd.f32 %v1405_v32, %v8373_v13  ;;  %v1469_v42 = vmax.f32 %v1409_v37, 0.0  ;;  %v8468_v32 = vld [vmem:[%s9359_s2 + $0x10] sm:$0xff]  }
 0x5ba   :  { %v1456_v62 = vpop.f32.mrf.mxu1 }
 0x5bb   :  { %v1483_v38 = vmax.f32 %v1465_v14, 0.0  ;;  %v1457_v47 = vadd.f32 %v1456_v62, %v8331_v31  ;;  %v1468_v7 = vmax.f32 %v1406_v11, 0.0  ;;  %v8480_v62 = vld [vmem:[%s9359_s2 + $0x20] sm:$0xff]  }
 0x5bd   :  { %v1491_v49 = vpack.c.bf16 %v1483_v38, %v1482_v55  ;;  %v1481_v50 = vmax.f32 %v1457_v47, 0.0  ;;  %v1484_v14 = vpack.c.bf16 %v1469_v42, %v1468_v7  ;;  %v8492_v55 = vld [vmem:[%s9359_s2 + $0x30] sm:$0xff]   ;;  %v8498_v38 = vld [vmem:[%s9359_s2 + $0x38] sm:$0xff]   ;;  %v8504_v47 = vld [vmem:[%s9359_s2] sm:$0xff]  }
 0x5bf   :  { %6673 = vmatprep.subr.bf16.mxu0 %v1491_v49  ;;  %v1490_v52 = vpack.c.bf16 %v1481_v50, %v1480_v48 }
 0x5c0   :  { %6674 = vmatpush3.bf16.msra.mxu0 %v1491_v49 }
 0x5c1   :  { %6675 = vmatprep.subr.bf16.mxu0 %v1490_v52 }
 0x5c4   :  { %6676 = vmatpush3.bf16.msra.mxu0 %v1490_v52 }
 0x5c5   :  { %6677 = vmatprep.subr.bf16.mxu0 %v1489_v10 }
 0x5c8   :  { %6678 = vmatpush3.bf16.msra.mxu0 %v1489_v10 }
 0x5c9   :  { %6679 = vmatprep.subr.bf16.mxu0 %v1488_v17 }
 0x5cc   :  { %6680 = vmatpush3.bf16.msra.mxu0 %v1488_v17 }
 0x5cd   :  { %6681 = vmatprep.subr.bf16.mxu0 %v1487_v5 }
 0x5d0   :  { %6682 = vmatpush3.bf16.msra.mxu0 %v1487_v5 }
 0x5d1   :  { %6683 = vmatprep.subr.bf16.mxu0 %v1486_v8 }
 0x5d4   :  { %6684 = vmatpush3.bf16.msra.mxu0 %v1486_v8 }
 0x5d5   :  { %6685 = vmatprep.subr.bf16.mxu0 %v1485_v33 }
 0x5d8   :  { %6686 = vmatpush3.bf16.msra.mxu0 %v1485_v33 }
 0x5d9   :  { %6687 = vmatprep.subr.bf16.mxu0 %v1484_v14 }
 0x5dc   :  { %6688 = vmatpush3.bf16.msra.mxu0 %v1484_v14 }
 0x5df   :  { %6690 = vmatmul.mubr.bf16.vlgmr.msra.gmra.mxu0 %v8462_v29 }
 0x5e0   :  { %6693 = vmatprep.mubr.bf16.mxu0 %v8468_v32 }
 0x5e7   :  { %6694 = vmatmul.mubr.bf16.gmra.mxu0 %v8474_v21 }
 0x5e8   :  { %6697 = vmatprep.mubr.bf16.mxu0 %v8480_v62 }
 0x5ef   :  { %6698 = vmatmul.mubr.bf16.gmra.mxu0 %v8486_v0 }
 0x5f0   :  { %6701 = vmatprep.mubr.bf16.mxu0 %v8492_v55 }
 0x5f7   :  { %6702 = vmatmul.mubr.bf16.gmra.mxu0 %v8498_v38 }
 0x5f8   :  { %6753 = vmatprep.mubr.bf16.mxu0 %v8504_v47 }
 0x69f   :  { %v6691_v44 = vpop.f32.mrf.mxu0 }
 0x6a1   :  { %v1526_v48 = vpop.f32.mrf.mxu0 }
 0x6a3   :  { %v6692_v49 = vpop.f32.mrf.mxu0 }
 0x6a4   :  { %v1590_v45 = vpack.c.bf16 %v6692_v49, %v6691_v44 }
 0x6a5   :  { %v1529_v50 = vpop.f32.mrf.mxu0 }
 0x6a6   :  { %v1589_v51 = vpack.c.bf16 %v1529_v50, %v1526_v48 }
 0x6a7   :  { %v6695_v52 = vpop.f32.mrf.mxu0 }
 0x6a8   :  { %6721 = vmatprep.mubr.bf16.mxu1 %v1589_v51 }
 0x6a9   :  { %v1542_v53 = vpop.f32.mrf.mxu0  ;;  %6722 = vmatmul.mubr.bf16.vlgmr.msra.gmra.mxu1 %v1590_v45 }
 0x6aa   :  { %6770 = vmatpush3.bf16.msra.mxu1 %v8507_v39 }
 0x6ab   :  { %v6696_v41 = vpop.f32.mrf.mxu0  ;;  %6771 = vmatprep.subr.bf16.mxu1 %v8258_v58 }
 0x6ac   :  { %v1592_v23 = vpack.c.bf16 %v6696_v41, %v6695_v52 }
 0x6ad   :  { %v1545_v10 = vpop.f32.mrf.mxu0 }
 0x6ae   :  { %v1591_v60 = vpack.c.bf16 %v1545_v10, %v1542_v53  ;;  %6772 = vmatpush3.bf16.msra.mxu1 %v8258_v58 }
 0x6af   :  { %v6699_v43 = vpop.f32.mrf.mxu0  ;;  %6773 = vmatprep.subr.bf16.mxu1 %v8262_v57 }
 0x6b0   :  { %6725 = vmatprep.mubr.bf16.mxu1 %v1591_v60 }
 0x6b1   :  { %v1558_v25 = vpop.f32.mrf.mxu0  ;;  %6726 = vmatmul.mubr.bf16.gmra.mxu1 %v1592_v23 }
 0x6b2   :  { %6774 = vmatpush3.bf16.msra.mxu1 %v8262_v57 }
 0x6b3   :  { %v6700_v28 = vpop.f32.mrf.mxu0  ;;  %6775 = vmatprep.subr.bf16.mxu1 %v8266_v1 }
 0x6b4   :  { %v1594_v19 = vpack.c.bf16 %v6700_v28, %v6699_v43 }
 0x6b5   :  { %v1561_v17 = vpop.f32.mrf.mxu0 }
 0x6b6   :  { %v1593_v22 = vpack.c.bf16 %v1561_v17, %v1558_v25  ;;  %6776 = vmatpush3.bf16.msra.mxu1 %v8266_v1 }
 0x6b7   :  { %v6703_v36 = vpop.f32.mrf.mxu0  ;;  %6777 = vmatprep.subr.bf16.mxu1 %v8270_v4 }
 0x6b8   :  { %6729 = vmatprep.mubr.bf16.mxu1 %v1593_v22 }
 0x6b9   :  { %v1574_v58 = vpop.f32.mrf.mxu0  ;;  %6730 = vmatmul.mubr.bf16.gmra.mxu1 %v1594_v19 }
 0x6ba   :  { %6778 = vmatpush3.bf16.msra.mxu1 %v8270_v4 }
 0x6bb   :  { %v6704_v5 = vpop.f32.mrf.mxu0  ;;  %6779 = vmatprep.subr.bf16.mxu1 %v8274_v9 }
 0x6bc   :  { %v1596_v15 = vpack.c.bf16 %v6704_v5, %v6703_v36 }
 0x6bd   :  { %v1577_v57 = vpop.f32.mrf.mxu0 }
 0x6be   :  { %v1595_v35 = vpack.c.bf16 %v1577_v57, %v1574_v58  ;;  %6780 = vmatpush3.bf16.msra.mxu1 %v8274_v9 }
 0x6bf   :  { %6781 = vmatprep.subr.bf16.mxu1 %v8278_v12 }
 0x6c0   :  { %6733 = vmatprep.mubr.bf16.mxu1 %v1595_v35 }
 0x6c1   :  { %6734 = vmatmul.mubr.bf16.gmra.mxu1 %v1596_v15 }
 0x6c2   :  { %6782 = vmatpush3.bf16.msra.mxu1 %v8278_v12 }
 0x6c3   :  { %6783 = vmatprep.subr.bf16.mxu1 %v8282_v18 }
 0x6c6   :  { %6784 = vmatpush3.bf16.msra.mxu1 %v8282_v18 }
 0x6c7   :  { %6833 = vmatprep.subr.bf16.mxu1 %v8507_v39 }
 0x769   :  { %v6723_v1 = vpop.f32.mrf.mxu1 }
 0x76b   :  { %v1631_v4 = vpop.f32.mrf.mxu1 }
 0x76d   :  { %v6724_v2 = vpop.f32.mrf.mxu1 }
 0x76f   :  { %v1634_v6 = vpop.f32.mrf.mxu1 }
 0x771   :  { %v6727_v37 = vpop.f32.mrf.mxu1 }
 0x772   :  { %v1656_v5 = vadd.f32 %v6727_v37, %v8348_v63 }
 0x773   :  { %v1647_v8 = vpop.f32.mrf.mxu1 }
 0x775   :  { %v6728_v9 = vpop.f32.mrf.mxu1 }
 0x776   :  { %v1659_v19 = vadd.f32 %v6728_v9, %v8345_v20 }
 0x777   :  { %v1650_v46 = vpop.f32.mrf.mxu1 }
 0x778   :  { %v1701_v35 = vmax.f32 %v1659_v19, 0.0  ;;  %v1651_v15 = vadd.f32 %v1650_v46, %v8351_v61 }
 0x779   :  { %v6731_v11 = vpop.f32.mrf.mxu1 }
 0x77a   :  { %v1672_v41 = vadd.f32 %v6731_v11, %v8335_v34  ;;  %v1699_v9 = vmax.f32 %v1651_v15, 0.0 }
 0x77b   :  { %v1663_v33 = vpop.f32.mrf.mxu1 }
 0x77c   :  { %v1704_v17 = vmax.f32 %v1672_v41, 0.0  ;;  %v1664_v22 = vadd.f32 %v1663_v33, %v8342_v3  ;;  %v1643_v33 = vadd.f32 %v6724_v2, %v8359_v54 }
 0x77d   :  { %v6732_v42 = vpop.f32.mrf.mxu1 }
 0x77e   :  { %v1675_v51 = vadd.f32 %v6732_v42, %v8329_v30  ;;  %v1702_v57 = vmax.f32 %v1664_v22, 0.0  ;;  %v1700_v42 = vmax.f32 %v1656_v5, 0.0  ;;  %v1697_v37 = vmax.f32 %v1643_v33, 0.0  ;;  %v8554_v22 = vld [vmem:[#allocation2 + $0x28] sm:$0xff]   ;;  %v8566_v33 = vld [vmem:[#allocation2 + $0x10] sm:$0xff]  }
 0x77f   :  { %v1666_v7 = vpop.f32.mrf.mxu1 }
 0x780   :  { %v1705_v43 = vmax.f32 %v1675_v51, 0.0  ;;  %v1667_v25 = vadd.f32 %v1666_v7, %v8339_v40  ;;  %v1648_v7 = vadd.f32 %v1647_v8, %v8355_v56 }
 0x781   :  { %v6735_v14 = vpop.f32.mrf.mxu1 }
 0x782   :  { %v1688_v44 = vadd.f32 %v6735_v14, %v8322_v24  ;;  %v1715_v36 = vpack.c.bf16 %v1705_v43, %v1704_v17  ;;  %v1703_v58 = vmax.f32 %v1667_v25, 0.0  ;;  %v1713_v14 = vpack.c.bf16 %v1701_v35, %v1700_v42 }
 0x783   :  { %v1679_v12 = vpop.f32.mrf.mxu1 }
 0x784   :  { %v1680_v18 = vadd.f32 %v1679_v12, %v8324_v26  ;;  %v1708_v45 = vmax.f32 %v1688_v44, 0.0  ;;  %v1714_v11 = vpack.c.bf16 %v1703_v58, %v1702_v57  ;;  %v1640_v12 = vadd.f32 %v6723_v1, %v8363_v59  ;;  %v8558_v58 = vld [vmem:[#allocation2 + $0x20] sm:$0xff]  }
 0x785   :  { %v6736_v48 = vpop.f32.mrf.mxu1  ;;  %v1698_v44 = vmax.f32 %v1648_v7, 0.0 }
 0x786   :  { %v1691_v49 = vadd.f32 %v6736_v48, %v8326_v27  ;;  %v1706_v10 = vmax.f32 %v1680_v18, 0.0  ;;  %v1635_v48 = vadd.f32 %v1634_v6, %v8368_v16  ;;  %v1696_v46 = vmax.f32 %v1640_v12, 0.0 }
 0x787   :  { %v1682_v50 = vpop.f32.mrf.mxu1  ;;  %v1712_v18 = vpack.c.bf16 %v1699_v9, %v1698_v44  ;;  %v8570_v44 = vld [vmem:[#allocation2 + $0x8] sm:$0xff]  }
 0x788   :  { %v1709_v52 = vmax.f32 %v1691_v49, 0.0  ;;  %v1683_v53 = vadd.f32 %v1682_v50, %v8331_v31  ;;  %v1632_v49 = vadd.f32 %v1631_v4, %v8373_v13  ;;  %v1711_v8 = vpack.c.bf16 %v1697_v37, %v1696_v46  ;;  %v8574_v37 = vld [vmem:[#allocation2] sm:$0xff]  }
 0x789   :  { %v1695_v50 = vmax.f32 %v1635_v48, 0.0 }
 0x78a   :  { %v1717_v60 = vpack.c.bf16 %v1709_v52, %v1708_v45  ;;  %v1707_v23 = vmax.f32 %v1683_v53, 0.0  ;;  %v1694_v2 = vmax.f32 %v1632_v49, 0.0 }
 0x78c   :  { %6737 = vmatprep.subr.bf16.mxu0 %v1717_v60  ;;  %v1716_v28 = vpack.c.bf16 %v1707_v23, %v1706_v10  ;;  %v1710_v51 = vpack.c.bf16 %v1695_v50, %v1694_v2  ;;  %v8550_v23 = vld [vmem:[#allocation2 + $0x30] sm:$0xff]  }
 0x78d   :  { %6738 = vmatpush3.bf16.msra.mxu0 %v1717_v60 }
 0x78e   :  { %6739 = vmatprep.subr.bf16.mxu0 %v1716_v28 }
 0x791   :  { %6740 = vmatpush3.bf16.msra.mxu0 %v1716_v28 }
 0x792   :  { %6741 = vmatprep.subr.bf16.mxu0 %v1715_v36 }
 0x795   :  { %6742 = vmatpush3.bf16.msra.mxu0 %v1715_v36 }
 0x796   :  { %6743 = vmatprep.subr.bf16.mxu0 %v1714_v11 }
 0x799   :  { %6744 = vmatpush3.bf16.msra.mxu0 %v1714_v11  ;;  %v8562_v11 = vld [vmem:[#allocation2 + $0x18] sm:$0xff]  }
 0x79a   :  { %6745 = vmatprep.subr.bf16.mxu0 %v1713_v14 }
 0x79d   :  { %6746 = vmatpush3.bf16.msra.mxu0 %v1713_v14 }
 0x79e   :  { %6747 = vmatprep.subr.bf16.mxu0 %v1712_v18 }
 0x7a1   :  { %6748 = vmatpush3.bf16.msra.mxu0 %v1712_v18 }
 0x7a2   :  { %6749 = vmatprep.subr.bf16.mxu0 %v1711_v8 }
 0x7a5   :  { %6750 = vmatpush3.bf16.msra.mxu0 %v1711_v8 }
 0x7a6   :  { %6751 = vmatprep.subr.bf16.mxu0 %v1710_v51 }
 0x7a9   :  { %6752 = vmatpush3.bf16.msra.mxu0 %v1710_v51 }
 0x7ac   :  { %6754 = vmatmul.mubr.bf16.vlgmr.msra.gmra.mxu0 %v8462_v29 }
 0x7ad   :  { %6757 = vmatprep.mubr.bf16.mxu0 %v8468_v32 }
 0x7b4   :  { %6758 = vmatmul.mubr.bf16.gmra.mxu0 %v8474_v21 }
 0x7b5   :  { %6761 = vmatprep.mubr.bf16.mxu0 %v8480_v62 }
 0x7bc   :  { %6762 = vmatmul.mubr.bf16.gmra.mxu0 %v8486_v0 }
 0x7bd   :  { %6765 = vmatprep.mubr.bf16.mxu0 %v8492_v55 }
 0x7c4   :  { %6766 = vmatmul.mubr.bf16.gmra.mxu0 %v8498_v38 }
 0x7c5   :  { %6817 = vmatprep.mubr.bf16.mxu0 %v8504_v47 }
 0x86c   :  { %v6755_v1 = vpop.f32.mrf.mxu0 }
 0x86e   :  { %v1752_v4 = vpop.f32.mrf.mxu0 }
 0x870   :  { %v6756_v6 = vpop.f32.mrf.mxu0 }
 0x871   :  { %v1816_v53 = vpack.c.bf16 %v6756_v6, %v6755_v1 }
 0x872   :  { %v1755_v45 = vpop.f32.mrf.mxu0 }
 0x873   :  { %v1815_v52 = vpack.c.bf16 %v1755_v45, %v1752_v4 }
 0x874   :  { %v6759_v41 = vpop.f32.mrf.mxu0 }
 0x875   :  { %6785 = vmatprep.mubr.bf16.mxu1 %v1815_v52 }
 0x876   :  { %v1768_v10 = vpop.f32.mrf.mxu0  ;;  %6786 = vmatmul.mubr.bf16.vlgmr.msra.gmra.mxu1 %v1816_v53 }
 0x877   :  { %6834 = vmatpush3.bf16.msra.mxu1 %v8507_v39 }
 0x878   :  { %v6760_v60 = vpop.f32.mrf.mxu0  ;;  %6835 = vmatprep.subr.bf16.mxu1 %v8550_v23 }
 0x879   :  { %v1818_v28 = vpack.c.bf16 %v6760_v60, %v6759_v41 }
 0x87a   :  { %v1771_v43 = vpop.f32.mrf.mxu0 }
 0x87b   :  { %v1817_v25 = vpack.c.bf16 %v1771_v43, %v1768_v10  ;;  %6836 = vmatpush3.bf16.msra.mxu1 %v8550_v23 }
 0x87c   :  { %v6763_v17 = vpop.f32.mrf.mxu0  ;;  %6837 = vmatprep.subr.bf16.mxu1 %v8554_v22 }
 0x87d   :  { %6789 = vmatprep.mubr.bf16.mxu1 %v1817_v25 }
 0x87e   :  { %v1784_v19 = vpop.f32.mrf.mxu0  ;;  %6790 = vmatmul.mubr.bf16.gmra.mxu1 %v1818_v28 }
 0x87f   :  { %6838 = vmatpush3.bf16.msra.mxu1 %v8554_v22 }
 0x880   :  { %v6764_v36 = vpop.f32.mrf.mxu0  ;;  %6839 = vmatprep.subr.bf16.mxu1 %v8558_v58 }
 0x881   :  { %v1820_v35 = vpack.c.bf16 %v6764_v36, %v6763_v17 }
 0x882   :  { %v1787_v5 = vpop.f32.mrf.mxu0 }
 0x883   :  { %v1819_v57 = vpack.c.bf16 %v1787_v5, %v1784_v19  ;;  %6840 = vmatpush3.bf16.msra.mxu1 %v8558_v58 }
 0x884   :  { %v6767_v15 = vpop.f32.mrf.mxu0  ;;  %6841 = vmatprep.subr.bf16.mxu1 %v8562_v11 }
 0x885   :  { %6793 = vmatprep.mubr.bf16.mxu1 %v1819_v57 }
 0x886   :  { %v1800_v42 = vpop.f32.mrf.mxu0  ;;  %6794 = vmatmul.mubr.bf16.gmra.mxu1 %v1820_v35 }
 0x887   :  { %6842 = vmatpush3.bf16.msra.mxu1 %v8562_v11 }
 0x888   :  { %v6768_v7 = vpop.f32.mrf.mxu0  ;;  %6843 = vmatprep.subr.bf16.mxu1 %v8566_v33 }
 0x889   :  { %v1822_v12 = vpack.c.bf16 %v6768_v7, %v6767_v15 }
 0x88a   :  { %v1803_v14 = vpop.f32.mrf.mxu0 }
 0x88b   :  { %v1821_v9 = vpack.c.bf16 %v1803_v14, %v1800_v42  ;;  %6844 = vmatpush3.bf16.msra.mxu1 %v8566_v33 }
 0x88c   :  { %6845 = vmatprep.subr.bf16.mxu1 %v8570_v44 }
 0x88d   :  { %6797 = vmatprep.mubr.bf16.mxu1 %v1821_v9 }
 0x88e   :  { %6798 = vmatmul.mubr.bf16.gmra.mxu1 %v1822_v12 }
 0x88f   :  { %6846 = vmatpush3.bf16.msra.mxu1 %v8570_v44 }
 0x890   :  { %6847 = vmatprep.subr.bf16.mxu1 %v8574_v37 }
 0x893   :  { %6848 = vmatpush3.bf16.msra.mxu1 %v8574_v37 }
 0x894   :  { %6897 = vmatprep.subr.bf16.mxu1 %v8507_v39 }
 0x936   :  { %v6787_v48 = vpop.f32.mrf.mxu1 }
 0x938   :  { %v1857_v18 = vpop.f32.mrf.mxu1 }
 0x93a   :  { %v6788_v46 = vpop.f32.mrf.mxu1 }
 0x93c   :  { %v1860_v49 = vpop.f32.mrf.mxu1 }
 0x93e   :  { %v6791_v8 = vpop.f32.mrf.mxu1 }
 0x940   :  { %v1873_v50 = vpop.f32.mrf.mxu1 }
 0x942   :  { %v6792_v2 = vpop.f32.mrf.mxu1 }
 0x944   :  { %v1876_v51 = vpop.f32.mrf.mxu1 }
 0x946   :  { %v6795_v1 = vpop.f32.mrf.mxu1 }
 0x947   :  { %v1898_v5 = vadd.f32 %v6795_v1, %v8335_v34  ;;  %v1882_v1 = vadd.f32 %v6791_v8, %v8348_v63 }
 0x948   :  { %v1889_v4 = vpop.f32.mrf.mxu1 }
 0x949   :  { %v1930_v9 = vmax.f32 %v1898_v5, 0.0  ;;  %v1890_v12 = vadd.f32 %v1889_v4, %v8342_v3  ;;  %v1869_v4 = vadd.f32 %v6788_v46, %v8359_v54 }
 0x94a   :  { %v6796_v6 = vpop.f32.mrf.mxu1 }
 0x94b   :  { %v1901_v28 = vadd.f32 %v6796_v6, %v8329_v30  ;;  %v1885_v6 = vadd.f32 %v6792_v2, %v8345_v20  ;;  %v1923_v8 = vmax.f32 %v1869_v4, 0.0 }
 0x94c   :  { %v1892_v45 = vpop.f32.mrf.mxu1 }
 0x94d   :  { %v1931_v42 = vmax.f32 %v1901_v28, 0.0  ;;  %v1893_v7 = vadd.f32 %v1892_v45, %v8339_v40 }
 0x94e   :  { %v6799_v52 = vpop.f32.mrf.mxu1 }
 0x94f   :  { %v1914_v41 = vadd.f32 %v6799_v52, %v8322_v24  ;;  %v1941_v52 = vpack.c.bf16 %v1931_v42, %v1930_v9 }
 0x950   :  { %v1905_v53 = vpop.f32.mrf.mxu1 }
 0x951   :  { %v1906_v60 = vadd.f32 %v1905_v53, %v8324_v26  ;;  %v1934_v17 = vmax.f32 %v1914_v41, 0.0  ;;  %v1929_v53 = vmax.f32 %v1893_v7, 0.0  ;;  %v1928_v41 = vmax.f32 %v1890_v12, 0.0 }
 0x952   :  { %v6800_v10 = vpop.f32.mrf.mxu1 }
 0x953   :  { %v1917_v43 = vadd.f32 %v6800_v10, %v8326_v27  ;;  %v1932_v57 = vmax.f32 %v1906_v60, 0.0  ;;  %v1927_v10 = vmax.f32 %v1885_v6, 0.0  ;;  %v1877_v60 = vadd.f32 %v1876_v51, %v8351_v61 }
 0x954   :  { %v1908_v25 = vpop.f32.mrf.mxu1  ;;  %v1940_v45 = vpack.c.bf16 %v1929_v53, %v1928_v41 }
 0x955   :  { %v1935_v19 = vmax.f32 %v1917_v43, 0.0  ;;  %v1909_v36 = vadd.f32 %v1908_v25, %v8331_v31  ;;  %v1926_v43 = vmax.f32 %v1882_v1, 0.0  ;;  %v1874_v25 = vadd.f32 %v1873_v50, %v8355_v56 }
 0x956   :  { %v1925_v2 = vmax.f32 %v1877_v60, 0.0 }
 0x957   :  { %v1943_v35 = vpack.c.bf16 %v1935_v19, %v1934_v17  ;;  %v1933_v15 = vmax.f32 %v1909_v36, 0.0  ;;  %v1939_v28 = vpack.c.bf16 %v1927_v10, %v1926_v43  ;;  %v1866_v17 = vadd.f32 %v6787_v48, %v8363_v59 }
 0x958   :  { %v1924_v19 = vmax.f32 %v1874_v25, 0.0  ;;  %v1861_v36 = vadd.f32 %v1860_v49, %v8368_v16 }
 0x959   :  { %6801 = vmatprep.subr.bf16.mxu0 %v1943_v35  ;;  %v1942_v14 = vpack.c.bf16 %v1933_v15, %v1932_v57  ;;  %v1922_v51 = vmax.f32 %v1866_v17, 0.0  ;;  %v1858_v57 = vadd.f32 %v1857_v18, %v8373_v13 }
 0x95a   :  { %6802 = vmatpush3.bf16.msra.mxu0 %v1943_v35  ;;  %v1938_v5 = vpack.c.bf16 %v1925_v2, %v1924_v19  ;;  %v1921_v35 = vmax.f32 %v1861_v36, 0.0 }
 0x95b   :  { %6803 = vmatprep.subr.bf16.mxu0 %v1942_v14  ;;  %v1937_v50 = vpack.c.bf16 %v1923_v8, %v1922_v51  ;;  %v1920_v46 = vmax.f32 %v1858_v57, 0.0 }
 0x95d   :  { %v1936_v15 = vpack.c.bf16 %v1921_v35, %v1920_v46 }
 0x95e   :  { %6804 = vmatpush3.bf16.msra.mxu0 %v1942_v14 }
 0x95f   :  { %6805 = vmatprep.subr.bf16.mxu0 %v1941_v52 }
 0x962   :  { %6806 = vmatpush3.bf16.msra.mxu0 %v1941_v52 }
 0x963   :  { %6807 = vmatprep.subr.bf16.mxu0 %v1940_v45 }
 0x966   :  { %6808 = vmatpush3.bf16.msra.mxu0 %v1940_v45 }
 0x967   :  { %6809 = vmatprep.subr.bf16.mxu0 %v1939_v28 }
 0x96a   :  { %6810 = vmatpush3.bf16.msra.mxu0 %v1939_v28 }
 0x96b   :  { %6811 = vmatprep.subr.bf16.mxu0 %v1938_v5 }
 0x96e   :  { %6812 = vmatpush3.bf16.msra.mxu0 %v1938_v5 }
 0x96f   :  { %6813 = vmatprep.subr.bf16.mxu0 %v1937_v50 }
 0x972   :  { %6814 = vmatpush3.bf16.msra.mxu0 %v1937_v50 }
 0x973   :  { %6815 = vmatprep.subr.bf16.mxu0 %v1936_v15 }
 0x976   :  { %6816 = vmatpush3.bf16.msra.mxu0 %v1936_v15 }
 0x979   :  { %6818 = vmatmul.mubr.bf16.vlgmr.msra.gmra.mxu0 %v8462_v29 }
 0x97a   :  { %6821 = vmatprep.mubr.bf16.mxu0 %v8468_v32 }
 0x981   :  { %6822 = vmatmul.mubr.bf16.gmra.mxu0 %v8474_v21 }
 0x982   :  { %6825 = vmatprep.mubr.bf16.mxu0 %v8480_v62 }
 0x989   :  { %6826 = vmatmul.mubr.bf16.gmra.mxu0 %v8486_v0 }
 0x98a   :  { %6829 = vmatprep.mubr.bf16.mxu0 %v8492_v55 }
 0x991   :  { %6830 = vmatmul.mubr.bf16.gmra.mxu0 %v8498_v38 }
 0x992   :  { %6881 = vmatprep.mubr.bf16.mxu0 %v8504_v47 }
 0xa39   :  { %v6819_v48 = vpop.f32.mrf.mxu0 }
 0xa3b   :  { %v1978_v18 = vpop.f32.mrf.mxu0 }
 0xa3d   :  { %v6820_v49 = vpop.f32.mrf.mxu0 }
 0xa3e   :  { %v2042_v14 = vpack.c.bf16 %v6820_v49, %v6819_v48 }
 0xa3f   :  { %v1981_v42 = vpop.f32.mrf.mxu0 }
 0xa40   :  { %v2041_v7 = vpack.c.bf16 %v1981_v42, %v1978_v18 }
 0xa41   :  { %v6823_v9 = vpop.f32.mrf.mxu0 }
 0xa42   :  { %6849 = vmatprep.mubr.bf16.mxu1 %v2041_v7 }
 0xa43   :  { %v1994_v12 = vpop.f32.mrf.mxu0  ;;  %6850 = vmatmul.mubr.bf16.vlgmr.msra.gmra.mxu1 %v2042_v14 }
 0xa44   :  { %6898 = vmatpush3.bf16.msra.mxu1 %v8507_v39 }
 0xa45   :  { %v6824_v6 = vpop.f32.mrf.mxu0  ;;  %6899 = vmatprep.subr.bf16.mxu1 %v8550_v23 }
 0xa46   :  { %v2044_v1 = vpack.c.bf16 %v6824_v6, %v6823_v9 }
 0xa47   :  { %v1997_v52 = vpop.f32.mrf.mxu0 }
 0xa48   :  { %v2043_v53 = vpack.c.bf16 %v1997_v52, %v1994_v12  ;;  %6900 = vmatpush3.bf16.msra.mxu1 %v8550_v23 }
 0xa49   :  { %v6827_v41 = vpop.f32.mrf.mxu0  ;;  %6901 = vmatprep.subr.bf16.mxu1 %v8554_v22 }
 0xa4a   :  { %6853 = vmatprep.mubr.bf16.mxu1 %v2043_v53 }
 0xa4b   :  { %v2010_v10 = vpop.f32.mrf.mxu0  ;;  %6854 = vmatmul.mubr.bf16.gmra.mxu1 %v2044_v1 }
 0xa4c   :  { %6902 = vmatpush3.bf16.msra.mxu1 %v8554_v22 }
 0xa4d   :  { %v6828_v60 = vpop.f32.mrf.mxu0  ;;  %6903 = vmatprep.subr.bf16.mxu1 %v8558_v58 }
 0xa4e   :  { %v2046_v25 = vpack.c.bf16 %v6828_v60, %v6827_v41 }
 0xa4f   :  { %v2013_v45 = vpop.f32.mrf.mxu0 }
 0xa50   :  { %v2045_v43 = vpack.c.bf16 %v2013_v45, %v2010_v10  ;;  %6904 = vmatpush3.bf16.msra.mxu1 %v8558_v58 }
 0xa51   :  { %v6831_v4 = vpop.f32.mrf.mxu0  ;;  %6905 = vmatprep.subr.bf16.mxu1 %v8562_v11 }
 0xa52   :  { %6857 = vmatprep.mubr.bf16.mxu1 %v2045_v43 }
 0xa53   :  { %v2026_v28 = vpop.f32.mrf.mxu0  ;;  %6858 = vmatmul.mubr.bf16.gmra.mxu1 %v2046_v25 }
 0xa54   :  { %6906 = vmatpush3.bf16.msra.mxu1 %v8562_v11 }
 0xa55   :  { %v6832_v2 = vpop.f32.mrf.mxu0  ;;  %6907 = vmatprep.subr.bf16.mxu1 %v8566_v33 }
 0xa56   :  { %v2048_v8 = vpack.c.bf16 %v6832_v2, %v6831_v4 }
 0xa57   :  { %v2029_v17 = vpop.f32.mrf.mxu0 }
 0xa58   :  { %v2047_v19 = vpack.c.bf16 %v2029_v17, %v2026_v28  ;;  %6908 = vmatpush3.bf16.msra.mxu1 %v8566_v33 }
 0xa59   :  { %6909 = vmatprep.subr.bf16.mxu1 %v8570_v44 }
 0xa5a   :  { %6861 = vmatprep.mubr.bf16.mxu1 %v2047_v19 }
 0xa5b   :  { %6862 = vmatmul.mubr.bf16.gmra.mxu1 %v2048_v8 }
 0xa5c   :  { %6910 = vmatpush3.bf16.msra.mxu1 %v8570_v44 }
 0xa5d   :  { %6911 = vmatprep.subr.bf16.mxu1 %v8574_v37 }
 0xa60   :  { %6912 = vmatpush3.bf16.msra.mxu1 %v8574_v37 }
 0xa61   :  { %6961 = vmatprep.subr.bf16.mxu1 %v8507_v39 }
 0xb03   :  { %v6851_v36 = vpop.f32.mrf.mxu1 }
 0xb05   :  { %v2083_v5 = vpop.f32.mrf.mxu1 }
 0xb07   :  { %v6852_v51 = vpop.f32.mrf.mxu1 }
 0xb09   :  { %v2086_v57 = vpop.f32.mrf.mxu1 }
 0xb0b   :  { %v6855_v50 = vpop.f32.mrf.mxu1 }
 0xb0d   :  { %v2099_v35 = vpop.f32.mrf.mxu1 }
 0xb0f   :  { %v6856_v46 = vpop.f32.mrf.mxu1 }
 0xb11   :  { %v2102_v15 = vpop.f32.mrf.mxu1 }
 0xb13   :  { %v6859_v48 = vpop.f32.mrf.mxu1 }
 0xb14   :  { %v2124_v45 = vadd.f32 %v6859_v48, %v8335_v34  ;;  %v2108_v48 = vadd.f32 %v6855_v50, %v8348_v63 }
 0xb15   :  { %v2115_v18 = vpop.f32.mrf.mxu1 }
 0xb16   :  { %v2156_v19 = vmax.f32 %v2124_v45, 0.0  ;;  %v2116_v8 = vadd.f32 %v2115_v18, %v8342_v3  ;;  %v2095_v18 = vadd.f32 %v6852_v51, %v8359_v54 }
 0xb17   :  { %v6860_v49 = vpop.f32.mrf.mxu1 }
 0xb18   :  { %v2127_v1 = vadd.f32 %v6860_v49, %v8329_v30  ;;  %v2111_v49 = vadd.f32 %v6856_v46, %v8345_v20  ;;  %v2149_v50 = vmax.f32 %v2095_v18, 0.0 }
 0xb19   :  { %v2118_v42 = vpop.f32.mrf.mxu1 }
 0xb1a   :  { %v2157_v28 = vmax.f32 %v2127_v1, 0.0  ;;  %v2119_v2 = vadd.f32 %v2118_v42, %v8339_v40 }
 0xb1b   :  { %v6863_v7 = vpop.f32.mrf.mxu1 }
 0xb1c   :  { %v2140_v9 = vadd.f32 %v6863_v7, %v8322_v24  ;;  %v2167_v7 = vpack.c.bf16 %v2157_v28, %v2156_v19 }
 0xb1d   :  { %v2131_v14 = vpop.f32.mrf.mxu1 }
 0xb1e   :  { %v2132_v6 = vadd.f32 %v2131_v14, %v8324_v26  ;;  %v2160_v41 = vmax.f32 %v2140_v9, 0.0  ;;  %v2155_v14 = vmax.f32 %v2119_v2, 0.0  ;;  %v2154_v9 = vmax.f32 %v2116_v8, 0.0 }
 0xb1f   :  { %v6864_v12 = vpop.f32.mrf.mxu1 }
 0xb20   :  { %v2143_v52 = vadd.f32 %v6864_v12, %v8326_v27  ;;  %v2158_v43 = vmax.f32 %v2132_v6, 0.0  ;;  %v2153_v12 = vmax.f32 %v2111_v49, 0.0  ;;  %v2103_v6 = vadd.f32 %v2102_v15, %v8351_v61 }
 0xb21   :  { %v2134_v53 = vpop.f32.mrf.mxu1  ;;  %v2166_v42 = vpack.c.bf16 %v2155_v14, %v2154_v9 }
 0xb22   :  { %v2161_v10 = vmax.f32 %v2143_v52, 0.0  ;;  %v2135_v60 = vadd.f32 %v2134_v53, %v8331_v31  ;;  %v2152_v52 = vmax.f32 %v2108_v48, 0.0  ;;  %v2100_v53 = vadd.f32 %v2099_v35, %v8355_v56 }
 0xb23   :  { %v2151_v46 = vmax.f32 %v2103_v6, 0.0 }
 0xb24   :  { %v2169_v25 = vpack.c.bf16 %v2161_v10, %v2160_v41  ;;  %v2159_v4 = vmax.f32 %v2135_v60, 0.0  ;;  %v2165_v1 = vpack.c.bf16 %v2153_v12, %v2152_v52  ;;  %v2092_v41 = vadd.f32 %v6851_v36, %v8363_v59 }
 0xb25   :  { %v2150_v10 = vmax.f32 %v2100_v53, 0.0  ;;  %v2087_v60 = vadd.f32 %v2086_v57, %v8368_v16 }
 0xb26   :  { %6865 = vmatprep.subr.bf16.mxu0 %v2169_v25  ;;  %v2168_v17 = vpack.c.bf16 %v2159_v4, %v2158_v43  ;;  %v2148_v15 = vmax.f32 %v2092_v41, 0.0  ;;  %v2084_v43 = vadd.f32 %v2083_v5, %v8373_v13 }
 0xb27   :  { %6866 = vmatpush3.bf16.msra.mxu0 %v2169_v25  ;;  %v2164_v45 = vpack.c.bf16 %v2151_v46, %v2150_v10  ;;  %v2147_v25 = vmax.f32 %v2087_v60, 0.0 }
 0xb28   :  { %6867 = vmatprep.subr.bf16.mxu0 %v2168_v17  ;;  %v2163_v35 = vpack.c.bf16 %v2149_v50, %v2148_v15  ;;  %v2146_v51 = vmax.f32 %v2084_v43, 0.0 }
 0xb2a   :  { %v2162_v4 = vpack.c.bf16 %v2147_v25, %v2146_v51 }
 0xb2b   :  { %6868 = vmatpush3.bf16.msra.mxu0 %v2168_v17 }
 0xb2c   :  { %6869 = vmatprep.subr.bf16.mxu0 %v2167_v7 }
 0xb2f   :  { %6870 = vmatpush3.bf16.msra.mxu0 %v2167_v7 }
 0xb30   :  { %6871 = vmatprep.subr.bf16.mxu0 %v2166_v42 }
 0xb33   :  { %6872 = vmatpush3.bf16.msra.mxu0 %v2166_v42 }
 0xb34   :  { %6873 = vmatprep.subr.bf16.mxu0 %v2165_v1 }
 0xb37   :  { %6874 = vmatpush3.bf16.msra.mxu0 %v2165_v1 }
 0xb38   :  { %6875 = vmatprep.subr.bf16.mxu0 %v2164_v45 }
 0xb3b   :  { %6876 = vmatpush3.bf16.msra.mxu0 %v2164_v45 }
 0xb3c   :  { %6877 = vmatprep.subr.bf16.mxu0 %v2163_v35 }
 0xb3f   :  { %6878 = vmatpush3.bf16.msra.mxu0 %v2163_v35 }
 0xb40   :  { %6879 = vmatprep.subr.bf16.mxu0 %v2162_v4 }
 0xb43   :  { %6880 = vmatpush3.bf16.msra.mxu0 %v2162_v4 }
 0xb46   :  { %6882 = vmatmul.mubr.bf16.vlgmr.msra.gmra.mxu0 %v8462_v29 }
 0xb47   :  { %6885 = vmatprep.mubr.bf16.mxu0 %v8468_v32 }
 0xb4e   :  { %6886 = vmatmul.mubr.bf16.gmra.mxu0 %v8474_v21 }
 0xb4f   :  { %6889 = vmatprep.mubr.bf16.mxu0 %v8480_v62 }
 0xb56   :  { %6890 = vmatmul.mubr.bf16.gmra.mxu0 %v8486_v0 }
 0xb57   :  { %6893 = vmatprep.mubr.bf16.mxu0 %v8492_v55 }
 0xb5e   :  { %6894 = vmatmul.mubr.bf16.gmra.mxu0 %v8498_v38 }
 0xb5f   :  { %6945 = vmatprep.mubr.bf16.mxu0 %v8504_v47 }
 0xc06   :  { %v6883_v36 = vpop.f32.mrf.mxu0 }
 0xc08   :  { %v2204_v5 = vpop.f32.mrf.mxu0 }
 0xc0a   :  { %v6884_v57 = vpop.f32.mrf.mxu0 }
 0xc0b   :  { %v2268_v29 = vpack.c.bf16 %v6884_v57, %v6883_v36 }
 0xc0c   :  { %v2207_v28 = vpop.f32.mrf.mxu0 }
 0xc0d   :  { %v2267_v2 = vpack.c.bf16 %v2207_v28, %v2204_v5 }
 0xc0e   :  { %v6887_v17 = vpop.f32.mrf.mxu0 }
 0xc0f   :  { %6913 = vmatprep.mubr.bf16.mxu1 %v2267_v2 }
 0xc10   :  { %v2220_v32 = vpop.f32.mrf.mxu0  ;;  %6914 = vmatmul.mubr.bf16.vlgmr.msra.gmra.mxu1 %v2268_v29 }
 0xc11   :  { %6962 = vmatpush3.bf16.msra.mxu1 %v8507_v39 }
 0xc12   :  { %v6888_v21 = vpop.f32.mrf.mxu0  ;;  %6963 = vmatprep.subr.bf16.mxu1 %v8550_v23 }
 0xc13   :  { %v2270_v55 = vpack.c.bf16 %v6888_v21, %v6887_v17 }
 0xc14   :  { %v2223_v62 = vpop.f32.mrf.mxu0 }
 0xc15   :  { %v2269_v0 = vpack.c.bf16 %v2223_v62, %v2220_v32  ;;  %6964 = vmatpush3.bf16.msra.mxu1 %v8550_v23 }
 0xc16   :  { %v6891_v38 = vpop.f32.mrf.mxu0  ;;  %6965 = vmatprep.subr.bf16.mxu1 %v8554_v22 }
 0xc17   :  { %6917 = vmatprep.mubr.bf16.mxu1 %v2269_v0 }
 0xc18   :  { %v2236_v47 = vpop.f32.mrf.mxu0  ;;  %6918 = vmatmul.mubr.bf16.gmra.mxu1 %v2270_v55 }
 0xc19   :  { %6966 = vmatpush3.bf16.msra.mxu1 %v8554_v22 }
 0xc1a   :  { %v6892_v19 = vpop.f32.mrf.mxu0  ;;  %6967 = vmatprep.subr.bf16.mxu1 %v8558_v58 }
 0xc1b   :  { %v2272_v7 = vpack.c.bf16 %v6892_v19, %v6891_v38 }
 0xc1c   :  { %v2239_v8 = vpop.f32.mrf.mxu0 }
 0xc1d   :  { %v2271_v49 = vpack.c.bf16 %v2239_v8, %v2236_v47  ;;  %6968 = vmatpush3.bf16.msra.mxu1 %v8558_v58 }
 0xc1e   :  { %v6895_v14 = vpop.f32.mrf.mxu0  ;;  %6969 = vmatprep.subr.bf16.mxu1 %v8562_v11 }
 0xc1f   :  { %6921 = vmatprep.mubr.bf16.mxu1 %v2271_v49 }
 0xc20   :  { %v2252_v48 = vpop.f32.mrf.mxu0  ;;  %6922 = vmatmul.mubr.bf16.gmra.mxu1 %v2272_v7 }
 0xc21   :  { %6970 = vmatpush3.bf16.msra.mxu1 %v8562_v11 }
 0xc22   :  { %v6896_v9 = vpop.f32.mrf.mxu0  ;;  %6971 = vmatprep.subr.bf16.mxu1 %v8566_v33 }
 0xc23   :  { %v2274_v42 = vpack.c.bf16 %v6896_v9, %v6895_v14 }
 0xc24   :  { %v2255_v12 = vpop.f32.mrf.mxu0 }
 0xc25   :  { %v2273_v6 = vpack.c.bf16 %v2255_v12, %v2252_v48  ;;  %6972 = vmatpush3.bf16.msra.mxu1 %v8566_v33 }
 0xc26   :  { %6973 = vmatprep.subr.bf16.mxu1 %v8570_v44 }
 0xc27   :  { %6925 = vmatprep.mubr.bf16.mxu1 %v2273_v6 }
 0xc28   :  { %6926 = vmatmul.mubr.bf16.gmra.mxu1 %v2274_v42 }
 0xc29   :  { %6974 = vmatpush3.bf16.msra.mxu1 %v8570_v44 }
 0xc2a   :  { %6975 = vmatprep.subr.bf16.mxu1 %v8574_v37 }
 0xc2d   :  { %6976 = vmatpush3.bf16.msra.mxu1 %v8574_v37 }
 0xc2e   :  { %7025 = vmatprep.subr.bf16.mxu1 %v8507_v39 }
 0xcd0   :  { %v6915_v52 = vpop.f32.mrf.mxu1 }
 0xcd2   :  { %v2309_v53 = vpop.f32.mrf.mxu1 }
 0xcd4   :  { %v6916_v18 = vpop.f32.mrf.mxu1 }
 0xcd6   :  { %v2312_v1 = vpop.f32.mrf.mxu1 }
 0xcd8   :  { %v6919_v46 = vpop.f32.mrf.mxu1 }
 0xcd9   :  { %v2334_v14 = vadd.f32 %v6919_v46, %v8348_v63 }
 0xcda   :  { %v2325_v41 = vpop.f32.mrf.mxu1 }
 0xcdb   :  { %v2378_v42 = vmax.f32 %v2334_v14, 0.0 }
 0xcdc   :  { %v6920_v10 = vpop.f32.mrf.mxu1 }
 0xcdd   :  { %v2337_v8 = vadd.f32 %v6920_v10, %v8345_v20 }
 0xcde   :  { %v2328_v50 = vpop.f32.mrf.mxu1 }
 0xcdf   :  { %v2379_v9 = vmax.f32 %v2337_v8, 0.0  ;;  %v2329_v12 = vadd.f32 %v2328_v50, %v8351_v61 }
 0xce0   :  { %v6923_v60 = vpop.f32.mrf.mxu1 }
 0xce1   :  { %v2350_v17 = vadd.f32 %v6923_v60, %v8335_v34  ;;  %v2326_v60 = vadd.f32 %v2325_v41, %v8355_v56  ;;  %v2377_v10 = vmax.f32 %v2329_v12, 0.0 }
 0xce2   :  { %v2341_v45 = vpop.f32.mrf.mxu1 }
 0xce3   :  { %v2382_v47 = vmax.f32 %v2350_v17, 0.0  ;;  %v2342_v19 = vadd.f32 %v2341_v45, %v8342_v3  ;;  %v2321_v45 = vadd.f32 %v6916_v18, %v8359_v54 }
 0xce4   :  { %v6924_v15 = vpop.f32.mrf.mxu1 }
 0xce5   :  { %v2353_v57 = vadd.f32 %v6924_v15, %v8329_v30  ;;  %v2380_v48 = vmax.f32 %v2342_v19, 0.0  ;;  %v2391_v15 = vpack.c.bf16 %v2379_v9, %v2378_v42  ;;  %v2375_v46 = vmax.f32 %v2321_v45, 0.0  ;;  %v8723_v19 = vld [vmem:[#allocation2 + $0x38] sm:$0xff]  }
 0xce6   :  { %v2344_v43 = vpop.f32.mrf.mxu1 }
 0xce7   :  { %v2383_v0 = vmax.f32 %v2353_v57, 0.0  ;;  %v2345_v55 = vadd.f32 %v2344_v43, %v8339_v40  ;;  %v2318_v43 = vadd.f32 %v6915_v52, %v8363_v59  ;;  %v8678_v52 = vld [vmem:[%s9359_s2 + $0x8] sm:$0xff]  }
 0xce8   :  { %v6927_v35 = vpop.f32.mrf.mxu1  ;;  %v8702_v57 = vld [vmem:[%s9359_s2 + $0x28] sm:$0xff]  }
 0xce9   :  { %v2366_v51 = vadd.f32 %v6927_v35, %v8322_v24  ;;  %v2393_v49 = vpack.c.bf16 %v2383_v0, %v2382_v47  ;;  %v2381_v7 = vmax.f32 %v2345_v55, 0.0  ;;  %v2376_v35 = vmax.f32 %v2326_v60, 0.0 }
 0xcea   :  { %v2357_v25 = vpop.f32.mrf.mxu1  ;;  %v2374_v50 = vmax.f32 %v2318_v43, 0.0 }
 0xceb   :  { %v2358_v36 = vadd.f32 %v2357_v25, %v8324_v26  ;;  %v2386_v28 = vmax.f32 %v2366_v51, 0.0  ;;  %v2392_v6 = vpack.c.bf16 %v2381_v7, %v2380_v48  ;;  %v2313_v25 = vadd.f32 %v2312_v1, %v8368_v16  ;;  %v8690_v1 = vld [vmem:[%s9359_s2 + $0x18] sm:$0xff]  }
 0xcec   :  { %v6928_v4 = vpop.f32.mrf.mxu1  ;;  %v2390_v51 = vpack.c.bf16 %v2377_v10, %v2376_v35  ;;  %v2389_v41 = vpack.c.bf16 %v2375_v46, %v2374_v50 }
 0xced   :  { %v2369_v39 = vadd.f32 %v6928_v4, %v8326_v27  ;;  %v2384_v32 = vmax.f32 %v2358_v36, 0.0  ;;  %v2310_v4 = vadd.f32 %v2309_v53, %v8373_v13  ;;  %v2373_v36 = vmax.f32 %v2313_v25, 0.0  ;;  %v8684_v53 = vld [vmem:[%s9359_s2 + $0x10] sm:$0xff]  }
 0xcee   :  { %v2360_v5 = vpop.f32.mrf.mxu1 }
 0xcef   :  { %v2387_v2 = vmax.f32 %v2369_v39, 0.0  ;;  %v2361_v29 = vadd.f32 %v2360_v5, %v8331_v31  ;;  %v2372_v18 = vmax.f32 %v2310_v4, 0.0  ;;  %v8696_v5 = vld [vmem:[%s9359_s2 + $0x20] sm:$0xff]  }
 0xcf1   :  { %v2395_v21 = vpack.c.bf16 %v2387_v2, %v2386_v28  ;;  %v2385_v62 = vmax.f32 %v2361_v29, 0.0  ;;  %v2388_v39 = vpack.c.bf16 %v2373_v36, %v2372_v18  ;;  %v8708_v28 = vld [vmem:[%s9359_s2 + $0x30] sm:$0xff]   ;;  %v8714_v2 = vld [vmem:[%s9359_s2 + $0x38] sm:$0xff]   ;;  %v8720_v29 = vld [vmem:[%s9359_s2] sm:$0xff]  }
 0xcf3   :  { %6929 = vmatprep.subr.bf16.mxu0 %v2395_v21  ;;  %v2394_v38 = vpack.c.bf16 %v2385_v62, %v2384_v32 }
 0xcf4   :  { %6930 = vmatpush3.bf16.msra.mxu0 %v2395_v21 }
 0xcf5   :  { %6931 = vmatprep.subr.bf16.mxu0 %v2394_v38 }
 0xcf8   :  { %6932 = vmatpush3.bf16.msra.mxu0 %v2394_v38 }
 0xcf9   :  { %6933 = vmatprep.subr.bf16.mxu0 %v2393_v49 }
 0xcfc   :  { %6934 = vmatpush3.bf16.msra.mxu0 %v2393_v49 }
 0xcfd   :  { %6935 = vmatprep.subr.bf16.mxu0 %v2392_v6 }
 0xd00   :  { %6936 = vmatpush3.bf16.msra.mxu0 %v2392_v6 }
 0xd01   :  { %6937 = vmatprep.subr.bf16.mxu0 %v2391_v15 }
 0xd04   :  { %6938 = vmatpush3.bf16.msra.mxu0 %v2391_v15 }
 0xd05   :  { %6939 = vmatprep.subr.bf16.mxu0 %v2390_v51 }
 0xd08   :  { %6940 = vmatpush3.bf16.msra.mxu0 %v2390_v51 }
 0xd09   :  { %6941 = vmatprep.subr.bf16.mxu0 %v2389_v41 }
 0xd0c   :  { %6942 = vmatpush3.bf16.msra.mxu0 %v2389_v41 }
 0xd0d   :  { %6943 = vmatprep.subr.bf16.mxu0 %v2388_v39 }
 0xd10   :  { %6944 = vmatpush3.bf16.msra.mxu0 %v2388_v39 }
 0xd13   :  { %6946 = vmatmul.mubr.bf16.vlgmr.msra.gmra.mxu0 %v8678_v52 }
 0xd14   :  { %6949 = vmatprep.mubr.bf16.mxu0 %v8684_v53 }
 0xd1b   :  { %6950 = vmatmul.mubr.bf16.gmra.mxu0 %v8690_v1 }
 0xd1c   :  { %6953 = vmatprep.mubr.bf16.mxu0 %v8696_v5 }
 0xd23   :  { %6954 = vmatmul.mubr.bf16.gmra.mxu0 %v8702_v57 }
 0xd24   :  { %6957 = vmatprep.mubr.bf16.mxu0 %v8708_v28 }
 0xd2b   :  { %6958 = vmatmul.mubr.bf16.gmra.mxu0 %v8714_v2 }
 0xd2c   :  { %7009 = vmatprep.mubr.bf16.mxu0 %v8720_v29 }
 0xdd3   :  { %v6947_v17 = vpop.f32.mrf.mxu0 }
 0xdd5   :  { %v2430_v32 = vpop.f32.mrf.mxu0 }
 0xdd7   :  { %v6948_v21 = vpop.f32.mrf.mxu0 }
 0xdd8   :  { %v2494_v55 = vpack.c.bf16 %v6948_v21, %v6947_v17 }
 0xdd9   :  { %v2433_v62 = vpop.f32.mrf.mxu0 }
 0xdda   :  { %v2493_v0 = vpack.c.bf16 %v2433_v62, %v2430_v32 }
 0xddb   :  { %v6951_v38 = vpop.f32.mrf.mxu0 }
 0xddc   :  { %6977 = vmatprep.mubr.bf16.mxu1 %v2493_v0 }
 0xddd   :  { %v2446_v47 = vpop.f32.mrf.mxu0  ;;  %6978 = vmatmul.mubr.bf16.vlgmr.msra.gmra.mxu1 %v2494_v55 }
 0xdde   :  { %7026 = vmatpush3.bf16.msra.mxu1 %v8723_v19 }
 0xddf   :  { %v6952_v8 = vpop.f32.mrf.mxu0  ;;  %7027 = vmatprep.subr.bf16.mxu1 %v8550_v23 }
 0xde0   :  { %v2496_v14 = vpack.c.bf16 %v6952_v8, %v6951_v38 }
 0xde1   :  { %v2449_v49 = vpop.f32.mrf.mxu0 }
 0xde2   :  { %v2495_v7 = vpack.c.bf16 %v2449_v49, %v2446_v47  ;;  %7028 = vmatpush3.bf16.msra.mxu1 %v8550_v23 }
 0xde3   :  { %v6955_v48 = vpop.f32.mrf.mxu0  ;;  %7029 = vmatprep.subr.bf16.mxu1 %v8554_v22 }
 0xde4   :  { %6981 = vmatprep.mubr.bf16.mxu1 %v2495_v7 }
 0xde5   :  { %v2462_v9 = vpop.f32.mrf.mxu0  ;;  %6982 = vmatmul.mubr.bf16.gmra.mxu1 %v2496_v14 }
 0xde6   :  { %7030 = vmatpush3.bf16.msra.mxu1 %v8554_v22 }
 0xde7   :  { %v6956_v12 = vpop.f32.mrf.mxu0  ;;  %7031 = vmatprep.subr.bf16.mxu1 %v8558_v58 }
 0xde8   :  { %v2498_v60 = vpack.c.bf16 %v6956_v12, %v6955_v48 }
 0xde9   :  { %v2465_v6 = vpop.f32.mrf.mxu0 }
 0xdea   :  { %v2497_v42 = vpack.c.bf16 %v2465_v6, %v2462_v9  ;;  %7032 = vmatpush3.bf16.msra.mxu1 %v8558_v58 }
 0xdeb   :  { %v6959_v45 = vpop.f32.mrf.mxu0  ;;  %7033 = vmatprep.subr.bf16.mxu1 %v8562_v11 }
 0xdec   :  { %6985 = vmatprep.mubr.bf16.mxu1 %v2497_v42 }
 0xded   :  { %v2478_v23 = vpop.f32.mrf.mxu0  ;;  %6986 = vmatmul.mubr.bf16.gmra.mxu1 %v2498_v60 }
 0xdee   :  { %7034 = vmatpush3.bf16.msra.mxu1 %v8562_v11 }
 0xdef   :  { %v6960_v15 = vpop.f32.mrf.mxu0  ;;  %7035 = vmatprep.subr.bf16.mxu1 %v8566_v33 }
 0xdf0   :  { %v2500_v43 = vpack.c.bf16 %v6960_v15, %v6959_v45 }
 0xdf1   :  { %v2481_v22 = vpop.f32.mrf.mxu0 }
 0xdf2   :  { %v2499_v10 = vpack.c.bf16 %v2481_v22, %v2478_v23  ;;  %7036 = vmatpush3.bf16.msra.mxu1 %v8566_v33 }
 0xdf3   :  { %7037 = vmatprep.subr.bf16.mxu1 %v8570_v44 }
 0xdf4   :  { %6989 = vmatprep.mubr.bf16.mxu1 %v2499_v10 }
 0xdf5   :  { %6990 = vmatmul.mubr.bf16.gmra.mxu1 %v2500_v43 }
 0xdf6   :  { %7038 = vmatpush3.bf16.msra.mxu1 %v8570_v44 }
 0xdf7   :  { %7039 = vmatprep.subr.bf16.mxu1 %v8574_v37 }
 0xdfa   :  { %7040 = vmatpush3.bf16.msra.mxu1 %v8574_v37 }
 0xdfb   :  { %7089 = vmatprep.subr.bf16.mxu1 %v8723_v19 }
 0xe9d   :  { %v6979_v58 = vpop.f32.mrf.mxu1 }
 0xe9f   :  { %v2535_v11 = vpop.f32.mrf.mxu1 }
 0xea1   :  { %v6980_v35 = vpop.f32.mrf.mxu1 }
 0xea3   :  { %v2538_v46 = vpop.f32.mrf.mxu1 }
 0xea5   :  { %v6983_v25 = vpop.f32.mrf.mxu1 }
 0xea6   :  { %v2560_v15 = vadd.f32 %v6983_v25, %v8348_v63 }
 0xea7   :  { %v2551_v51 = vpop.f32.mrf.mxu1 }
 0xea9   :  { %v6984_v33 = vpop.f32.mrf.mxu1 }
 0xeaa   :  { %v2563_v60 = vadd.f32 %v6984_v33, %v8345_v20 }
 0xeab   :  { %v2554_v50 = vpop.f32.mrf.mxu1 }
 0xeac   :  { %v2605_v10 = vmax.f32 %v2563_v60, 0.0  ;;  %v2555_v43 = vadd.f32 %v2554_v50, %v8351_v61 }
 0xead   :  { %v6987_v4 = vpop.f32.mrf.mxu1 }
 0xeae   :  { %v2576_v8 = vadd.f32 %v6987_v4, %v8335_v34  ;;  %v2603_v33 = vmax.f32 %v2555_v43, 0.0 }
 0xeaf   :  { %v2567_v41 = vpop.f32.mrf.mxu1 }
 0xeb0   :  { %v2608_v6 = vmax.f32 %v2576_v8, 0.0  ;;  %v2568_v42 = vadd.f32 %v2567_v41, %v8342_v3  ;;  %v2547_v41 = vadd.f32 %v6980_v35, %v8359_v54 }
 0xeb1   :  { %v6988_v36 = vpop.f32.mrf.mxu1 }
 0xeb2   :  { %v2579_v0 = vadd.f32 %v6988_v36, %v8329_v30  ;;  %v2606_v22 = vmax.f32 %v2568_v42, 0.0  ;;  %v2604_v36 = vmax.f32 %v2560_v15, 0.0  ;;  %v2601_v25 = vmax.f32 %v2547_v41, 0.0  ;;  %v8770_v42 = vld [vmem:[#allocation2 + $0x28] sm:$0xff]   ;;  %v8782_v41 = vld [vmem:[#allocation2 + $0x10] sm:$0xff]  }
 0xeb3   :  { %v2570_v18 = vpop.f32.mrf.mxu1 }
 0xeb4   :  { %v2609_v48 = vmax.f32 %v2579_v0, 0.0  ;;  %v2571_v9 = vadd.f32 %v2570_v18, %v8339_v40  ;;  %v2552_v18 = vadd.f32 %v2551_v51, %v8355_v56 }
 0xeb5   :  { %v6991_v39 = vpop.f32.mrf.mxu1 }
 0xeb6   :  { %v2592_v17 = vadd.f32 %v6991_v39, %v8322_v24  ;;  %v2619_v45 = vpack.c.bf16 %v2609_v48, %v2608_v6  ;;  %v2607_v23 = vmax.f32 %v2571_v9, 0.0  ;;  %v2617_v39 = vpack.c.bf16 %v2605_v10, %v2604_v36 }
 0xeb7   :  { %v2583_v44 = vpop.f32.mrf.mxu1 }
 0xeb8   :  { %v2584_v37 = vadd.f32 %v2583_v44, %v8324_v26  ;;  %v2612_v55 = vmax.f32 %v2592_v17, 0.0  ;;  %v2618_v4 = vpack.c.bf16 %v2607_v23, %v2606_v22  ;;  %v2544_v44 = vadd.f32 %v6979_v58, %v8363_v59  ;;  %v8774_v23 = vld [vmem:[#allocation2 + $0x20] sm:$0xff]  }
 0xeb9   :  { %v6992_v32 = vpop.f32.mrf.mxu1  ;;  %v2602_v17 = vmax.f32 %v2552_v18, 0.0 }
 0xeba   :  { %v2595_v21 = vadd.f32 %v6992_v32, %v8326_v27  ;;  %v2610_v49 = vmax.f32 %v2584_v37, 0.0  ;;  %v2539_v32 = vadd.f32 %v2538_v46, %v8368_v16  ;;  %v2600_v50 = vmax.f32 %v2544_v44, 0.0 }
 0xebb   :  { %v2586_v62 = vpop.f32.mrf.mxu1  ;;  %v2616_v37 = vpack.c.bf16 %v2603_v33, %v2602_v17  ;;  %v8786_v17 = vld [vmem:[#allocation2 + $0x8] sm:$0xff]  }
 0xebc   :  { %v2613_v38 = vmax.f32 %v2595_v21, 0.0  ;;  %v2587_v47 = vadd.f32 %v2586_v62, %v8331_v31  ;;  %v2536_v21 = vadd.f32 %v2535_v11, %v8373_v13  ;;  %v2615_v51 = vpack.c.bf16 %v2601_v25, %v2600_v50  ;;  %v8790_v25 = vld [vmem:[#allocation2] sm:$0xff]  }
 0xebd   :  { %v2599_v62 = vmax.f32 %v2539_v32, 0.0 }
 0xebe   :  { %v2621_v7 = vpack.c.bf16 %v2613_v38, %v2612_v55  ;;  %v2611_v14 = vmax.f32 %v2587_v47, 0.0  ;;  %v2598_v35 = vmax.f32 %v2536_v21, 0.0 }
 0xec0   :  { %6993 = vmatprep.subr.bf16.mxu0 %v2621_v7  ;;  %v2620_v12 = vpack.c.bf16 %v2611_v14, %v2610_v49  ;;  %v2614_v0 = vpack.c.bf16 %v2599_v62, %v2598_v35  ;;  %v8766_v14 = vld [vmem:[#allocation2 + $0x30] sm:$0xff]  }
 0xec1   :  { %6994 = vmatpush3.bf16.msra.mxu0 %v2621_v7 }
 0xec2   :  { %6995 = vmatprep.subr.bf16.mxu0 %v2620_v12 }
 0xec5   :  { %6996 = vmatpush3.bf16.msra.mxu0 %v2620_v12 }
 0xec6   :  { %6997 = vmatprep.subr.bf16.mxu0 %v2619_v45 }
 0xec9   :  { %6998 = vmatpush3.bf16.msra.mxu0 %v2619_v45 }
 0xeca   :  { %6999 = vmatprep.subr.bf16.mxu0 %v2618_v4 }
 0xecd   :  { %7000 = vmatpush3.bf16.msra.mxu0 %v2618_v4  ;;  %v8778_v4 = vld [vmem:[#allocation2 + $0x18] sm:$0xff]  }
 0xece   :  { %7001 = vmatprep.subr.bf16.mxu0 %v2617_v39 }
 0xed1   :  { %7002 = vmatpush3.bf16.msra.mxu0 %v2617_v39 }
 0xed2   :  { %7003 = vmatprep.subr.bf16.mxu0 %v2616_v37 }
 0xed5   :  { %7004 = vmatpush3.bf16.msra.mxu0 %v2616_v37 }
 0xed6   :  { %7005 = vmatprep.subr.bf16.mxu0 %v2615_v51 }
 0xed9   :  { %7006 = vmatpush3.bf16.msra.mxu0 %v2615_v51 }
 0xeda   :  { %7007 = vmatprep.subr.bf16.mxu0 %v2614_v0 }
 0xedd   :  { %7008 = vmatpush3.bf16.msra.mxu0 %v2614_v0 }
 0xee0   :  { %7010 = vmatmul.mubr.bf16.vlgmr.msra.gmra.mxu0 %v8678_v52 }
 0xee1   :  { %7013 = vmatprep.mubr.bf16.mxu0 %v8684_v53 }
 0xee8   :  { %7014 = vmatmul.mubr.bf16.gmra.mxu0 %v8690_v1 }
 0xee9   :  { %7017 = vmatprep.mubr.bf16.mxu0 %v8696_v5 }
 0xef0   :  { %7018 = vmatmul.mubr.bf16.gmra.mxu0 %v8702_v57 }
 0xef1   :  { %7021 = vmatprep.mubr.bf16.mxu0 %v8708_v28 }
 0xef8   :  { %7022 = vmatmul.mubr.bf16.gmra.mxu0 %v8714_v2 }
 0xef9   :  { %7073 = vmatprep.mubr.bf16.mxu0 %v8720_v29 }
 0xfa0   :  { %v7011_v58 = vpop.f32.mrf.mxu0 }
 0xfa2   :  { %v2656_v11 = vpop.f32.mrf.mxu0 }
 0xfa4   :  { %v7012_v46 = vpop.f32.mrf.mxu0 }
 0xfa5   :  { %v2720_v47 = vpack.c.bf16 %v7012_v46, %v7011_v58 }
 0xfa6   :  { %v2659_v55 = vpop.f32.mrf.mxu0 }
 0xfa7   :  { %v2719_v38 = vpack.c.bf16 %v2659_v55, %v2656_v11 }
 0xfa8   :  { %v7015_v8 = vpop.f32.mrf.mxu0 }
 0xfa9   :  { %7041 = vmatprep.mubr.bf16.mxu1 %v2719_v38 }
 0xfaa   :  { %v2672_v49 = vpop.f32.mrf.mxu0  ;;  %7042 = vmatmul.mubr.bf16.vlgmr.msra.gmra.mxu1 %v2720_v47 }
 0xfab   :  { %7090 = vmatpush3.bf16.msra.mxu1 %v8723_v19 }
 0xfac   :  { %v7016_v7 = vpop.f32.mrf.mxu0  ;;  %7091 = vmatprep.subr.bf16.mxu1 %v8766_v14 }
 0xfad   :  { %v2722_v12 = vpack.c.bf16 %v7016_v7, %v7015_v8 }
 0xfae   :  { %v2675_v48 = vpop.f32.mrf.mxu0 }
 0xfaf   :  { %v2721_v9 = vpack.c.bf16 %v2675_v48, %v2672_v49  ;;  %7092 = vmatpush3.bf16.msra.mxu1 %v8766_v14 }
 0xfb0   :  { %v7019_v6 = vpop.f32.mrf.mxu0  ;;  %7093 = vmatprep.subr.bf16.mxu1 %v8770_v42 }
 0xfb1   :  { %7045 = vmatprep.mubr.bf16.mxu1 %v2721_v9 }
 0xfb2   :  { %v2688_v60 = vpop.f32.mrf.mxu0  ;;  %7046 = vmatmul.mubr.bf16.gmra.mxu1 %v2722_v12 }
 0xfb3   :  { %7094 = vmatpush3.bf16.msra.mxu1 %v8770_v42 }
 0xfb4   :  { %v7020_v45 = vpop.f32.mrf.mxu0  ;;  %7095 = vmatprep.subr.bf16.mxu1 %v8774_v23 }
 0xfb5   :  { %v2724_v10 = vpack.c.bf16 %v7020_v45, %v7019_v6 }
 0xfb6   :  { %v2691_v15 = vpop.f32.mrf.mxu0 }
 0xfb7   :  { %v2723_v22 = vpack.c.bf16 %v2691_v15, %v2688_v60  ;;  %7096 = vmatpush3.bf16.msra.mxu1 %v8774_v23 }
 0xfb8   :  { %v7023_v43 = vpop.f32.mrf.mxu0  ;;  %7097 = vmatprep.subr.bf16.mxu1 %v8778_v4 }
 0xfb9   :  { %7049 = vmatprep.mubr.bf16.mxu1 %v2723_v22 }
 0xfba   :  { %v2704_v36 = vpop.f32.mrf.mxu0  ;;  %7050 = vmatmul.mubr.bf16.gmra.mxu1 %v2724_v10 }
 0xfbb   :  { %7098 = vmatpush3.bf16.msra.mxu1 %v8778_v4 }
 0xfbc   :  { %v7024_v18 = vpop.f32.mrf.mxu0  ;;  %7099 = vmatprep.subr.bf16.mxu1 %v8782_v41 }
 0xfbd   :  { %v2726_v44 = vpack.c.bf16 %v7024_v18, %v7023_v43 }
 0xfbe   :  { %v2707_v39 = vpop.f32.mrf.mxu0 }
 0xfbf   :  { %v2725_v33 = vpack.c.bf16 %v2707_v39, %v2704_v36  ;;  %7100 = vmatpush3.bf16.msra.mxu1 %v8782_v41 }
 0xfc0   :  { %7101 = vmatprep.subr.bf16.mxu1 %v8786_v17 }
 0xfc1   :  { %7053 = vmatprep.mubr.bf16.mxu1 %v2725_v33 }
 0xfc2   :  { %7054 = vmatmul.mubr.bf16.gmra.mxu1 %v2726_v44 }
 0xfc3   :  { %7102 = vmatpush3.bf16.msra.mxu1 %v8786_v17 }
 0xfc4   :  { %7103 = vmatprep.subr.bf16.mxu1 %v8790_v25 }
 0xfc7   :  { %7104 = vmatpush3.bf16.msra.mxu1 %v8790_v25 }
 0xfc8   :  { %7153 = vmatprep.subr.bf16.mxu1 %v8723_v19 }
0x106a   :  { %v7043_v32 = vpop.f32.mrf.mxu1 }
0x106c   :  { %v2761_v37 = vpop.f32.mrf.mxu1 }
0x106e   :  { %v7044_v50 = vpop.f32.mrf.mxu1 }
0x1070   :  { %v2764_v21 = vpop.f32.mrf.mxu1 }
0x1072   :  { %v7047_v51 = vpop.f32.mrf.mxu1 }
0x1074   :  { %v2777_v62 = vpop.f32.mrf.mxu1 }
0x1076   :  { %v7048_v35 = vpop.f32.mrf.mxu1 }
0x1078   :  { %v2780_v0 = vpop.f32.mrf.mxu1 }
0x107a   :  { %v7051_v58 = vpop.f32.mrf.mxu1 }
0x107b   :  { %v2802_v15 = vadd.f32 %v7051_v58, %v8335_v34  ;;  %v2786_v58 = vadd.f32 %v7047_v51, %v8348_v63 }
0x107c   :  { %v2793_v11 = vpop.f32.mrf.mxu1 }
0x107d   :  { %v2834_v33 = vmax.f32 %v2802_v15, 0.0  ;;  %v2794_v44 = vadd.f32 %v2793_v11, %v8342_v3  ;;  %v2773_v11 = vadd.f32 %v7044_v50, %v8359_v54 }
0x107e   :  { %v7052_v46 = vpop.f32.mrf.mxu1 }
0x107f   :  { %v2805_v12 = vadd.f32 %v7052_v46, %v8329_v30  ;;  %v2789_v46 = vadd.f32 %v7048_v35, %v8345_v20  ;;  %v2827_v51 = vmax.f32 %v2773_v11, 0.0 }
0x1080   :  { %v2796_v55 = vpop.f32.mrf.mxu1 }
0x1081   :  { %v2835_v36 = vmax.f32 %v2805_v12, 0.0  ;;  %v2797_v18 = vadd.f32 %v2796_v55, %v8339_v40 }
0x1082   :  { %v7055_v38 = vpop.f32.mrf.mxu1 }
0x1083   :  { %v2818_v8 = vadd.f32 %v7055_v38, %v8322_v24  ;;  %v2845_v38 = vpack.c.bf16 %v2835_v36, %v2834_v33 }
0x1084   :  { %v2809_v47 = vpop.f32.mrf.mxu1 }
0x1085   :  { %v2810_v7 = vadd.f32 %v2809_v47, %v8324_v26  ;;  %v2838_v6 = vmax.f32 %v2818_v8, 0.0  ;;  %v2833_v47 = vmax.f32 %v2797_v18, 0.0  ;;  %v2832_v8 = vmax.f32 %v2794_v44, 0.0 }
0x1086   :  { %v7056_v49 = vpop.f32.mrf.mxu1 }
0x1087   :  { %v2821_v48 = vadd.f32 %v7056_v49, %v8326_v27  ;;  %v2836_v22 = vmax.f32 %v2810_v7, 0.0  ;;  %v2831_v49 = vmax.f32 %v2789_v46, 0.0  ;;  %v2781_v7 = vadd.f32 %v2780_v0, %v8351_v61 }
0x1088   :  { %v2812_v9 = vpop.f32.mrf.mxu1  ;;  %v2844_v55 = vpack.c.bf16 %v2833_v47, %v2832_v8 }
0x1089   :  { %v2839_v60 = vmax.f32 %v2821_v48, 0.0  ;;  %v2813_v45 = vadd.f32 %v2812_v9, %v8331_v31  ;;  %v2830_v48 = vmax.f32 %v2786_v58, 0.0  ;;  %v2778_v9 = vadd.f32 %v2777_v62, %v8355_v56 }
0x108a   :  { %v2829_v35 = vmax.f32 %v2781_v7, 0.0 }
0x108b   :  { %v2847_v10 = vpack.c.bf16 %v2839_v60, %v2838_v6  ;;  %v2837_v43 = vmax.f32 %v2813_v45, 0.0  ;;  %v2843_v12 = vpack.c.bf16 %v2831_v49, %v2830_v48  ;;  %v2770_v6 = vadd.f32 %v7043_v32, %v8363_v59 }
0x108c   :  { %v2828_v60 = vmax.f32 %v2778_v9, 0.0  ;;  %v2765_v45 = vadd.f32 %v2764_v21, %v8368_v16 }
0x108d   :  { %7057 = vmatprep.subr.bf16.mxu0 %v2847_v10  ;;  %v2846_v39 = vpack.c.bf16 %v2837_v43, %v2836_v22  ;;  %v2826_v0 = vmax.f32 %v2770_v6, 0.0  ;;  %v2762_v22 = vadd.f32 %v2761_v37, %v8373_v13 }
0x108e   :  { %7058 = vmatpush3.bf16.msra.mxu0 %v2847_v10  ;;  %v2842_v15 = vpack.c.bf16 %v2829_v35, %v2828_v60  ;;  %v2825_v10 = vmax.f32 %v2765_v45, 0.0 }
0x108f   :  { %7059 = vmatprep.subr.bf16.mxu0 %v2846_v39  ;;  %v2841_v62 = vpack.c.bf16 %v2827_v51, %v2826_v0  ;;  %v2824_v50 = vmax.f32 %v2762_v22, 0.0 }
0x1091   :  { %v2840_v43 = vpack.c.bf16 %v2825_v10, %v2824_v50 }
0x1092   :  { %7060 = vmatpush3.bf16.msra.mxu0 %v2846_v39 }
0x1093   :  { %7061 = vmatprep.subr.bf16.mxu0 %v2845_v38 }
0x1096   :  { %7062 = vmatpush3.bf16.msra.mxu0 %v2845_v38 }
0x1097   :  { %7063 = vmatprep.subr.bf16.mxu0 %v2844_v55 }
0x109a   :  { %7064 = vmatpush3.bf16.msra.mxu0 %v2844_v55 }
0x109b   :  { %7065 = vmatprep.subr.bf16.mxu0 %v2843_v12 }
0x109e   :  { %7066 = vmatpush3.bf16.msra.mxu0 %v2843_v12 }
0x109f   :  { %7067 = vmatprep.subr.bf16.mxu0 %v2842_v15 }
0x10a2   :  { %7068 = vmatpush3.bf16.msra.mxu0 %v2842_v15 }
0x10a3   :  { %7069 = vmatprep.subr.bf16.mxu0 %v2841_v62 }
0x10a6   :  { %7070 = vmatpush3.bf16.msra.mxu0 %v2841_v62 }
0x10a7   :  { %7071 = vmatprep.subr.bf16.mxu0 %v2840_v43 }
0x10aa   :  { %7072 = vmatpush3.bf16.msra.mxu0 %v2840_v43 }
0x10ad   :  { %7074 = vmatmul.mubr.bf16.vlgmr.msra.gmra.mxu0 %v8678_v52 }
0x10ae   :  { %7077 = vmatprep.mubr.bf16.mxu0 %v8684_v53 }
0x10b5   :  { %7078 = vmatmul.mubr.bf16.gmra.mxu0 %v8690_v1 }
0x10b6   :  { %7081 = vmatprep.mubr.bf16.mxu0 %v8696_v5 }
0x10bd   :  { %7082 = vmatmul.mubr.bf16.gmra.mxu0 %v8702_v57 }
0x10be   :  { %7085 = vmatprep.mubr.bf16.mxu0 %v8708_v28 }
0x10c5   :  { %7086 = vmatmul.mubr.bf16.gmra.mxu0 %v8714_v2 }
0x10c6   :  { %7137 = vmatprep.mubr.bf16.mxu0 %v8720_v29 }
0x116d   :  { %v7075_v32 = vpop.f32.mrf.mxu0 }
0x116f   :  { %v2882_v37 = vpop.f32.mrf.mxu0 }
0x1171   :  { %v7076_v21 = vpop.f32.mrf.mxu0 }
0x1172   :  { %v2946_v39 = vpack.c.bf16 %v7076_v21, %v7075_v32 }
0x1173   :  { %v2885_v36 = vpop.f32.mrf.mxu0 }
0x1174   :  { %v2945_v18 = vpack.c.bf16 %v2885_v36, %v2882_v37 }
0x1175   :  { %v7079_v33 = vpop.f32.mrf.mxu0 }
0x1176   :  { %7105 = vmatprep.mubr.bf16.mxu1 %v2945_v18 }
0x1177   :  { %v2898_v44 = vpop.f32.mrf.mxu0  ;;  %7106 = vmatmul.mubr.bf16.vlgmr.msra.gmra.mxu1 %v2946_v39 }
0x1178   :  { %7154 = vmatpush3.bf16.msra.mxu1 %v8723_v19 }
0x1179   :  { %v7080_v46 = vpop.f32.mrf.mxu0  ;;  %7155 = vmatprep.subr.bf16.mxu1 %v8766_v14 }
0x117a   :  { %v2948_v58 = vpack.c.bf16 %v7080_v46, %v7079_v33 }
0x117b   :  { %v2901_v38 = vpop.f32.mrf.mxu0 }
0x117c   :  { %v2947_v47 = vpack.c.bf16 %v2901_v38, %v2898_v44  ;;  %7156 = vmatpush3.bf16.msra.mxu1 %v8766_v14 }
0x117d   :  { %v7083_v8 = vpop.f32.mrf.mxu0  ;;  %7157 = vmatprep.subr.bf16.mxu1 %v8770_v42 }
0x117e   :  { %7109 = vmatprep.mubr.bf16.mxu1 %v2947_v47 }
0x117f   :  { %v2914_v49 = vpop.f32.mrf.mxu0  ;;  %7110 = vmatmul.mubr.bf16.gmra.mxu1 %v2948_v58 }
0x1180   :  { %7158 = vmatpush3.bf16.msra.mxu1 %v8770_v42 }
0x1181   :  { %v7084_v7 = vpop.f32.mrf.mxu0  ;;  %7159 = vmatprep.subr.bf16.mxu1 %v8774_v23 }
0x1182   :  { %v2950_v9 = vpack.c.bf16 %v7084_v7, %v7083_v8 }
0x1183   :  { %v2917_v55 = vpop.f32.mrf.mxu0 }
0x1184   :  { %v2949_v48 = vpack.c.bf16 %v2917_v55, %v2914_v49  ;;  %7160 = vmatpush3.bf16.msra.mxu1 %v8774_v23 }
0x1185   :  { %v7087_v11 = vpop.f32.mrf.mxu0  ;;  %7161 = vmatprep.subr.bf16.mxu1 %v8778_v4 }
0x1186   :  { %7113 = vmatprep.mubr.bf16.mxu1 %v2949_v48 }
0x1187   :  { %v2930_v12 = vpop.f32.mrf.mxu0  ;;  %7114 = vmatmul.mubr.bf16.gmra.mxu1 %v2950_v9 }
0x1188   :  { %7162 = vmatpush3.bf16.msra.mxu1 %v8778_v4 }
0x1189   :  { %v7088_v35 = vpop.f32.mrf.mxu0  ;;  %7163 = vmatprep.subr.bf16.mxu1 %v8782_v41 }
0x118a   :  { %v2952_v51 = vpack.c.bf16 %v7088_v35, %v7087_v11 }
0x118b   :  { %v2933_v6 = vpop.f32.mrf.mxu0 }
0x118c   :  { %v2951_v60 = vpack.c.bf16 %v2933_v6, %v2930_v12  ;;  %7164 = vmatpush3.bf16.msra.mxu1 %v8782_v41 }
0x118d   :  { %7165 = vmatprep.subr.bf16.mxu1 %v8786_v17 }
0x118e   :  { %7117 = vmatprep.mubr.bf16.mxu1 %v2951_v60 }
0x118f   :  { %7118 = vmatmul.mubr.bf16.gmra.mxu1 %v2952_v51 }
0x1190   :  { %7166 = vmatpush3.bf16.msra.mxu1 %v8786_v17 }
0x1191   :  { %7167 = vmatprep.subr.bf16.mxu1 %v8790_v25 }
0x1194   :  { %7168 = vmatpush3.bf16.msra.mxu1 %v8790_v25 }
0x1195   :  { %7217 = vmatprep.subr.bf16.mxu1 %v8723_v19 }
0x1237   :  { %v7107_v45 = vpop.f32.mrf.mxu1 }
0x1239   :  { %v2987_v15 = vpop.f32.mrf.mxu1 }
0x123b   :  { %v7108_v0 = vpop.f32.mrf.mxu1 }
0x123d   :  { %v2990_v22 = vpop.f32.mrf.mxu1 }
0x123f   :  { %v7111_v62 = vpop.f32.mrf.mxu1 }
0x1241   :  { %v3003_v10 = vpop.f32.mrf.mxu1 }
0x1243   :  { %v7112_v50 = vpop.f32.mrf.mxu1 }
0x1245   :  { %v3006_v43 = vpop.f32.mrf.mxu1 }
0x1247   :  { %v7115_v32 = vpop.f32.mrf.mxu1 }
0x1248   :  { %v3028_v55 = vadd.f32 %v7115_v32, %v8335_v34  ;;  %v3012_v32 = vadd.f32 %v7111_v62, %v8348_v63 }
0x1249   :  { %v3019_v37 = vpop.f32.mrf.mxu1 }
0x124a   :  { %v3060_v60 = vmax.f32 %v3028_v55, 0.0  ;;  %v3020_v51 = vadd.f32 %v3019_v37, %v8342_v3  ;;  %v2999_v37 = vadd.f32 %v7108_v0, %v8359_v54 }
0x124b   :  { %v7116_v21 = vpop.f32.mrf.mxu1 }
0x124c   :  { %v3031_v58 = vadd.f32 %v7116_v21, %v8329_v30  ;;  %v3015_v21 = vadd.f32 %v7112_v50, %v8345_v20  ;;  %v3053_v62 = vmax.f32 %v2999_v37, 0.0 }
0x124d   :  { %v3022_v36 = vpop.f32.mrf.mxu1 }
0x124e   :  { %v3061_v12 = vmax.f32 %v3031_v58, 0.0  ;;  %v3023_v35 = vadd.f32 %v3022_v36, %v8339_v40 }
0x124f   :  { %v7119_v18 = vpop.f32.mrf.mxu1 }
0x1250   :  { %v3044_v33 = vadd.f32 %v7119_v18, %v8322_v24  ;;  %v3071_v18 = vpack.c.bf16 %v3061_v12, %v3060_v60 }
0x1251   :  { %v3035_v39 = vpop.f32.mrf.mxu1 }
0x1252   :  { %v3036_v46 = vadd.f32 %v3035_v39, %v8324_v26  ;;  %v3064_v8 = vmax.f32 %v3044_v33, 0.0  ;;  %v3059_v39 = vmax.f32 %v3023_v35, 0.0  ;;  %v3058_v33 = vmax.f32 %v3020_v51, 0.0 }
0x1253   :  { %v7120_v44 = vpop.f32.mrf.mxu1 }
0x1254   :  { %v3047_v38 = vadd.f32 %v7120_v44, %v8326_v27  ;;  %v3062_v48 = vmax.f32 %v3036_v46, 0.0  ;;  %v3057_v44 = vmax.f32 %v3015_v21, 0.0  ;;  %v3007_v46 = vadd.f32 %v3006_v43, %v8351_v61 }
0x1255   :  { %v3038_v47 = vpop.f32.mrf.mxu1  ;;  %v3070_v36 = vpack.c.bf16 %v3059_v39, %v3058_v33 }
0x1256   :  { %v3065_v49 = vmax.f32 %v3047_v38, 0.0  ;;  %v3039_v7 = vadd.f32 %v3038_v47, %v8331_v31  ;;  %v3056_v38 = vmax.f32 %v3012_v32, 0.0  ;;  %v3004_v47 = vadd.f32 %v3003_v10, %v8355_v56 }
0x1257   :  { %v3055_v50 = vmax.f32 %v3007_v46, 0.0 }
0x1258   :  { %v3073_v9 = vpack.c.bf16 %v3065_v49, %v3064_v8  ;;  %v3063_v11 = vmax.f32 %v3039_v7, 0.0  ;;  %v3069_v58 = vpack.c.bf16 %v3057_v44, %v3056_v38  ;;  %v2996_v8 = vadd.f32 %v7107_v45, %v8363_v59 }
0x1259   :  { %v3054_v49 = vmax.f32 %v3004_v47, 0.0  ;;  %v2991_v7 = vadd.f32 %v2990_v22, %v8368_v16 }
0x125a   :  { %7121 = vmatprep.subr.bf16.mxu0 %v3073_v9  ;;  %v3072_v6 = vpack.c.bf16 %v3063_v11, %v3062_v48  ;;  %v3052_v43 = vmax.f32 %v2996_v8, 0.0  ;;  %v2988_v48 = vadd.f32 %v2987_v15, %v8373_v13 }
0x125b   :  { %7122 = vmatpush3.bf16.msra.mxu0 %v3073_v9  ;;  %v3068_v55 = vpack.c.bf16 %v3055_v50, %v3054_v49  ;;  %v3051_v9 = vmax.f32 %v2991_v7, 0.0 }
0x125c   :  { %7123 = vmatprep.subr.bf16.mxu0 %v3072_v6  ;;  %v3067_v10 = vpack.c.bf16 %v3053_v62, %v3052_v43  ;;  %v3050_v0 = vmax.f32 %v2988_v48, 0.0 }
0x125e   :  { %v3066_v11 = vpack.c.bf16 %v3051_v9, %v3050_v0 }
0x125f   :  { %7124 = vmatpush3.bf16.msra.mxu0 %v3072_v6 }
0x1260   :  { %7125 = vmatprep.subr.bf16.mxu0 %v3071_v18 }
0x1263   :  { %7126 = vmatpush3.bf16.msra.mxu0 %v3071_v18 }
0x1264   :  { %7127 = vmatprep.subr.bf16.mxu0 %v3070_v36 }
0x1267   :  { %7128 = vmatpush3.bf16.msra.mxu0 %v3070_v36 }
0x1268   :  { %7129 = vmatprep.subr.bf16.mxu0 %v3069_v58 }
0x126b   :  { %7130 = vmatpush3.bf16.msra.mxu0 %v3069_v58 }
0x126c   :  { %7131 = vmatprep.subr.bf16.mxu0 %v3068_v55 }
0x126f   :  { %7132 = vmatpush3.bf16.msra.mxu0 %v3068_v55 }
0x1270   :  { %7133 = vmatprep.subr.bf16.mxu0 %v3067_v10 }
0x1273   :  { %7134 = vmatpush3.bf16.msra.mxu0 %v3067_v10 }
0x1274   :  { %7135 = vmatprep.subr.bf16.mxu0 %v3066_v11 }
0x1277   :  { %7136 = vmatpush3.bf16.msra.mxu0 %v3066_v11 }
0x127a   :  { %7138 = vmatmul.mubr.bf16.vlgmr.msra.gmra.mxu0 %v8678_v52 }
0x127b   :  { %7141 = vmatprep.mubr.bf16.mxu0 %v8684_v53 }
0x1282   :  { %7142 = vmatmul.mubr.bf16.gmra.mxu0 %v8690_v1 }
0x1283   :  { %7145 = vmatprep.mubr.bf16.mxu0 %v8696_v5 }
0x128a   :  { %7146 = vmatmul.mubr.bf16.gmra.mxu0 %v8702_v57 }
0x128b   :  { %7149 = vmatprep.mubr.bf16.mxu0 %v8708_v28 }
0x1292   :  { %7150 = vmatmul.mubr.bf16.gmra.mxu0 %v8714_v2 }
0x1293   :  { %7201 = vmatprep.mubr.bf16.mxu0 %v8720_v29 }
0x133a   :  { %v7139_v45 = vpop.f32.mrf.mxu0 }
0x133c   :  { %v3108_v15 = vpop.f32.mrf.mxu0 }
0x133e   :  { %v7140_v22 = vpop.f32.mrf.mxu0 }
0x133f   :  { %v3172_v52 = vpack.c.bf16 %v7140_v22, %v7139_v45 }
0x1340   :  { %v3111_v12 = vpop.f32.mrf.mxu0 }
0x1341   :  { %v3171_v35 = vpack.c.bf16 %v3111_v12, %v3108_v15 }
0x1342   :  { %v7143_v6 = vpop.f32.mrf.mxu0 }
0x1343   :  { %7169 = vmatprep.mubr.bf16.mxu1 %v3171_v35 }
0x1344   :  { %v3124_v53 = vpop.f32.mrf.mxu0  ;;  %7170 = vmatmul.mubr.bf16.vlgmr.msra.gmra.mxu1 %v3172_v52 }
0x1345   :  { %7218 = vmatpush3.bf16.msra.mxu1 %v8723_v19 }
0x1346   :  { %v7144_v1 = vpop.f32.mrf.mxu0  ;;  %7219 = vmatprep.subr.bf16.mxu1 %v8766_v14 }
0x1347   :  { %v3174_v28 = vpack.c.bf16 %v7144_v1, %v7143_v6 }
0x1348   :  { %v3127_v5 = vpop.f32.mrf.mxu0 }
0x1349   :  { %v3173_v57 = vpack.c.bf16 %v3127_v5, %v3124_v53  ;;  %7220 = vmatpush3.bf16.msra.mxu1 %v8766_v14 }
0x134a   :  { %v7147_v2 = vpop.f32.mrf.mxu0  ;;  %7221 = vmatprep.subr.bf16.mxu1 %v8770_v42 }
0x134b   :  { %7173 = vmatprep.mubr.bf16.mxu1 %v3173_v57 }
0x134c   :  { %v3140_v29 = vpop.f32.mrf.mxu0  ;;  %7174 = vmatmul.mubr.bf16.gmra.mxu1 %v3174_v28 }
0x134d   :  { %7222 = vmatpush3.bf16.msra.mxu1 %v8770_v42 }
0x134e   :  { %v7148_v60 = vpop.f32.mrf.mxu0  ;;  %7223 = vmatprep.subr.bf16.mxu1 %v8774_v23 }
0x134f   :  { %v3176_v18 = vpack.c.bf16 %v7148_v60, %v7147_v2 }
0x1350   :  { %v3143_v51 = vpop.f32.mrf.mxu0 }
0x1351   :  { %v3175_v21 = vpack.c.bf16 %v3143_v51, %v3140_v29  ;;  %7224 = vmatpush3.bf16.msra.mxu1 %v8774_v23 }
0x1352   :  { %v7151_v39 = vpop.f32.mrf.mxu0  ;;  %7225 = vmatprep.subr.bf16.mxu1 %v8778_v4 }
0x1353   :  { %7177 = vmatprep.mubr.bf16.mxu1 %v3175_v21 }
0x1354   :  { %v3156_v32 = vpop.f32.mrf.mxu0  ;;  %7178 = vmatmul.mubr.bf16.gmra.mxu1 %v3176_v18 }
0x1355   :  { %7226 = vmatpush3.bf16.msra.mxu1 %v8778_v4 }
0x1356   :  { %v7152_v33 = vpop.f32.mrf.mxu0  ;;  %7227 = vmatprep.subr.bf16.mxu1 %v8782_v41 }
0x1357   :  { %v3178_v36 = vpack.c.bf16 %v7152_v33, %v7151_v39 }
0x1358   :  { %v3159_v44 = vpop.f32.mrf.mxu0 }
0x1359   :  { %v3177_v46 = vpack.c.bf16 %v3159_v44, %v3156_v32  ;;  %7228 = vmatpush3.bf16.msra.mxu1 %v8782_v41 }
0x135a   :  { %7229 = vmatprep.subr.bf16.mxu1 %v8786_v17 }
0x135b   :  { %7181 = vmatprep.mubr.bf16.mxu1 %v3177_v46 }
0x135c   :  { %7182 = vmatmul.mubr.bf16.gmra.mxu1 %v3178_v36 }
0x135d   :  { %7230 = vmatpush3.bf16.msra.mxu1 %v8786_v17 }
0x135e   :  { %7231 = vmatprep.subr.bf16.mxu1 %v8790_v25 }
0x1361   :  { %7232 = vmatpush3.bf16.msra.mxu1 %v8790_v25 }
0x1362   :  { %7281 = vmatprep.subr.bf16.mxu1 %v8723_v19 }
0x1404   :  { %v7171_v38 = vpop.f32.mrf.mxu1 }
0x1406   :  { %v3213_v47 = vpop.f32.mrf.mxu1 }
0x1408   :  { %v7172_v37 = vpop.f32.mrf.mxu1 }
0x140a   :  { %v3216_v58 = vpop.f32.mrf.mxu1 }
0x140c   :  { %v7175_v50 = vpop.f32.mrf.mxu1 }
0x140d   :  { %v3238_v39 = vadd.f32 %v7175_v50, %v8348_v63 }
0x140e   :  { %v3229_v8 = vpop.f32.mrf.mxu1 }
0x140f   :  { %v3282_v36 = vmax.f32 %v3238_v39, 0.0 }
0x1410   :  { %v7176_v49 = vpop.f32.mrf.mxu1 }
0x1411   :  { %v3241_v51 = vadd.f32 %v7176_v49, %v8345_v20 }
0x1412   :  { %v3232_v62 = vpop.f32.mrf.mxu1 }
0x1413   :  { %v3283_v33 = vmax.f32 %v3241_v51, 0.0  ;;  %v3233_v44 = vadd.f32 %v3232_v62, %v8351_v61 }
0x1414   :  { %v7179_v7 = vpop.f32.mrf.mxu1 }
0x1415   :  { %v3254_v6 = vadd.f32 %v7179_v7, %v8335_v34  ;;  %v3230_v7 = vadd.f32 %v3229_v8, %v8355_v56  ;;  %v3281_v49 = vmax.f32 %v3233_v44, 0.0 }
0x1416   :  { %v3245_v55 = vpop.f32.mrf.mxu1 }
0x1417   :  { %v3286_v29 = vmax.f32 %v3254_v6, 0.0  ;;  %v3246_v60 = vadd.f32 %v3245_v55, %v8342_v3  ;;  %v3225_v55 = vadd.f32 %v7172_v37, %v8359_v54 }
0x1418   :  { %v7180_v43 = vpop.f32.mrf.mxu1 }
0x1419   :  { %v3257_v22 = vadd.f32 %v7180_v43, %v8329_v30  ;;  %v3284_v32 = vmax.f32 %v3246_v60, 0.0  ;;  %v3295_v43 = vpack.c.bf16 %v3283_v33, %v3282_v36  ;;  %v3279_v50 = vmax.f32 %v3225_v55, 0.0  ;;  %v8939_v60 = vld [vmem:[#allocation2 + $0x38] sm:$0xff]  }
0x141a   :  { %v3248_v48 = vpop.f32.mrf.mxu1 }
0x141b   :  { %v3287_v57 = vmax.f32 %v3257_v22, 0.0  ;;  %v3249_v28 = vadd.f32 %v3248_v48, %v8339_v40  ;;  %v3222_v48 = vadd.f32 %v7171_v38, %v8363_v59  ;;  %v8894_v38 = vld [vmem:[%s9359_s2 + $0x8] sm:$0xff]  }
0x141c   :  { %v7183_v10 = vpop.f32.mrf.mxu1  ;;  %v8918_v22 = vld [vmem:[%s9359_s2 + $0x28] sm:$0xff]  }
0x141d   :  { %v3270_v0 = vadd.f32 %v7183_v10, %v8322_v24  ;;  %v3297_v21 = vpack.c.bf16 %v3287_v57, %v3286_v29  ;;  %v3285_v18 = vmax.f32 %v3249_v28, 0.0  ;;  %v3280_v10 = vmax.f32 %v3230_v7, 0.0 }
0x141e   :  { %v3261_v9 = vpop.f32.mrf.mxu1  ;;  %v3278_v62 = vmax.f32 %v3222_v48, 0.0 }
0x141f   :  { %v3262_v45 = vadd.f32 %v3261_v9, %v8324_v26  ;;  %v3290_v12 = vmax.f32 %v3270_v0, 0.0  ;;  %v3296_v46 = vpack.c.bf16 %v3285_v18, %v3284_v32  ;;  %v3217_v9 = vadd.f32 %v3216_v58, %v8368_v16  ;;  %v8906_v58 = vld [vmem:[%s9359_s2 + $0x18] sm:$0xff]  }
0x1420   :  { %v7184_v11 = vpop.f32.mrf.mxu1  ;;  %v3294_v0 = vpack.c.bf16 %v3281_v49, %v3280_v10  ;;  %v3293_v8 = vpack.c.bf16 %v3279_v50, %v3278_v62 }
0x1421   :  { %v3273_v19 = vadd.f32 %v7184_v11, %v8326_v27  ;;  %v3288_v53 = vmax.f32 %v3262_v45, 0.0  ;;  %v3214_v11 = vadd.f32 %v3213_v47, %v8373_v13  ;;  %v3277_v45 = vmax.f32 %v3217_v9, 0.0  ;;  %v8900_v47 = vld [vmem:[%s9359_s2 + $0x10] sm:$0xff]  }
0x1422   :  { %v3264_v15 = vpop.f32.mrf.mxu1 }
0x1423   :  { %v3291_v35 = vmax.f32 %v3273_v19, 0.0  ;;  %v3265_v52 = vadd.f32 %v3264_v15, %v8331_v31  ;;  %v3276_v37 = vmax.f32 %v3214_v11, 0.0  ;;  %v8912_v15 = vld [vmem:[%s9359_s2 + $0x20] sm:$0xff]  }
0x1425   :  { %v3299_v1 = vpack.c.bf16 %v3291_v35, %v3290_v12  ;;  %v3289_v5 = vmax.f32 %v3265_v52, 0.0  ;;  %v3292_v19 = vpack.c.bf16 %v3277_v45, %v3276_v37  ;;  %v8924_v12 = vld [vmem:[%s9359_s2 + $0x30] sm:$0xff]   ;;  %v8930_v35 = vld [vmem:[%s9359_s2 + $0x38] sm:$0xff]   ;;  %v8936_v52 = vld [vmem:[%s9359_s2] sm:$0xff]  }
0x1427   :  { %7185 = vmatprep.subr.bf16.mxu0 %v3299_v1  ;;  %v3298_v2 = vpack.c.bf16 %v3289_v5, %v3288_v53 }
0x1428   :  { %7186 = vmatpush3.bf16.msra.mxu0 %v3299_v1 }
0x1429   :  { %7187 = vmatprep.subr.bf16.mxu0 %v3298_v2 }
0x142c   :  { %7188 = vmatpush3.bf16.msra.mxu0 %v3298_v2 }
0x142d   :  { %7189 = vmatprep.subr.bf16.mxu0 %v3297_v21 }
0x1430   :  { %7190 = vmatpush3.bf16.msra.mxu0 %v3297_v21 }
0x1431   :  { %7191 = vmatprep.subr.bf16.mxu0 %v3296_v46 }
0x1434   :  { %7192 = vmatpush3.bf16.msra.mxu0 %v3296_v46 }
0x1435   :  { %7193 = vmatprep.subr.bf16.mxu0 %v3295_v43 }
0x1438   :  { %7194 = vmatpush3.bf16.msra.mxu0 %v3295_v43 }
0x1439   :  { %7195 = vmatprep.subr.bf16.mxu0 %v3294_v0 }
0x143c   :  { %7196 = vmatpush3.bf16.msra.mxu0 %v3294_v0 }
0x143d   :  { %7197 = vmatprep.subr.bf16.mxu0 %v3293_v8 }
0x1440   :  { %7198 = vmatpush3.bf16.msra.mxu0 %v3293_v8 }
0x1441   :  { %7199 = vmatprep.subr.bf16.mxu0 %v3292_v19 }
0x1444   :  { %7200 = vmatpush3.bf16.msra.mxu0 %v3292_v19 }
0x1447   :  { %7202 = vmatmul.mubr.bf16.vlgmr.msra.gmra.mxu0 %v8894_v38 }
0x1448   :  { %7205 = vmatprep.mubr.bf16.mxu0 %v8900_v47 }
0x144f   :  { %7206 = vmatmul.mubr.bf16.gmra.mxu0 %v8906_v58 }
0x1450   :  { %7209 = vmatprep.mubr.bf16.mxu0 %v8912_v15 }
0x1457   :  { %7210 = vmatmul.mubr.bf16.gmra.mxu0 %v8918_v22 }
0x1458   :  { %7213 = vmatprep.mubr.bf16.mxu0 %v8924_v12 }
0x145f   :  { %7214 = vmatmul.mubr.bf16.gmra.mxu0 %v8930_v35 }
0x1460   :  { %7265 = vmatprep.mubr.bf16.mxu0 %v8936_v52 }
0x1507   :  { %v7203_v6 = vpop.f32.mrf.mxu0 }
0x1509   :  { %v3334_v53 = vpop.f32.mrf.mxu0 }
0x150b   :  { %v7204_v1 = vpop.f32.mrf.mxu0 }
0x150c   :  { %v3398_v28 = vpack.c.bf16 %v7204_v1, %v7203_v6 }
0x150d   :  { %v3337_v5 = vpop.f32.mrf.mxu0 }
0x150e   :  { %v3397_v57 = vpack.c.bf16 %v3337_v5, %v3334_v53 }
0x150f   :  { %v7207_v2 = vpop.f32.mrf.mxu0 }
0x1510   :  { %7233 = vmatprep.mubr.bf16.mxu1 %v3397_v57 }
0x1511   :  { %v3350_v29 = vpop.f32.mrf.mxu0  ;;  %7234 = vmatmul.mubr.bf16.vlgmr.msra.gmra.mxu1 %v3398_v28 }
0x1512   :  { %7282 = vmatpush3.bf16.msra.mxu1 %v8939_v60 }
0x1513   :  { %v7208_v51 = vpop.f32.mrf.mxu0  ;;  %7283 = vmatprep.subr.bf16.mxu1 %v8766_v14 }
0x1514   :  { %v3400_v39 = vpack.c.bf16 %v7208_v51, %v7207_v2 }
0x1515   :  { %v3353_v21 = vpop.f32.mrf.mxu0 }
0x1516   :  { %v3399_v18 = vpack.c.bf16 %v3353_v21, %v3350_v29  ;;  %7284 = vmatpush3.bf16.msra.mxu1 %v8766_v14 }
0x1517   :  { %v7211_v32 = vpop.f32.mrf.mxu0  ;;  %7285 = vmatprep.subr.bf16.mxu1 %v8770_v42 }
0x1518   :  { %7237 = vmatprep.mubr.bf16.mxu1 %v3399_v18 }
0x1519   :  { %v3366_v33 = vpop.f32.mrf.mxu0  ;;  %7238 = vmatmul.mubr.bf16.gmra.mxu1 %v3400_v39 }
0x151a   :  { %7286 = vmatpush3.bf16.msra.mxu1 %v8770_v42 }
0x151b   :  { %v7212_v44 = vpop.f32.mrf.mxu0  ;;  %7287 = vmatprep.subr.bf16.mxu1 %v8774_v23 }
0x151c   :  { %v3402_v7 = vpack.c.bf16 %v7212_v44, %v7211_v32 }
0x151d   :  { %v3369_v46 = vpop.f32.mrf.mxu0 }
0x151e   :  { %v3401_v36 = vpack.c.bf16 %v3369_v46, %v3366_v33  ;;  %7288 = vmatpush3.bf16.msra.mxu1 %v8774_v23 }
0x151f   :  { %v7215_v55 = vpop.f32.mrf.mxu0  ;;  %7289 = vmatprep.subr.bf16.mxu1 %v8778_v4 }
0x1520   :  { %7241 = vmatprep.mubr.bf16.mxu1 %v3401_v36 }
0x1521   :  { %v3382_v14 = vpop.f32.mrf.mxu0  ;;  %7242 = vmatmul.mubr.bf16.gmra.mxu1 %v3402_v7 }
0x1522   :  { %7290 = vmatpush3.bf16.msra.mxu1 %v8778_v4 }
0x1523   :  { %v7216_v43 = vpop.f32.mrf.mxu0  ;;  %7291 = vmatprep.subr.bf16.mxu1 %v8782_v41 }
0x1524   :  { %v3404_v48 = vpack.c.bf16 %v7216_v43, %v7215_v55 }
0x1525   :  { %v3385_v42 = vpop.f32.mrf.mxu0 }
0x1526   :  { %v3403_v49 = vpack.c.bf16 %v3385_v42, %v3382_v14  ;;  %7292 = vmatpush3.bf16.msra.mxu1 %v8782_v41 }
0x1527   :  { %7293 = vmatprep.subr.bf16.mxu1 %v8786_v17 }
0x1528   :  { %7245 = vmatprep.mubr.bf16.mxu1 %v3403_v49 }
0x1529   :  { %7246 = vmatmul.mubr.bf16.gmra.mxu1 %v3404_v48 }
0x152a   :  { %7294 = vmatpush3.bf16.msra.mxu1 %v8786_v17 }
0x152b   :  { %7295 = vmatprep.subr.bf16.mxu1 %v8790_v25 }
0x152e   :  { %7296 = vmatpush3.bf16.msra.mxu1 %v8790_v25 }
0x152f   :  { %7345 = vmatprep.subr.bf16.mxu1 %v8939_v60 }
0x15d1   :  { %v7235_v23 = vpop.f32.mrf.mxu1 }
0x15d3   :  { %v3439_v4 = vpop.f32.mrf.mxu1 }
0x15d5   :  { %v7236_v10 = vpop.f32.mrf.mxu1 }
0x15d7   :  { %v3442_v50 = vpop.f32.mrf.mxu1 }
0x15d9   :  { %v7239_v9 = vpop.f32.mrf.mxu1 }
0x15da   :  { %v3464_v43 = vadd.f32 %v7239_v9, %v8348_v63 }
0x15db   :  { %v3455_v0 = vpop.f32.mrf.mxu1 }
0x15dd   :  { %v7240_v41 = vpop.f32.mrf.mxu1 }
0x15de   :  { %v3467_v7 = vadd.f32 %v7240_v41, %v8345_v20 }
0x15df   :  { %v3458_v62 = vpop.f32.mrf.mxu1 }
0x15e0   :  { %v3509_v49 = vmax.f32 %v3467_v7, 0.0  ;;  %v3459_v48 = vadd.f32 %v3458_v62, %v8351_v61 }
0x15e1   :  { %v7243_v11 = vpop.f32.mrf.mxu1 }
0x15e2   :  { %v3480_v51 = vadd.f32 %v7243_v11, %v8335_v34  ;;  %v3507_v41 = vmax.f32 %v3459_v48, 0.0 }
0x15e3   :  { %v3471_v8 = vpop.f32.mrf.mxu1 }
0x15e4   :  { %v3512_v46 = vmax.f32 %v3480_v51, 0.0  ;;  %v3472_v36 = vadd.f32 %v3471_v8, %v8342_v3  ;;  %v3451_v8 = vadd.f32 %v7236_v10, %v8359_v54 }
0x15e5   :  { %v7244_v45 = vpop.f32.mrf.mxu1 }
0x15e6   :  { %v3483_v57 = vadd.f32 %v7244_v45, %v8329_v30  ;;  %v3510_v42 = vmax.f32 %v3472_v36, 0.0  ;;  %v3508_v45 = vmax.f32 %v3464_v43, 0.0  ;;  %v3505_v9 = vmax.f32 %v3451_v8, 0.0  ;;  %v8986_v36 = vld [vmem:[#allocation2 + $0x28] sm:$0xff]   ;;  %v8998_v8 = vld [vmem:[#allocation2 + $0x10] sm:$0xff]  }
0x15e7   :  { %v3474_v37 = vpop.f32.mrf.mxu1 }
0x15e8   :  { %v3513_v32 = vmax.f32 %v3483_v57, 0.0  ;;  %v3475_v33 = vadd.f32 %v3474_v37, %v8339_v40  ;;  %v3456_v37 = vadd.f32 %v3455_v0, %v8355_v56 }
0x15e9   :  { %v7247_v19 = vpop.f32.mrf.mxu1 }
0x15ea   :  { %v3496_v6 = vadd.f32 %v7247_v19, %v8322_v24  ;;  %v3523_v55 = vpack.c.bf16 %v3513_v32, %v3512_v46  ;;  %v3511_v14 = vmax.f32 %v3475_v33, 0.0  ;;  %v3521_v19 = vpack.c.bf16 %v3509_v49, %v3508_v45 }
0x15eb   :  { %v3487_v17 = vpop.f32.mrf.mxu1 }
0x15ec   :  { %v3488_v25 = vadd.f32 %v3487_v17, %v8324_v26  ;;  %v3516_v28 = vmax.f32 %v3496_v6, 0.0  ;;  %v3522_v11 = vpack.c.bf16 %v3511_v14, %v3510_v42  ;;  %v3448_v17 = vadd.f32 %v7235_v23, %v8363_v59  ;;  %v8990_v14 = vld [vmem:[#allocation2 + $0x20] sm:$0xff]  }
0x15ed   :  { %v7248_v53 = vpop.f32.mrf.mxu1  ;;  %v3506_v6 = vmax.f32 %v3456_v37, 0.0 }
0x15ee   :  { %v3499_v1 = vadd.f32 %v7248_v53, %v8326_v27  ;;  %v3514_v21 = vmax.f32 %v3488_v25, 0.0  ;;  %v3443_v53 = vadd.f32 %v3442_v50, %v8368_v16  ;;  %v3504_v62 = vmax.f32 %v3448_v17, 0.0 }
0x15ef   :  { %v3490_v5 = vpop.f32.mrf.mxu1  ;;  %v3520_v25 = vpack.c.bf16 %v3507_v41, %v3506_v6  ;;  %v9002_v6 = vld [vmem:[#allocation2 + $0x8] sm:$0xff]  }
0x15f0   :  { %v3517_v2 = vmax.f32 %v3499_v1, 0.0  ;;  %v3491_v29 = vadd.f32 %v3490_v5, %v8331_v31  ;;  %v3440_v1 = vadd.f32 %v3439_v4, %v8373_v13  ;;  %v3519_v0 = vpack.c.bf16 %v3505_v9, %v3504_v62  ;;  %v9006_v9 = vld [vmem:[#allocation2] sm:$0xff]  }
0x15f1   :  { %v3503_v5 = vmax.f32 %v3443_v53, 0.0 }
0x15f2   :  { %v3525_v18 = vpack.c.bf16 %v3517_v2, %v3516_v28  ;;  %v3515_v39 = vmax.f32 %v3491_v29, 0.0  ;;  %v3502_v10 = vmax.f32 %v3440_v1, 0.0 }
0x15f4   :  { %7249 = vmatprep.subr.bf16.mxu0 %v3525_v18  ;;  %v3524_v44 = vpack.c.bf16 %v3515_v39, %v3514_v21  ;;  %v3518_v57 = vpack.c.bf16 %v3503_v5, %v3502_v10  ;;  %v8982_v39 = vld [vmem:[#allocation2 + $0x30] sm:$0xff]  }
0x15f5   :  { %7250 = vmatpush3.bf16.msra.mxu0 %v3525_v18 }
0x15f6   :  { %7251 = vmatprep.subr.bf16.mxu0 %v3524_v44 }
0x15f9   :  { %7252 = vmatpush3.bf16.msra.mxu0 %v3524_v44 }
0x15fa   :  { %7253 = vmatprep.subr.bf16.mxu0 %v3523_v55 }
0x15fd   :  { %7254 = vmatpush3.bf16.msra.mxu0 %v3523_v55 }
0x15fe   :  { %7255 = vmatprep.subr.bf16.mxu0 %v3522_v11 }
0x1601   :  { %7256 = vmatpush3.bf16.msra.mxu0 %v3522_v11  ;;  %v8994_v11 = vld [vmem:[#allocation2 + $0x18] sm:$0xff]  }
0x1602   :  { %7257 = vmatprep.subr.bf16.mxu0 %v3521_v19 }
0x1605   :  { %7258 = vmatpush3.bf16.msra.mxu0 %v3521_v19 }
0x1606   :  { %7259 = vmatprep.subr.bf16.mxu0 %v3520_v25 }
0x1609   :  { %7260 = vmatpush3.bf16.msra.mxu0 %v3520_v25 }
0x160a   :  { %7261 = vmatprep.subr.bf16.mxu0 %v3519_v0 }
0x160d   :  { %7262 = vmatpush3.bf16.msra.mxu0 %v3519_v0 }
0x160e   :  { %7263 = vmatprep.subr.bf16.mxu0 %v3518_v57 }
0x1611   :  { %7264 = vmatpush3.bf16.msra.mxu0 %v3518_v57 }
0x1614   :  { %7266 = vmatmul.mubr.bf16.vlgmr.msra.gmra.mxu0 %v8894_v38 }
0x1615   :  { %7269 = vmatprep.mubr.bf16.mxu0 %v8900_v47 }
0x161c   :  { %7270 = vmatmul.mubr.bf16.gmra.mxu0 %v8906_v58 }
0x161d   :  { %7273 = vmatprep.mubr.bf16.mxu0 %v8912_v15 }
0x1624   :  { %7274 = vmatmul.mubr.bf16.gmra.mxu0 %v8918_v22 }
0x1625   :  { %7277 = vmatprep.mubr.bf16.mxu0 %v8924_v12 }
0x162c   :  { %7278 = vmatmul.mubr.bf16.gmra.mxu0 %v8930_v35 }
0x162d   :  { %7329 = vmatprep.mubr.bf16.mxu0 %v8936_v52 }
0x16d4   :  { %v7267_v23 = vpop.f32.mrf.mxu0 }
0x16d6   :  { %v3560_v4 = vpop.f32.mrf.mxu0 }
0x16d8   :  { %v7268_v50 = vpop.f32.mrf.mxu0 }
0x16d9   :  { %v3624_v29 = vpack.c.bf16 %v7268_v50, %v7267_v23 }
0x16da   :  { %v3563_v28 = vpop.f32.mrf.mxu0 }
0x16db   :  { %v3623_v2 = vpack.c.bf16 %v3563_v28, %v3560_v4 }
0x16dc   :  { %v7271_v51 = vpop.f32.mrf.mxu0 }
0x16dd   :  { %7297 = vmatprep.mubr.bf16.mxu1 %v3623_v2 }
0x16de   :  { %v3576_v21 = vpop.f32.mrf.mxu0  ;;  %7298 = vmatmul.mubr.bf16.vlgmr.msra.gmra.mxu1 %v3624_v29 }
0x16df   :  { %7346 = vmatpush3.bf16.msra.mxu1 %v8939_v60 }
0x16e0   :  { %v7272_v18 = vpop.f32.mrf.mxu0  ;;  %7347 = vmatprep.subr.bf16.mxu1 %v8982_v39 }
0x16e1   :  { %v3626_v44 = vpack.c.bf16 %v7272_v18, %v7271_v51 }
0x16e2   :  { %v3579_v32 = vpop.f32.mrf.mxu0 }
0x16e3   :  { %v3625_v33 = vpack.c.bf16 %v3579_v32, %v3576_v21  ;;  %7348 = vmatpush3.bf16.msra.mxu1 %v8982_v39 }
0x16e4   :  { %v7275_v46 = vpop.f32.mrf.mxu0  ;;  %7349 = vmatprep.subr.bf16.mxu1 %v8986_v36 }
0x16e5   :  { %7301 = vmatprep.mubr.bf16.mxu1 %v3625_v33 }
0x16e6   :  { %v3592_v7 = vpop.f32.mrf.mxu0  ;;  %7302 = vmatmul.mubr.bf16.gmra.mxu1 %v3626_v44 }
0x16e7   :  { %7350 = vmatpush3.bf16.msra.mxu1 %v8986_v36 }
0x16e8   :  { %v7276_v55 = vpop.f32.mrf.mxu0  ;;  %7351 = vmatprep.subr.bf16.mxu1 %v8990_v14 }
0x16e9   :  { %v3628_v49 = vpack.c.bf16 %v7276_v55, %v7275_v46 }
0x16ea   :  { %v3595_v43 = vpop.f32.mrf.mxu0 }
0x16eb   :  { %v3627_v42 = vpack.c.bf16 %v3595_v43, %v3592_v7  ;;  %7352 = vmatpush3.bf16.msra.mxu1 %v8990_v14 }
0x16ec   :  { %v7279_v48 = vpop.f32.mrf.mxu0  ;;  %7353 = vmatprep.subr.bf16.mxu1 %v8994_v11 }
0x16ed   :  { %7305 = vmatprep.mubr.bf16.mxu1 %v3627_v42 }
0x16ee   :  { %v3608_v45 = vpop.f32.mrf.mxu0  ;;  %7306 = vmatmul.mubr.bf16.gmra.mxu1 %v3628_v49 }
0x16ef   :  { %7354 = vmatpush3.bf16.msra.mxu1 %v8994_v11 }
0x16f0   :  { %v7280_v37 = vpop.f32.mrf.mxu0  ;;  %7355 = vmatprep.subr.bf16.mxu1 %v8998_v8 }
0x16f1   :  { %v3630_v17 = vpack.c.bf16 %v7280_v37, %v7279_v48 }
0x16f2   :  { %v3611_v19 = vpop.f32.mrf.mxu0 }
0x16f3   :  { %v3629_v41 = vpack.c.bf16 %v3611_v19, %v3608_v45  ;;  %7356 = vmatpush3.bf16.msra.mxu1 %v8998_v8 }
0x16f4   :  { %7357 = vmatprep.subr.bf16.mxu1 %v9002_v6 }
0x16f5   :  { %7309 = vmatprep.mubr.bf16.mxu1 %v3629_v41 }
0x16f6   :  { %7310 = vmatmul.mubr.bf16.gmra.mxu1 %v3630_v17 }
0x16f7   :  { %7358 = vmatpush3.bf16.msra.mxu1 %v9002_v6 }
0x16f8   :  { %7359 = vmatprep.subr.bf16.mxu1 %v9006_v9 }
0x16fb   :  { %7360 = vmatpush3.bf16.msra.mxu1 %v9006_v9 }
0x16fc   :  { %7409 = vmatprep.subr.bf16.mxu1 %v8939_v60 }
0x179e   :  { %v7299_v53 = vpop.f32.mrf.mxu1 }
0x17a0   :  { %v3665_v25 = vpop.f32.mrf.mxu1 }
0x17a2   :  { %v7300_v62 = vpop.f32.mrf.mxu1 }
0x17a4   :  { %v3668_v1 = vpop.f32.mrf.mxu1 }
0x17a6   :  { %v7303_v0 = vpop.f32.mrf.mxu1 }
0x17a8   :  { %v3681_v5 = vpop.f32.mrf.mxu1 }
0x17aa   :  { %v7304_v10 = vpop.f32.mrf.mxu1 }
0x17ac   :  { %v3684_v57 = vpop.f32.mrf.mxu1 }
0x17ae   :  { %v7307_v23 = vpop.f32.mrf.mxu1 }
0x17af   :  { %v3706_v43 = vadd.f32 %v7307_v23, %v8335_v34  ;;  %v3690_v23 = vadd.f32 %v7303_v0, %v8348_v63 }
0x17b0   :  { %v3697_v4 = vpop.f32.mrf.mxu1 }
0x17b1   :  { %v3738_v41 = vmax.f32 %v3706_v43, 0.0  ;;  %v3698_v17 = vadd.f32 %v3697_v4, %v8342_v3  ;;  %v3677_v4 = vadd.f32 %v7300_v62, %v8359_v54 }
0x17b2   :  { %v7308_v50 = vpop.f32.mrf.mxu1 }
0x17b3   :  { %v3709_v44 = vadd.f32 %v7308_v50, %v8329_v30  ;;  %v3693_v50 = vadd.f32 %v7304_v10, %v8345_v20  ;;  %v3731_v0 = vmax.f32 %v3677_v4, 0.0 }
0x17b4   :  { %v3700_v28 = vpop.f32.mrf.mxu1 }
0x17b5   :  { %v3739_v45 = vmax.f32 %v3709_v44, 0.0  ;;  %v3701_v37 = vadd.f32 %v3700_v28, %v8339_v40 }
0x17b6   :  { %v7311_v2 = vpop.f32.mrf.mxu1 }
0x17b7   :  { %v3722_v51 = vadd.f32 %v7311_v2, %v8322_v24  ;;  %v3749_v2 = vpack.c.bf16 %v3739_v45, %v3738_v41 }
0x17b8   :  { %v3713_v29 = vpop.f32.mrf.mxu1 }
0x17b9   :  { %v3714_v18 = vadd.f32 %v3713_v29, %v8324_v26  ;;  %v3742_v46 = vmax.f32 %v3722_v51, 0.0  ;;  %v3737_v29 = vmax.f32 %v3701_v37, 0.0  ;;  %v3736_v51 = vmax.f32 %v3698_v17, 0.0 }
0x17ba   :  { %v7312_v21 = vpop.f32.mrf.mxu1 }
0x17bb   :  { %v3725_v32 = vadd.f32 %v7312_v21, %v8326_v27  ;;  %v3740_v42 = vmax.f32 %v3714_v18, 0.0  ;;  %v3735_v21 = vmax.f32 %v3693_v50, 0.0  ;;  %v3685_v18 = vadd.f32 %v3684_v57, %v8351_v61 }
0x17bc   :  { %v3716_v33 = vpop.f32.mrf.mxu1  ;;  %v3748_v28 = vpack.c.bf16 %v3737_v29, %v3736_v51 }
0x17bd   :  { %v3743_v7 = vmax.f32 %v3725_v32, 0.0  ;;  %v3717_v55 = vadd.f32 %v3716_v33, %v8331_v31  ;;  %v3734_v32 = vmax.f32 %v3690_v23, 0.0  ;;  %v3682_v33 = vadd.f32 %v3681_v5, %v8355_v56 }
0x17be   :  { %v3733_v10 = vmax.f32 %v3685_v18, 0.0 }
0x17bf   :  { %v3751_v49 = vpack.c.bf16 %v3743_v7, %v3742_v46  ;;  %v3741_v48 = vmax.f32 %v3717_v55, 0.0  ;;  %v3747_v44 = vpack.c.bf16 %v3735_v21, %v3734_v32  ;;  %v3674_v46 = vadd.f32 %v7299_v53, %v8363_v59 }
0x17c0   :  { %v3732_v7 = vmax.f32 %v3682_v33, 0.0  ;;  %v3669_v55 = vadd.f32 %v3668_v1, %v8368_v16 }
0x17c1   :  { %7313 = vmatprep.subr.bf16.mxu0 %v3751_v49  ;;  %v3750_v19 = vpack.c.bf16 %v3741_v48, %v3740_v42  ;;  %v3730_v57 = vmax.f32 %v3674_v46, 0.0  ;;  %v3666_v42 = vadd.f32 %v3665_v25, %v8373_v13 }
0x17c2   :  { %7314 = vmatpush3.bf16.msra.mxu0 %v3751_v49  ;;  %v3746_v43 = vpack.c.bf16 %v3733_v10, %v3732_v7  ;;  %v3729_v49 = vmax.f32 %v3669_v55, 0.0 }
0x17c3   :  { %7315 = vmatprep.subr.bf16.mxu0 %v3750_v19  ;;  %v3745_v5 = vpack.c.bf16 %v3731_v0, %v3730_v57  ;;  %v3728_v62 = vmax.f32 %v3666_v42, 0.0 }
0x17c5   :  { %v3744_v48 = vpack.c.bf16 %v3729_v49, %v3728_v62 }
0x17c6   :  { %7316 = vmatpush3.bf16.msra.mxu0 %v3750_v19 }
0x17c7   :  { %7317 = vmatprep.subr.bf16.mxu0 %v3749_v2 }
0x17ca   :  { %7318 = vmatpush3.bf16.msra.mxu0 %v3749_v2 }
0x17cb   :  { %7319 = vmatprep.subr.bf16.mxu0 %v3748_v28 }
0x17ce   :  { %7320 = vmatpush3.bf16.msra.mxu0 %v3748_v28 }
0x17cf   :  { %7321 = vmatprep.subr.bf16.mxu0 %v3747_v44 }
0x17d2   :  { %7322 = vmatpush3.bf16.msra.mxu0 %v3747_v44 }
0x17d3   :  { %7323 = vmatprep.subr.bf16.mxu0 %v3746_v43 }
0x17d6   :  { %7324 = vmatpush3.bf16.msra.mxu0 %v3746_v43 }
0x17d7   :  { %7325 = vmatprep.subr.bf16.mxu0 %v3745_v5 }
0x17da   :  { %7326 = vmatpush3.bf16.msra.mxu0 %v3745_v5 }
0x17db   :  { %7327 = vmatprep.subr.bf16.mxu0 %v3744_v48 }
0x17de   :  { %7328 = vmatpush3.bf16.msra.mxu0 %v3744_v48 }
0x17e1   :  { %7330 = vmatmul.mubr.bf16.vlgmr.msra.gmra.mxu0 %v8894_v38 }
0x17e2   :  { %7333 = vmatprep.mubr.bf16.mxu0 %v8900_v47 }
0x17e9   :  { %7334 = vmatmul.mubr.bf16.gmra.mxu0 %v8906_v58 }
0x17ea   :  { %7337 = vmatprep.mubr.bf16.mxu0 %v8912_v15 }
0x17f1   :  { %7338 = vmatmul.mubr.bf16.gmra.mxu0 %v8918_v22 }
0x17f2   :  { %7341 = vmatprep.mubr.bf16.mxu0 %v8924_v12 }
0x17f9   :  { %7342 = vmatmul.mubr.bf16.gmra.mxu0 %v8930_v35 }
0x17fa   :  { %7393 = vmatprep.mubr.bf16.mxu0 %v8936_v52 }
0x18a1   :  { %v7331_v53 = vpop.f32.mrf.mxu0 }
0x18a3   :  { %v3786_v25 = vpop.f32.mrf.mxu0 }
0x18a5   :  { %v7332_v1 = vpop.f32.mrf.mxu0 }
0x18a6   :  { %v3850_v19 = vpack.c.bf16 %v7332_v1, %v7331_v53 }
0x18a7   :  { %v3789_v45 = vpop.f32.mrf.mxu0 }
0x18a8   :  { %v3849_v37 = vpack.c.bf16 %v3789_v45, %v3786_v25 }
0x18a9   :  { %v7335_v41 = vpop.f32.mrf.mxu0 }
0x18aa   :  { %7361 = vmatprep.mubr.bf16.mxu1 %v3849_v37 }
0x18ab   :  { %v3802_v17 = vpop.f32.mrf.mxu0  ;;  %7362 = vmatmul.mubr.bf16.vlgmr.msra.gmra.mxu1 %v3850_v19 }
0x18ac   :  { %7410 = vmatpush3.bf16.msra.mxu1 %v8939_v60 }
0x18ad   :  { %v7336_v50 = vpop.f32.mrf.mxu0  ;;  %7411 = vmatprep.subr.bf16.mxu1 %v8982_v39 }
0x18ae   :  { %v3852_v23 = vpack.c.bf16 %v7336_v50, %v7335_v41 }
0x18af   :  { %v3805_v2 = vpop.f32.mrf.mxu0 }
0x18b0   :  { %v3851_v29 = vpack.c.bf16 %v3805_v2, %v3802_v17  ;;  %7412 = vmatpush3.bf16.msra.mxu1 %v8982_v39 }
0x18b1   :  { %v7339_v51 = vpop.f32.mrf.mxu0  ;;  %7413 = vmatprep.subr.bf16.mxu1 %v8986_v36 }
0x18b2   :  { %7365 = vmatprep.mubr.bf16.mxu1 %v3851_v29 }
0x18b3   :  { %v3818_v21 = vpop.f32.mrf.mxu0  ;;  %7366 = vmatmul.mubr.bf16.gmra.mxu1 %v3852_v23 }
0x18b4   :  { %7414 = vmatpush3.bf16.msra.mxu1 %v8986_v36 }
0x18b5   :  { %v7340_v18 = vpop.f32.mrf.mxu0  ;;  %7415 = vmatprep.subr.bf16.mxu1 %v8990_v14 }
0x18b6   :  { %v3854_v33 = vpack.c.bf16 %v7340_v18, %v7339_v51 }
0x18b7   :  { %v3821_v28 = vpop.f32.mrf.mxu0 }
0x18b8   :  { %v3853_v32 = vpack.c.bf16 %v3821_v28, %v3818_v21  ;;  %7416 = vmatpush3.bf16.msra.mxu1 %v8990_v14 }
0x18b9   :  { %v7343_v4 = vpop.f32.mrf.mxu0  ;;  %7417 = vmatprep.subr.bf16.mxu1 %v8994_v11 }
0x18ba   :  { %7369 = vmatprep.mubr.bf16.mxu1 %v3853_v32 }
0x18bb   :  { %v3834_v44 = vpop.f32.mrf.mxu0  ;;  %7370 = vmatmul.mubr.bf16.gmra.mxu1 %v3854_v33 }
0x18bc   :  { %7418 = vmatpush3.bf16.msra.mxu1 %v8994_v11 }
0x18bd   :  { %v7344_v10 = vpop.f32.mrf.mxu0  ;;  %7419 = vmatprep.subr.bf16.mxu1 %v8998_v8 }
0x18be   :  { %v3856_v0 = vpack.c.bf16 %v7344_v10, %v7343_v4 }
0x18bf   :  { %v3837_v46 = vpop.f32.mrf.mxu0 }
0x18c0   :  { %v3855_v7 = vpack.c.bf16 %v3837_v46, %v3834_v44  ;;  %7420 = vmatpush3.bf16.msra.mxu1 %v8998_v8 }
0x18c1   :  { %7421 = vmatprep.subr.bf16.mxu1 %v9002_v6 }
0x18c2   :  { %7373 = vmatprep.mubr.bf16.mxu1 %v3855_v7 }
0x18c3   :  { %7374 = vmatmul.mubr.bf16.gmra.mxu1 %v3856_v0 }
0x18c4   :  { %7422 = vmatpush3.bf16.msra.mxu1 %v9002_v6 }
0x18c5   :  { %7423 = vmatprep.subr.bf16.mxu1 %v9006_v9 }
0x18c8   :  { %7424 = vmatpush3.bf16.msra.mxu1 %v9006_v9 }
0x18c9   :  { %7473 = vmatprep.subr.bf16.mxu1 %v8939_v60 }
0x196b   :  { %v7363_v55 = vpop.f32.mrf.mxu1 }
0x196d   :  { %v3891_v43 = vpop.f32.mrf.mxu1 }
0x196f   :  { %v7364_v57 = vpop.f32.mrf.mxu1 }
0x1971   :  { %v3894_v42 = vpop.f32.mrf.mxu1 }
0x1973   :  { %v7367_v5 = vpop.f32.mrf.mxu1 }
0x1975   :  { %v3907_v49 = vpop.f32.mrf.mxu1 }
0x1977   :  { %v7368_v62 = vpop.f32.mrf.mxu1 }
0x1979   :  { %v3910_v48 = vpop.f32.mrf.mxu1 }
0x197b   :  { %v7371_v53 = vpop.f32.mrf.mxu1 }
0x197c   :  { %v3932_v28 = vadd.f32 %v7371_v53, %v8335_v34  ;;  %v3916_v53 = vadd.f32 %v7367_v5, %v8348_v63 }
0x197d   :  { %v3923_v25 = vpop.f32.mrf.mxu1 }
0x197e   :  { %v3964_v7 = vmax.f32 %v3932_v28, 0.0  ;;  %v3924_v0 = vadd.f32 %v3923_v25, %v8342_v3  ;;  %v3903_v25 = vadd.f32 %v7364_v57, %v8359_v54 }
0x197f   :  { %v7372_v1 = vpop.f32.mrf.mxu1 }
0x1980   :  { %v3935_v23 = vadd.f32 %v7372_v1, %v8329_v30  ;;  %v3919_v1 = vadd.f32 %v7368_v62, %v8345_v20  ;;  %v3957_v5 = vmax.f32 %v3903_v25, 0.0 }
0x1981   :  { %v3926_v45 = vpop.f32.mrf.mxu1 }
0x1982   :  { %v3965_v44 = vmax.f32 %v3935_v23, 0.0  ;;  %v3927_v10 = vadd.f32 %v3926_v45, %v8339_v40 }
0x1983   :  { %v7375_v37 = vpop.f32.mrf.mxu1 }
0x1984   :  { %v3948_v41 = vadd.f32 %v7375_v37, %v8322_v24  ;;  %v3975_v37 = vpack.c.bf16 %v3965_v44, %v3964_v7 }
0x1985   :  { %v3939_v19 = vpop.f32.mrf.mxu1 }
0x1986   :  { %v3940_v50 = vadd.f32 %v3939_v19, %v8324_v26  ;;  %v3968_v51 = vmax.f32 %v3948_v41, 0.0  ;;  %v3963_v19 = vmax.f32 %v3927_v10, 0.0  ;;  %v3962_v41 = vmax.f32 %v3924_v0, 0.0 }
0x1987   :  { %v7376_v17 = vpop.f32.mrf.mxu1 }
0x1988   :  { %v3951_v2 = vadd.f32 %v7376_v17, %v8326_v27  ;;  %v3966_v32 = vmax.f32 %v3940_v50, 0.0  ;;  %v3961_v17 = vmax.f32 %v3919_v1, 0.0  ;;  %v3911_v50 = vadd.f32 %v3910_v48, %v8351_v61 }
0x1989   :  { %v3942_v29 = vpop.f32.mrf.mxu1  ;;  %v3974_v45 = vpack.c.bf16 %v3963_v19, %v3962_v41 }
0x198a   :  { %v3969_v21 = vmax.f32 %v3951_v2, 0.0  ;;  %v3943_v18 = vadd.f32 %v3942_v29, %v8331_v31  ;;  %v3960_v2 = vmax.f32 %v3916_v53, 0.0  ;;  %v3908_v29 = vadd.f32 %v3907_v49, %v8355_v56 }
0x198b   :  { %v3959_v62 = vmax.f32 %v3911_v50, 0.0 }
0x198c   :  { %v3977_v33 = vpack.c.bf16 %v3969_v21, %v3968_v51  ;;  %v3967_v4 = vmax.f32 %v3943_v18, 0.0  ;;  %v3973_v23 = vpack.c.bf16 %v3961_v17, %v3960_v2  ;;  %v3900_v51 = vadd.f32 %v7363_v55, %v8363_v59 }
0x198d   :  { %v3958_v21 = vmax.f32 %v3908_v29, 0.0  ;;  %v3895_v18 = vadd.f32 %v3894_v42, %v8368_v16 }
0x198e   :  { %v3976_v46 = vpack.c.bf16 %v3967_v4, %v3966_v32  ;;  %7377 = vmatprep.subr.bf16.mxu0 %v3977_v33  ;;  %v3956_v48 = vmax.f32 %v3900_v51, 0.0  ;;  %v3892_v32 = vadd.f32 %v3891_v43, %v8373_v13 }
0x198f   :  { %7378 = vmatpush3.bf16.msra.mxu0 %v3977_v33  ;;  %v3972_v28 = vpack.c.bf16 %v3959_v62, %v3958_v21  ;;  %v3955_v33 = vmax.f32 %v3895_v18, 0.0 }
0x1990   :  { %7379 = vmatprep.subr.bf16.mxu0 %v3976_v46  ;;  %v3971_v49 = vpack.c.bf16 %v3957_v5, %v3956_v48  ;;  %v3954_v57 = vmax.f32 %v3892_v32, 0.0 }
0x1992   :  { %v3970_v4 = vpack.c.bf16 %v3955_v33, %v3954_v57 }
0x1993   :  { %7380 = vmatpush3.bf16.msra.mxu0 %v3976_v46 }
0x1994   :  { %7381 = vmatprep.subr.bf16.mxu0 %v3975_v37 }
0x1997   :  { %7382 = vmatpush3.bf16.msra.mxu0 %v3975_v37 }
0x1998   :  { %7383 = vmatprep.subr.bf16.mxu0 %v3974_v45 }
0x199b   :  { %7384 = vmatpush3.bf16.msra.mxu0 %v3974_v45 }
0x199c   :  { %7385 = vmatprep.subr.bf16.mxu0 %v3973_v23 }
0x199f   :  { %7386 = vmatpush3.bf16.msra.mxu0 %v3973_v23 }
0x19a0   :  { %7387 = vmatprep.subr.bf16.mxu0 %v3972_v28 }
0x19a3   :  { %7388 = vmatpush3.bf16.msra.mxu0 %v3972_v28 }
0x19a4   :  { %7389 = vmatprep.subr.bf16.mxu0 %v3971_v49 }
0x19a7   :  { %7390 = vmatpush3.bf16.msra.mxu0 %v3971_v49 }
0x19a8   :  { %7391 = vmatprep.subr.bf16.mxu0 %v3970_v4 }
0x19ab   :  { %7392 = vmatpush3.bf16.msra.mxu0 %v3970_v4 }
0x19ae   :  { %7394 = vmatmul.mubr.bf16.vlgmr.msra.gmra.mxu0 %v8894_v38 }
0x19af   :  { %7397 = vmatprep.mubr.bf16.mxu0 %v8900_v47 }
0x19b6   :  { %7398 = vmatmul.mubr.bf16.gmra.mxu0 %v8906_v58 }
0x19b7   :  { %7401 = vmatprep.mubr.bf16.mxu0 %v8912_v15 }
0x19be   :  { %7402 = vmatmul.mubr.bf16.gmra.mxu0 %v8918_v22 }
0x19bf   :  { %7405 = vmatprep.mubr.bf16.mxu0 %v8924_v12 }
0x19c6   :  { %7406 = vmatmul.mubr.bf16.gmra.mxu0 %v8930_v35 }
0x19c7   :  { %7457 = vmatprep.mubr.bf16.mxu0 %v8936_v52 }
0x1a6e   :  { %v7395_v55 = vpop.f32.mrf.mxu0 }
0x1a70   :  { %v4012_v43 = vpop.f32.mrf.mxu0 }
0x1a72   :  { %v7396_v42 = vpop.f32.mrf.mxu0 }
0x1a73   :  { %v4076_v38 = vpack.c.bf16 %v7396_v42, %v7395_v55 }
0x1a74   :  { %v4015_v44 = vpop.f32.mrf.mxu0 }
0x1a75   :  { %v4075_v10 = vpack.c.bf16 %v4015_v44, %v4012_v43 }
0x1a76   :  { %v7399_v46 = vpop.f32.mrf.mxu0 }
0x1a77   :  { %7425 = vmatprep.mubr.bf16.mxu1 %v4075_v10 }
0x1a78   :  { %v4028_v47 = vpop.f32.mrf.mxu0  ;;  %7426 = vmatmul.mubr.bf16.vlgmr.msra.gmra.mxu1 %v4076_v38 }
0x1a79   :  { %7474 = vmatpush3.bf16.msra.mxu1 %v8939_v60 }
0x1a7a   :  { %v7400_v58 = vpop.f32.mrf.mxu0  ;;  %7475 = vmatprep.subr.bf16.mxu1 %v8982_v39 }
0x1a7b   :  { %v4078_v12 = vpack.c.bf16 %v7400_v58, %v7399_v46 }
0x1a7c   :  { %v4031_v15 = vpop.f32.mrf.mxu0 }
0x1a7d   :  { %v4077_v22 = vpack.c.bf16 %v4031_v15, %v4028_v47  ;;  %7476 = vmatpush3.bf16.msra.mxu1 %v8982_v39 }
0x1a7e   :  { %v7403_v35 = vpop.f32.mrf.mxu0  ;;  %7477 = vmatprep.subr.bf16.mxu1 %v8986_v36 }
0x1a7f   :  { %7429 = vmatprep.mubr.bf16.mxu1 %v4077_v22 }
0x1a80   :  { %v4044_v52 = vpop.f32.mrf.mxu0  ;;  %7430 = vmatmul.mubr.bf16.gmra.mxu1 %v4078_v12 }
0x1a81   :  { %7478 = vmatpush3.bf16.msra.mxu1 %v8986_v36 }
0x1a82   :  { %v7404_v7 = vpop.f32.mrf.mxu0  ;;  %7479 = vmatprep.subr.bf16.mxu1 %v8990_v14 }
0x1a83   :  { %v4080_v37 = vpack.c.bf16 %v7404_v7, %v7403_v35 }
0x1a84   :  { %v4047_v0 = vpop.f32.mrf.mxu0 }
0x1a85   :  { %v4079_v1 = vpack.c.bf16 %v4047_v0, %v4044_v52  ;;  %7480 = vmatpush3.bf16.msra.mxu1 %v8990_v14 }
0x1a86   :  { %v7407_v19 = vpop.f32.mrf.mxu0  ;;  %7481 = vmatprep.subr.bf16.mxu1 %v8994_v11 }
0x1a87   :  { %7433 = vmatprep.mubr.bf16.mxu1 %v4079_v1 }
0x1a88   :  { %v4060_v53 = vpop.f32.mrf.mxu0  ;;  %7434 = vmatmul.mubr.bf16.gmra.mxu1 %v4080_v37 }
0x1a89   :  { %7482 = vmatpush3.bf16.msra.mxu1 %v8994_v11 }
0x1a8a   :  { %v7408_v41 = vpop.f32.mrf.mxu0  ;;  %7483 = vmatprep.subr.bf16.mxu1 %v8998_v8 }
0x1a8b   :  { %v4082_v45 = vpack.c.bf16 %v7408_v41, %v7407_v19 }
0x1a8c   :  { %v4063_v17 = vpop.f32.mrf.mxu0 }
0x1a8d   :  { %v4081_v50 = vpack.c.bf16 %v4063_v17, %v4060_v53  ;;  %7484 = vmatpush3.bf16.msra.mxu1 %v8998_v8 }
0x1a8e   :  { %7485 = vmatprep.subr.bf16.mxu1 %v9002_v6 }
0x1a8f   :  { %7437 = vmatprep.mubr.bf16.mxu1 %v4081_v50 }
0x1a90   :  { %7438 = vmatmul.mubr.bf16.gmra.mxu1 %v4082_v45 }
0x1a91   :  { %7486 = vmatpush3.bf16.msra.mxu1 %v9002_v6 }
0x1a92   :  { %7487 = vmatprep.subr.bf16.mxu1 %v9006_v9 }
0x1a95   :  { %7488 = vmatpush3.bf16.msra.mxu1 %v9006_v9 }
0x1a96   :  { %7537 = vmatprep.subr.bf16.mxu1 %v8939_v60 }
0x1b38   :  { %v7427_v2 = vpop.f32.mrf.mxu1 }
0x1b3a   :  { %v4117_v29 = vpop.f32.mrf.mxu1 }
0x1b3c   :  { %v7428_v25 = vpop.f32.mrf.mxu1 }
0x1b3e   :  { %v4120_v23 = vpop.f32.mrf.mxu1 }
0x1b40   :  { %v7431_v62 = vpop.f32.mrf.mxu1 }
0x1b41   :  { %v4142_v19 = vadd.f32 %v7431_v62, %v8348_v63 }
0x1b42   :  { %v4133_v51 = vpop.f32.mrf.mxu1 }
0x1b43   :  { %v4186_v45 = vmax.f32 %v4142_v19, 0.0 }
0x1b44   :  { %v7432_v21 = vpop.f32.mrf.mxu1 }
0x1b45   :  { %v4145_v0 = vadd.f32 %v7432_v21, %v8345_v20 }
0x1b46   :  { %v4136_v5 = vpop.f32.mrf.mxu1 }
0x1b47   :  { %v4187_v41 = vmax.f32 %v4145_v0, 0.0  ;;  %v4137_v17 = vadd.f32 %v4136_v5, %v8351_v61 }
0x1b48   :  { %v7435_v18 = vpop.f32.mrf.mxu1 }
0x1b49   :  { %v4158_v46 = vadd.f32 %v7435_v18, %v8335_v34  ;;  %v4134_v18 = vadd.f32 %v4133_v51, %v8355_v56  ;;  %v4185_v21 = vmax.f32 %v4137_v17, 0.0 }
0x1b4a   :  { %v4149_v28 = vpop.f32.mrf.mxu1 }
0x1b4b   :  { %v4190_v52 = vmax.f32 %v4158_v46, 0.0  ;;  %v4150_v7 = vadd.f32 %v4149_v28, %v8342_v3  ;;  %v4129_v28 = vadd.f32 %v7428_v25, %v8359_v54 }
0x1b4c   :  { %v7436_v48 = vpop.f32.mrf.mxu1 }
0x1b4d   :  { %v4161_v42 = vadd.f32 %v7436_v48, %v8329_v30  ;;  %v4188_v53 = vmax.f32 %v4150_v7, 0.0  ;;  %v4199_v48 = vpack.c.bf16 %v4187_v41, %v4186_v45  ;;  %v4183_v62 = vmax.f32 %v4129_v28, 0.0  ;;  %v9155_v7 = vld [vmem:[#allocation2 + $0x38] sm:$0xff]  }
0x1b4e   :  { %v4152_v32 = vpop.f32.mrf.mxu1 }
0x1b4f   :  { %v4191_v22 = vmax.f32 %v4161_v42, 0.0  ;;  %v4153_v12 = vadd.f32 %v4152_v32, %v8339_v40  ;;  %v4126_v32 = vadd.f32 %v7427_v2, %v8363_v59  ;;  %v9110_v2 = vld [vmem:[%s9359_s2 + $0x8] sm:$0xff]  }
0x1b50   :  { %v7439_v49 = vpop.f32.mrf.mxu1  ;;  %v9134_v42 = vld [vmem:[%s9359_s2 + $0x28] sm:$0xff]  }
0x1b51   :  { %v4174_v57 = vadd.f32 %v7439_v49, %v8322_v24  ;;  %v4201_v1 = vpack.c.bf16 %v4191_v22, %v4190_v52  ;;  %v4189_v37 = vmax.f32 %v4153_v12, 0.0  ;;  %v4184_v49 = vmax.f32 %v4134_v18, 0.0 }
0x1b52   :  { %v4165_v33 = vpop.f32.mrf.mxu1  ;;  %v4182_v5 = vmax.f32 %v4126_v32, 0.0 }
0x1b53   :  { %v4166_v55 = vadd.f32 %v4165_v33, %v8324_v26  ;;  %v4194_v44 = vmax.f32 %v4174_v57, 0.0  ;;  %v4200_v50 = vpack.c.bf16 %v4189_v37, %v4188_v53  ;;  %v4121_v33 = vadd.f32 %v4120_v23, %v8368_v16  ;;  %v9122_v23 = vld [vmem:[%s9359_s2 + $0x18] sm:$0xff]  }
0x1b54   :  { %v7440_v4 = vpop.f32.mrf.mxu1  ;;  %v4198_v57 = vpack.c.bf16 %v4185_v21, %v4184_v49  ;;  %v4197_v51 = vpack.c.bf16 %v4183_v62, %v4182_v5 }
0x1b55   :  { %v4177_v60 = vadd.f32 %v7440_v4, %v8326_v27  ;;  %v4192_v47 = vmax.f32 %v4166_v55, 0.0  ;;  %v4118_v4 = vadd.f32 %v4117_v29, %v8373_v13  ;;  %v4181_v55 = vmax.f32 %v4121_v33, 0.0  ;;  %v9116_v29 = vld [vmem:[%s9359_s2 + $0x10] sm:$0xff]  }
0x1b56   :  { %v4168_v43 = vpop.f32.mrf.mxu1 }
0x1b57   :  { %v4195_v10 = vmax.f32 %v4177_v60, 0.0  ;;  %v4169_v38 = vadd.f32 %v4168_v43, %v8331_v31  ;;  %v4180_v25 = vmax.f32 %v4118_v4, 0.0  ;;  %v9128_v43 = vld [vmem:[%s9359_s2 + $0x20] sm:$0xff]  }
0x1b59   :  { %v4203_v58 = vpack.c.bf16 %v4195_v10, %v4194_v44  ;;  %v4193_v15 = vmax.f32 %v4169_v38, 0.0  ;;  %v4196_v60 = vpack.c.bf16 %v4181_v55, %v4180_v25  ;;  %v9140_v44 = vld [vmem:[%s9359_s2 + $0x30] sm:$0xff]   ;;  %v9146_v10 = vld [vmem:[%s9359_s2 + $0x38] sm:$0xff]   ;;  %v9152_v38 = vld [vmem:[%s9359_s2] sm:$0xff]   ;;  %s8061_s2 = smov [#allocation13]  }
0x1b5a   :  { %s5544_s12 = sshll.u32 %s8061_s2, 4  ;;  %s5545_s12 = int_to_ptr.vmem [resolvable:$true] %s5544_s12 }
0x1b5b   :  { %v4202_v35 = vpack.c.bf16 %v4193_v15, %v4192_v47  ;;  %7441 = vmatprep.subr.bf16.mxu0 %v4203_v58  ;;  %s8003_s13 = scalar_lea.vmem %s5545_s12, 2048  ;;  %p8008_p7 = scmp.lt.s32.totalorder %s5545_s12, %s5545_s12 }
0x1b5c   :  { %7442 = vmatpush3.bf16.msra.mxu0 %v4203_v58  ;;  %p8004_p6 = scmp.ne.s32.totalorder %s5545_s12, %s8003_s13  ;;  %p8009_p8 = scmp.lt.s32.totalorder %s8003_s13, %s8003_s13 }
0x1b5d   :  { %7443 = vmatprep.subr.bf16.mxu0 %v4202_v35 }
0x1b5e   :  { %p8010_p9 = por %p8009_p8, %p8008_p7 }
0x1b60   :  { %7444 = vmatpush3.bf16.msra.mxu0 %v4202_v35  ;;  %p8011_p10 = pnand %p8010_p9, %p8004_p6 }
0x1b61   :  { %7445 = vmatprep.subr.bf16.mxu0 %v4201_v1 }
0x1b64   :  { %7446 = vmatpush3.bf16.msra.mxu0 %v4201_v1 }
0x1b65   :  { %7447 = vmatprep.subr.bf16.mxu0 %v4200_v50 }
0x1b68   :  { %7448 = vmatpush3.bf16.msra.mxu0 %v4200_v50 }
0x1b69   :  { %7449 = vmatprep.subr.bf16.mxu0 %v4199_v48 }
0x1b6c   :  { %7450 = vmatpush3.bf16.msra.mxu0 %v4199_v48 }
0x1b6d   :  { %7451 = vmatprep.subr.bf16.mxu0 %v4198_v57 }
0x1b70   :  { %7452 = vmatpush3.bf16.msra.mxu0 %v4198_v57 }
0x1b71   :  { %7453 = vmatprep.subr.bf16.mxu0 %v4197_v51 }
0x1b74   :  { %7454 = vmatpush3.bf16.msra.mxu0 %v4197_v51 }
0x1b75   :  { %7455 = vmatprep.subr.bf16.mxu0 %v4196_v60 }
0x1b78   :  { %7456 = vmatpush3.bf16.msra.mxu0 %v4196_v60 }
0x1b7b   :  { %7458 = vmatmul.mubr.bf16.vlgmr.msra.gmra.mxu0 %v9110_v2 }
0x1b7c   :  { %7461 = vmatprep.mubr.bf16.mxu0 %v9116_v29 }
0x1b83   :  { %7462 = vmatmul.mubr.bf16.gmra.mxu0 %v9122_v23 }
0x1b84   :  { %7465 = vmatprep.mubr.bf16.mxu0 %v9128_v43 }
0x1b8b   :  { %7466 = vmatmul.mubr.bf16.gmra.mxu0 %v9134_v42 }
0x1b8c   :  { %7469 = vmatprep.mubr.bf16.mxu0 %v9140_v44 }
0x1b93   :  { %7470 = vmatmul.mubr.bf16.gmra.mxu0 %v9146_v10 }
0x1b94   :  { %7521 = vmatprep.mubr.bf16.mxu0 %v9152_v38 }
0x1c3b   :  { %v7459_v46 = vpop.f32.mrf.mxu0 }
0x1c3d   :  { %v4238_v47 = vpop.f32.mrf.mxu0 }
0x1c3f   :  { %v7460_v58 = vpop.f32.mrf.mxu0 }
0x1c40   :  { %v4302_v12 = vpack.c.bf16 %v7460_v58, %v7459_v46 }
0x1c41   :  { %v4241_v15 = vpop.f32.mrf.mxu0 }
0x1c42   :  { %v4301_v22 = vpack.c.bf16 %v4241_v15, %v4238_v47 }
0x1c43   :  { %v7463_v35 = vpop.f32.mrf.mxu0 }
0x1c44   :  { %7489 = vmatprep.mubr.bf16.mxu1 %v4301_v22 }
0x1c45   :  { %v4254_v52 = vpop.f32.mrf.mxu0  ;;  %7490 = vmatmul.mubr.bf16.vlgmr.msra.gmra.mxu1 %v4302_v12 }
0x1c46   :  { %7538 = vmatpush3.bf16.msra.mxu1 %v9155_v7 }
0x1c47   :  { %v7464_v0 = vpop.f32.mrf.mxu0  ;;  %7539 = vmatprep.subr.bf16.mxu1 %v8982_v39 }
0x1c48   :  { %v4304_v19 = vpack.c.bf16 %v7464_v0, %v7463_v35 }
0x1c49   :  { %v4257_v1 = vpop.f32.mrf.mxu0 }
0x1c4a   :  { %v4303_v37 = vpack.c.bf16 %v4257_v1, %v4254_v52  ;;  %7540 = vmatpush3.bf16.msra.mxu1 %v8982_v39 }
0x1c4b   :  { %v7467_v53 = vpop.f32.mrf.mxu0  ;;  %7541 = vmatprep.subr.bf16.mxu1 %v8986_v36 }
0x1c4c   :  { %7493 = vmatprep.mubr.bf16.mxu1 %v4303_v37 }
0x1c4d   :  { %v4270_v41 = vpop.f32.mrf.mxu0  ;;  %7494 = vmatmul.mubr.bf16.gmra.mxu1 %v4304_v19 }
0x1c4e   :  { %7542 = vmatpush3.bf16.msra.mxu1 %v8986_v36 }
0x1c4f   :  { %v7468_v17 = vpop.f32.mrf.mxu0  ;;  %7543 = vmatprep.subr.bf16.mxu1 %v8990_v14 }
0x1c50   :  { %v4306_v18 = vpack.c.bf16 %v7468_v17, %v7467_v53 }
0x1c51   :  { %v4273_v50 = vpop.f32.mrf.mxu0 }
0x1c52   :  { %v4305_v45 = vpack.c.bf16 %v4273_v50, %v4270_v41  ;;  %7544 = vmatpush3.bf16.msra.mxu1 %v8990_v14 }
0x1c53   :  { %v7471_v28 = vpop.f32.mrf.mxu0  ;;  %7545 = vmatprep.subr.bf16.mxu1 %v8994_v11 }
0x1c54   :  { %7497 = vmatprep.mubr.bf16.mxu1 %v4305_v45 }
0x1c55   :  { %v4286_v39 = vpop.f32.mrf.mxu0  ;;  %7498 = vmatmul.mubr.bf16.gmra.mxu1 %v4306_v18 }
0x1c56   :  { %7546 = vmatpush3.bf16.msra.mxu1 %v8994_v11 }
0x1c57   :  { %v7472_v48 = vpop.f32.mrf.mxu0  ;;  %7547 = vmatprep.subr.bf16.mxu1 %v8998_v8 }
0x1c58   :  { %v4308_v32 = vpack.c.bf16 %v7472_v48, %v7471_v28 }
0x1c59   :  { %v4289_v36 = vpop.f32.mrf.mxu0 }
0x1c5a   :  { %v4307_v21 = vpack.c.bf16 %v4289_v36, %v4286_v39  ;;  %7548 = vmatpush3.bf16.msra.mxu1 %v8998_v8 }
0x1c5b   :  { %7549 = vmatprep.subr.bf16.mxu1 %v9002_v6 }
0x1c5c   :  { %7501 = vmatprep.mubr.bf16.mxu1 %v4307_v21 }
0x1c5d   :  { %7502 = vmatmul.mubr.bf16.gmra.mxu1 %v4308_v32 }
0x1c5e   :  { %7550 = vmatpush3.bf16.msra.mxu1 %v9002_v6 }
0x1c5f   :  { %7551 = vmatprep.subr.bf16.mxu1 %v9006_v9 }
0x1c62   :  { %7552 = vmatpush3.bf16.msra.mxu1 %v9006_v9 }
0x1c63   :  { %7601 = vmatprep.subr.bf16.mxu1 %v9155_v7 }
0x1d05   :  { %v7491_v14 = vpop.f32.mrf.mxu1 }
0x1d07   :  { %v4343_v11 = vpop.f32.mrf.mxu1 }
0x1d09   :  { %v7492_v49 = vpop.f32.mrf.mxu1 }
0x1d0b   :  { %v4346_v62 = vpop.f32.mrf.mxu1 }
0x1d0d   :  { %v7495_v33 = vpop.f32.mrf.mxu1 }
0x1d0e   :  { %v4368_v48 = vadd.f32 %v7495_v33, %v8348_v63 }
0x1d0f   :  { %v4359_v57 = vpop.f32.mrf.mxu1 }
0x1d11   :  { %v7496_v8 = vpop.f32.mrf.mxu1 }
0x1d12   :  { %v4371_v18 = vadd.f32 %v7496_v8, %v8345_v20 }
0x1d13   :  { %v4362_v5 = vpop.f32.mrf.mxu1 }
0x1d14   :  { %v4413_v21 = vmax.f32 %v4371_v18, 0.0  ;;  %v4363_v32 = vadd.f32 %v4362_v5, %v8351_v61 }
0x1d15   :  { %v7499_v4 = vpop.f32.mrf.mxu1 }
0x1d16   :  { %v4384_v0 = vadd.f32 %v7499_v4, %v8335_v34  ;;  %v4411_v8 = vmax.f32 %v4363_v32, 0.0 }
0x1d17   :  { %v4375_v51 = vpop.f32.mrf.mxu1 }
0x1d18   :  { %v4416_v50 = vmax.f32 %v4384_v0, 0.0  ;;  %v4376_v45 = vadd.f32 %v4375_v51, %v8342_v3  ;;  %v4355_v51 = vadd.f32 %v7492_v49, %v8359_v54 }
0x1d19   :  { %v7500_v55 = vpop.f32.mrf.mxu1 }
0x1d1a   :  { %v4387_v22 = vadd.f32 %v7500_v55, %v8329_v30  ;;  %v4414_v36 = vmax.f32 %v4376_v45, 0.0  ;;  %v4412_v55 = vmax.f32 %v4368_v48, 0.0  ;;  %v4409_v33 = vmax.f32 %v4355_v51, 0.0  ;;  %v9202_v45 = vld [vmem:[#allocation2 + $0x28] sm:$0xff]   ;;  %v9214_v51 = vld [vmem:[#allocation2 + $0x10] sm:$0xff]  }
0x1d1b   :  { %v4378_v25 = vpop.f32.mrf.mxu1 }
0x1d1c   :  { %v4417_v53 = vmax.f32 %v4387_v22, 0.0  ;;  %v4379_v41 = vadd.f32 %v4378_v25, %v8339_v40  ;;  %v4360_v25 = vadd.f32 %v4359_v57, %v8355_v56 }
0x1d1d   :  { %v7503_v60 = vpop.f32.mrf.mxu1 }
0x1d1e   :  { %v4400_v46 = vadd.f32 %v7503_v60, %v8322_v24  ;;  %v4427_v28 = vpack.c.bf16 %v4417_v53, %v4416_v50  ;;  %v4415_v39 = vmax.f32 %v4379_v41, 0.0  ;;  %v4425_v60 = vpack.c.bf16 %v4413_v21, %v4412_v55 }
0x1d1f   :  { %v4391_v6 = vpop.f32.mrf.mxu1 }
0x1d20   :  { %v4392_v9 = vadd.f32 %v4391_v6, %v8324_v26  ;;  %v4420_v12 = vmax.f32 %v4400_v46, 0.0  ;;  %v4426_v4 = vpack.c.bf16 %v4415_v39, %v4414_v36  ;;  %v4352_v6 = vadd.f32 %v7491_v14, %v8363_v59  ;;  %v9206_v39 = vld [vmem:[#allocation2 + $0x20] sm:$0xff]  }
0x1d21   :  { %v7504_v47 = vpop.f32.mrf.mxu1  ;;  %v4410_v46 = vmax.f32 %v4360_v25, 0.0 }
0x1d22   :  { %v4403_v58 = vadd.f32 %v7504_v47, %v8326_v27  ;;  %v4418_v1 = vmax.f32 %v4392_v9, 0.0  ;;  %v4347_v47 = vadd.f32 %v4346_v62, %v8368_v16  ;;  %v4408_v5 = vmax.f32 %v4352_v6, 0.0 }
0x1d23   :  { %v4394_v15 = vpop.f32.mrf.mxu1  ;;  %v4424_v9 = vpack.c.bf16 %v4411_v8, %v4410_v46  ;;  %v9218_v46 = vld [vmem:[#allocation2 + $0x8] sm:$0xff]  }
0x1d24   :  { %v4421_v35 = vmax.f32 %v4403_v58, 0.0  ;;  %v4395_v52 = vadd.f32 %v4394_v15, %v8331_v31  ;;  %v4344_v58 = vadd.f32 %v4343_v11, %v8373_v13  ;;  %v4423_v57 = vpack.c.bf16 %v4409_v33, %v4408_v5  ;;  %v9222_v33 = vld [vmem:[#allocation2] sm:$0xff]  }
0x1d25   :  { %v4407_v15 = vmax.f32 %v4347_v47, 0.0 }
0x1d26   :  { %v4429_v37 = vpack.c.bf16 %v4421_v35, %v4420_v12  ;;  %v4419_v19 = vmax.f32 %v4395_v52, 0.0  ;;  %v4406_v49 = vmax.f32 %v4344_v58, 0.0 }
0x1d28   :  { %v4428_v17 = vpack.c.bf16 %v4419_v19, %v4418_v1  ;;  %7505 = vmatprep.subr.bf16.mxu0 %v4429_v37  ;;  %v4422_v22 = vpack.c.bf16 %v4407_v15, %v4406_v49  ;;  %v9198_v19 = vld [vmem:[#allocation2 + $0x30] sm:$0xff]  }
0x1d29   :  { %7506 = vmatpush3.bf16.msra.mxu0 %v4429_v37 }
0x1d2a   :  { %7507 = vmatprep.subr.bf16.mxu0 %v4428_v17 }
0x1d2d   :  { %7508 = vmatpush3.bf16.msra.mxu0 %v4428_v17 }
0x1d2e   :  { %7509 = vmatprep.subr.bf16.mxu0 %v4427_v28 }
0x1d31   :  { %7510 = vmatpush3.bf16.msra.mxu0 %v4427_v28 }
0x1d32   :  { %7511 = vmatprep.subr.bf16.mxu0 %v4426_v4 }
0x1d35   :  { %7512 = vmatpush3.bf16.msra.mxu0 %v4426_v4  ;;  %v9210_v4 = vld [vmem:[#allocation2 + $0x18] sm:$0xff]  }
0x1d36   :  { %7513 = vmatprep.subr.bf16.mxu0 %v4425_v60 }
0x1d39   :  { %7514 = vmatpush3.bf16.msra.mxu0 %v4425_v60 }
0x1d3a   :  { %7515 = vmatprep.subr.bf16.mxu0 %v4424_v9 }
0x1d3d   :  { %7516 = vmatpush3.bf16.msra.mxu0 %v4424_v9 }
0x1d3e   :  { %7517 = vmatprep.subr.bf16.mxu0 %v4423_v57 }
0x1d41   :  { %7518 = vmatpush3.bf16.msra.mxu0 %v4423_v57 }
0x1d42   :  { %7519 = vmatprep.subr.bf16.mxu0 %v4422_v22 }
0x1d45   :  { %7520 = vmatpush3.bf16.msra.mxu0 %v4422_v22 }
0x1d48   :  { %7522 = vmatmul.mubr.bf16.vlgmr.msra.gmra.mxu0 %v9110_v2 }
0x1d49   :  { %7525 = vmatprep.mubr.bf16.mxu0 %v9116_v29 }
0x1d50   :  { %7526 = vmatmul.mubr.bf16.gmra.mxu0 %v9122_v23 }
0x1d51   :  { %7529 = vmatprep.mubr.bf16.mxu0 %v9128_v43 }
0x1d58   :  { %7530 = vmatmul.mubr.bf16.gmra.mxu0 %v9134_v42 }
0x1d59   :  { %7533 = vmatprep.mubr.bf16.mxu0 %v9140_v44 }
0x1d60   :  { %7534 = vmatmul.mubr.bf16.gmra.mxu0 %v9146_v10 }
0x1d61   :  { %7585 = vmatprep.mubr.bf16.mxu0 %v9152_v38 }
0x1e08   :  { %v7523_v14 = vpop.f32.mrf.mxu0 }
0x1e0a   :  { %v4464_v11 = vpop.f32.mrf.mxu0 }
0x1e0c   :  { %v7524_v62 = vpop.f32.mrf.mxu0 }
0x1e0d   :  { %v4528_v52 = vpack.c.bf16 %v7524_v62, %v7523_v14 }
0x1e0e   :  { %v4467_v12 = vpop.f32.mrf.mxu0 }
0x1e0f   :  { %v4527_v35 = vpack.c.bf16 %v4467_v12, %v4464_v11 }
0x1e10   :  { %v7527_v0 = vpop.f32.mrf.mxu0 }
0x1e11   :  { %7553 = vmatprep.mubr.bf16.mxu1 %v4527_v35 }
0x1e12   :  { %v4480_v1 = vpop.f32.mrf.mxu0  ;;  %7554 = vmatmul.mubr.bf16.vlgmr.msra.gmra.mxu1 %v4528_v52 }
0x1e13   :  { %7602 = vmatpush3.bf16.msra.mxu1 %v9155_v7 }
0x1e14   :  { %v7528_v37 = vpop.f32.mrf.mxu0  ;;  %7603 = vmatprep.subr.bf16.mxu1 %v9198_v19 }
0x1e15   :  { %v4530_v17 = vpack.c.bf16 %v7528_v37, %v7527_v0 }
0x1e16   :  { %v4483_v53 = vpop.f32.mrf.mxu0 }
0x1e17   :  { %v4529_v41 = vpack.c.bf16 %v4483_v53, %v4480_v1  ;;  %7604 = vmatpush3.bf16.msra.mxu1 %v9198_v19 }
0x1e18   :  { %v7531_v50 = vpop.f32.mrf.mxu0  ;;  %7605 = vmatprep.subr.bf16.mxu1 %v9202_v45 }
0x1e19   :  { %7557 = vmatprep.mubr.bf16.mxu1 %v4529_v41 }
0x1e1a   :  { %v4496_v18 = vpop.f32.mrf.mxu0  ;;  %7558 = vmatmul.mubr.bf16.gmra.mxu1 %v4530_v17 }
0x1e1b   :  { %7606 = vmatpush3.bf16.msra.mxu1 %v9202_v45 }
0x1e1c   :  { %v7532_v28 = vpop.f32.mrf.mxu0  ;;  %7607 = vmatprep.subr.bf16.mxu1 %v9206_v39 }
0x1e1d   :  { %v4532_v21 = vpack.c.bf16 %v7532_v28, %v7531_v50 }
0x1e1e   :  { %v4499_v48 = vpop.f32.mrf.mxu0 }
0x1e1f   :  { %v4531_v36 = vpack.c.bf16 %v4499_v48, %v4496_v18  ;;  %7608 = vmatpush3.bf16.msra.mxu1 %v9206_v39 }
0x1e20   :  { %v7535_v32 = vpop.f32.mrf.mxu0  ;;  %7609 = vmatprep.subr.bf16.mxu1 %v9210_v4 }
0x1e21   :  { %7561 = vmatprep.mubr.bf16.mxu1 %v4531_v36 }
0x1e22   :  { %v4512_v55 = vpop.f32.mrf.mxu0  ;;  %7562 = vmatmul.mubr.bf16.gmra.mxu1 %v4532_v21 }
0x1e23   :  { %7610 = vmatpush3.bf16.msra.mxu1 %v9210_v4 }
0x1e24   :  { %v7536_v25 = vpop.f32.mrf.mxu0  ;;  %7611 = vmatprep.subr.bf16.mxu1 %v9214_v51 }
0x1e25   :  { %v4534_v6 = vpack.c.bf16 %v7536_v25, %v7535_v32 }
0x1e26   :  { %v4515_v60 = vpop.f32.mrf.mxu0 }
0x1e27   :  { %v4533_v8 = vpack.c.bf16 %v4515_v60, %v4512_v55  ;;  %7612 = vmatpush3.bf16.msra.mxu1 %v9214_v51 }
0x1e28   :  { %7613 = vmatprep.subr.bf16.mxu1 %v9218_v46 }
0x1e29   :  { %7565 = vmatprep.mubr.bf16.mxu1 %v4533_v8 }
0x1e2a   :  { %7566 = vmatmul.mubr.bf16.gmra.mxu1 %v4534_v6 }
0x1e2b   :  { %7614 = vmatpush3.bf16.msra.mxu1 %v9218_v46 }
0x1e2c   :  { %7615 = vmatprep.subr.bf16.mxu1 %v9222_v33 }
0x1e2f   :  { %7616 = vmatpush3.bf16.msra.mxu1 %v9222_v33 }
0x1e30   :  { %7665 = vmatprep.subr.bf16.mxu1 %v9155_v7 }
0x1ed2   :  { %v7555_v47 = vpop.f32.mrf.mxu1 }
0x1ed4   :  { %v4569_v9 = vpop.f32.mrf.mxu1 }
0x1ed6   :  { %v7556_v5 = vpop.f32.mrf.mxu1 }
0x1ed8   :  { %v4572_v58 = vpop.f32.mrf.mxu1 }
0x1eda   :  { %v7559_v57 = vpop.f32.mrf.mxu1 }
0x1edc   :  { %v4585_v15 = vpop.f32.mrf.mxu1 }
0x1ede   :  { %v7560_v49 = vpop.f32.mrf.mxu1 }
0x1ee0   :  { %v4588_v22 = vpop.f32.mrf.mxu1 }
0x1ee2   :  { %v7563_v14 = vpop.f32.mrf.mxu1 }
0x1ee3   :  { %v4610_v48 = vadd.f32 %v7563_v14, %v8335_v34  ;;  %v4594_v14 = vadd.f32 %v7559_v57, %v8348_v63 }
0x1ee4   :  { %v4601_v11 = vpop.f32.mrf.mxu1 }
0x1ee5   :  { %v4642_v8 = vmax.f32 %v4610_v48, 0.0  ;;  %v4602_v6 = vadd.f32 %v4601_v11, %v8342_v3  ;;  %v4581_v11 = vadd.f32 %v7556_v5, %v8359_v54 }
0x1ee6   :  { %v7564_v62 = vpop.f32.mrf.mxu1 }
0x1ee7   :  { %v4613_v17 = vadd.f32 %v7564_v62, %v8329_v30  ;;  %v4597_v62 = vadd.f32 %v7560_v49, %v8345_v20  ;;  %v4635_v57 = vmax.f32 %v4581_v11, 0.0 }
0x1ee8   :  { %v4604_v12 = vpop.f32.mrf.mxu1 }
0x1ee9   :  { %v4643_v55 = vmax.f32 %v4613_v17, 0.0  ;;  %v4605_v25 = vadd.f32 %v4604_v12, %v8339_v40 }
0x1eea   :  { %v7567_v35 = vpop.f32.mrf.mxu1 }
0x1eeb   :  { %v4626_v0 = vadd.f32 %v7567_v35, %v8322_v24  ;;  %v4653_v35 = vpack.c.bf16 %v4643_v55, %v4642_v8 }
0x1eec   :  { %v4617_v52 = vpop.f32.mrf.mxu1 }
0x1eed   :  { %v4618_v37 = vadd.f32 %v4617_v52, %v8324_v26  ;;  %v4646_v50 = vmax.f32 %v4626_v0, 0.0  ;;  %v4641_v52 = vmax.f32 %v4605_v25, 0.0  ;;  %v4640_v0 = vmax.f32 %v4602_v6, 0.0 }
0x1eee   :  { %v7568_v1 = vpop.f32.mrf.mxu1 }
0x1eef   :  { %v4629_v53 = vadd.f32 %v7568_v1, %v8326_v27  ;;  %v4644_v36 = vmax.f32 %v4618_v37, 0.0  ;;  %v4639_v1 = vmax.f32 %v4597_v62, 0.0  ;;  %v4589_v37 = vadd.f32 %v4588_v22, %v8351_v61 }
0x1ef0   :  { %v4620_v41 = vpop.f32.mrf.mxu1  ;;  %v4652_v12 = vpack.c.bf16 %v4641_v52, %v4640_v0 }
0x1ef1   :  { %v4647_v18 = vmax.f32 %v4629_v53, 0.0  ;;  %v4621_v28 = vadd.f32 %v4620_v41, %v8331_v31  ;;  %v4638_v53 = vmax.f32 %v4594_v14, 0.0  ;;  %v4586_v41 = vadd.f32 %v4585_v15, %v8355_v56 }
0x1ef2   :  { %v4637_v49 = vmax.f32 %v4589_v37, 0.0 }
0x1ef3   :  { %v4655_v21 = vpack.c.bf16 %v4647_v18, %v4646_v50  ;;  %v4645_v32 = vmax.f32 %v4621_v28, 0.0  ;;  %v4651_v17 = vpack.c.bf16 %v4639_v1, %v4638_v53  ;;  %v4578_v50 = vadd.f32 %v7555_v47, %v8363_v59 }
0x1ef4   :  { %v4636_v18 = vmax.f32 %v4586_v41, 0.0  ;;  %v4573_v28 = vadd.f32 %v4572_v58, %v8368_v16 }
0x1ef5   :  { %v4654_v60 = vpack.c.bf16 %v4645_v32, %v4644_v36  ;;  %7569 = vmatprep.subr.bf16.mxu0 %v4655_v21  ;;  %v4634_v22 = vmax.f32 %v4578_v50, 0.0  ;;  %v4570_v36 = vadd.f32 %v4569_v9, %v8373_v13 }
0x1ef6   :  { %7570 = vmatpush3.bf16.msra.mxu0 %v4655_v21  ;;  %v4650_v48 = vpack.c.bf16 %v4637_v49, %v4636_v18  ;;  %v4633_v21 = vmax.f32 %v4573_v28, 0.0 }
0x1ef7   :  { %7571 = vmatprep.subr.bf16.mxu0 %v4654_v60  ;;  %v4649_v15 = vpack.c.bf16 %v4635_v57, %v4634_v22  ;;  %v4632_v5 = vmax.f32 %v4570_v36, 0.0 }
0x1ef9   :  { %v4648_v32 = vpack.c.bf16 %v4633_v21, %v4632_v5 }
0x1efa   :  { %7572 = vmatpush3.bf16.msra.mxu0 %v4654_v60 }
0x1efb   :  { %7573 = vmatprep.subr.bf16.mxu0 %v4653_v35 }
0x1efe   :  { %7574 = vmatpush3.bf16.msra.mxu0 %v4653_v35 }
0x1eff   :  { %7575 = vmatprep.subr.bf16.mxu0 %v4652_v12 }
0x1f02   :  { %7576 = vmatpush3.bf16.msra.mxu0 %v4652_v12 }
0x1f03   :  { %7577 = vmatprep.subr.bf16.mxu0 %v4651_v17 }
0x1f06   :  { %7578 = vmatpush3.bf16.msra.mxu0 %v4651_v17 }
0x1f07   :  { %7579 = vmatprep.subr.bf16.mxu0 %v4650_v48 }
0x1f0a   :  { %7580 = vmatpush3.bf16.msra.mxu0 %v4650_v48 }
0x1f0b   :  { %7581 = vmatprep.subr.bf16.mxu0 %v4649_v15 }
0x1f0e   :  { %7582 = vmatpush3.bf16.msra.mxu0 %v4649_v15 }
0x1f0f   :  { %7583 = vmatprep.subr.bf16.mxu0 %v4648_v32 }
0x1f12   :  { %7584 = vmatpush3.bf16.msra.mxu0 %v4648_v32 }
0x1f15   :  { %7586 = vmatmul.mubr.bf16.vlgmr.msra.gmra.mxu0 %v9110_v2 }
0x1f16   :  { %7589 = vmatprep.mubr.bf16.mxu0 %v9116_v29 }
0x1f1d   :  { %7590 = vmatmul.mubr.bf16.gmra.mxu0 %v9122_v23 }
0x1f1e   :  { %7593 = vmatprep.mubr.bf16.mxu0 %v9128_v43 }
0x1f25   :  { %7594 = vmatmul.mubr.bf16.gmra.mxu0 %v9134_v42 }
0x1f26   :  { %7597 = vmatprep.mubr.bf16.mxu0 %v9140_v44 }
0x1f2d   :  { %7598 = vmatmul.mubr.bf16.gmra.mxu0 %v9146_v10 }
0x1f2e   :  { %7649 = vmatprep.mubr.bf16.mxu0 %v9152_v38 }
0x1fd5   :  { %v7587_v47 = vpop.f32.mrf.mxu0 }
0x1fd7   :  { %v4690_v9 = vpop.f32.mrf.mxu0 }
0x1fd9   :  { %v7588_v58 = vpop.f32.mrf.mxu0 }
0x1fda   :  { %v4754_v60 = vpack.c.bf16 %v7588_v58, %v7587_v47 }
0x1fdb   :  { %v4693_v55 = vpop.f32.mrf.mxu0 }
0x1fdc   :  { %v4753_v25 = vpack.c.bf16 %v4693_v55, %v4690_v9 }
0x1fdd   :  { %v7591_v8 = vpop.f32.mrf.mxu0 }
0x1fde   :  { %7617 = vmatprep.mubr.bf16.mxu1 %v4753_v25 }
0x1fdf   :  { %v4706_v6 = vpop.f32.mrf.mxu0  ;;  %7618 = vmatmul.mubr.bf16.vlgmr.msra.gmra.mxu1 %v4754_v60 }
0x1fe0   :  { %7666 = vmatpush3.bf16.msra.mxu1 %v9155_v7 }
0x1fe1   :  { %v7592_v62 = vpop.f32.mrf.mxu0  ;;  %7667 = vmatprep.subr.bf16.mxu1 %v9198_v19 }
0x1fe2   :  { %v4756_v14 = vpack.c.bf16 %v7592_v62, %v7591_v8 }
0x1fe3   :  { %v4709_v35 = vpop.f32.mrf.mxu0 }
0x1fe4   :  { %v4755_v52 = vpack.c.bf16 %v4709_v35, %v4706_v6  ;;  %7668 = vmatpush3.bf16.msra.mxu1 %v9198_v19 }
0x1fe5   :  { %v7595_v0 = vpop.f32.mrf.mxu0  ;;  %7669 = vmatprep.subr.bf16.mxu1 %v9202_v45 }
0x1fe6   :  { %7621 = vmatprep.mubr.bf16.mxu1 %v4755_v52 }
0x1fe7   :  { %v4722_v1 = vpop.f32.mrf.mxu0  ;;  %7622 = vmatmul.mubr.bf16.gmra.mxu1 %v4756_v14 }
0x1fe8   :  { %7670 = vmatpush3.bf16.msra.mxu1 %v9202_v45 }
0x1fe9   :  { %v7596_v37 = vpop.f32.mrf.mxu0  ;;  %7671 = vmatprep.subr.bf16.mxu1 %v9206_v39 }
0x1fea   :  { %v4758_v41 = vpack.c.bf16 %v7596_v37, %v7595_v0 }
0x1feb   :  { %v4725_v12 = vpop.f32.mrf.mxu0 }
0x1fec   :  { %v4757_v53 = vpack.c.bf16 %v4725_v12, %v4722_v1  ;;  %7672 = vmatpush3.bf16.msra.mxu1 %v9206_v39 }
0x1fed   :  { %v7599_v11 = vpop.f32.mrf.mxu0  ;;  %7673 = vmatprep.subr.bf16.mxu1 %v9210_v4 }
0x1fee   :  { %7625 = vmatprep.mubr.bf16.mxu1 %v4757_v53 }
0x1fef   :  { %v4738_v17 = vpop.f32.mrf.mxu0  ;;  %7626 = vmatmul.mubr.bf16.gmra.mxu1 %v4758_v41 }
0x1ff0   :  { %7674 = vmatpush3.bf16.msra.mxu1 %v9210_v4 }
0x1ff1   :  { %v7600_v49 = vpop.f32.mrf.mxu0  ;;  %7675 = vmatprep.subr.bf16.mxu1 %v9214_v51 }
0x1ff2   :  { %v4760_v57 = vpack.c.bf16 %v7600_v49, %v7599_v11 }
0x1ff3   :  { %v4741_v50 = vpop.f32.mrf.mxu0 }
0x1ff4   :  { %v4759_v18 = vpack.c.bf16 %v4741_v50, %v4738_v17  ;;  %7676 = vmatpush3.bf16.msra.mxu1 %v9214_v51 }
0x1ff5   :  { %7677 = vmatprep.subr.bf16.mxu1 %v9218_v46 }
0x1ff6   :  { %7629 = vmatprep.mubr.bf16.mxu1 %v4759_v18 }
0x1ff7   :  { %7630 = vmatmul.mubr.bf16.gmra.mxu1 %v4760_v57 }
0x1ff8   :  { %7678 = vmatpush3.bf16.msra.mxu1 %v9218_v46 }
0x1ff9   :  { %7679 = vmatprep.subr.bf16.mxu1 %v9222_v33 }
0x1ffc   :  { %7680 = vmatpush3.bf16.msra.mxu1 %v9222_v33 }
0x1ffd   :  { %7729 = vmatprep.subr.bf16.mxu1 %v9155_v7 }
0x209f   :  { %v7619_v28 = vpop.f32.mrf.mxu1 }
0x20a1   :  { %v4795_v48 = vpop.f32.mrf.mxu1 }
0x20a3   :  { %v7620_v22 = vpop.f32.mrf.mxu1 }
0x20a5   :  { %v4798_v36 = vpop.f32.mrf.mxu1 }
0x20a7   :  { %v7623_v15 = vpop.f32.mrf.mxu1 }
0x20a9   :  { %v4811_v21 = vpop.f32.mrf.mxu1 }
0x20ab   :  { %v7624_v5 = vpop.f32.mrf.mxu1 }
0x20ad   :  { %v4814_v32 = vpop.f32.mrf.mxu1 }
0x20af   :  { %v7627_v47 = vpop.f32.mrf.mxu1 }
0x20b0   :  { %v4836_v12 = vadd.f32 %v7627_v47, %v8335_v34  ;;  %v4820_v47 = vadd.f32 %v7623_v15, %v8348_v63 }
0x20b1   :  { %v4827_v9 = vpop.f32.mrf.mxu1 }
0x20b2   :  { %v4868_v18 = vmax.f32 %v4836_v12, 0.0  ;;  %v4828_v57 = vadd.f32 %v4827_v9, %v8342_v3  ;;  %v4807_v9 = vadd.f32 %v7620_v22, %v8359_v54 }
0x20b3   :  { %v7628_v58 = vpop.f32.mrf.mxu1 }
0x20b4   :  { %v4839_v14 = vadd.f32 %v7628_v58, %v8329_v30  ;;  %v4823_v58 = vadd.f32 %v7624_v5, %v8345_v20  ;;  %v4861_v15 = vmax.f32 %v4807_v9, 0.0 }
0x20b5   :  { %v4830_v55 = vpop.f32.mrf.mxu1 }
0x20b6   :  { %v4869_v17 = vmax.f32 %v4839_v14, 0.0  ;;  %v4831_v49 = vadd.f32 %v4830_v55, %v8339_v40 }
0x20b7   :  { %v7631_v25 = vpop.f32.mrf.mxu1 }
0x20b8   :  { %v4852_v8 = vadd.f32 %v7631_v25, %v8322_v24  ;;  %v4879_v25 = vpack.c.bf16 %v4869_v17, %v4868_v18 }
0x20b9   :  { %v4843_v60 = vpop.f32.mrf.mxu1 }
0x20ba   :  { %v4844_v62 = vadd.f32 %v4843_v60, %v8324_v26  ;;  %v4872_v0 = vmax.f32 %v4852_v8, 0.0  ;;  %v4867_v60 = vmax.f32 %v4831_v49, 0.0  ;;  %v4866_v8 = vmax.f32 %v4828_v57, 0.0 }
0x20bb   :  { %v7632_v6 = vpop.f32.mrf.mxu1 }
0x20bc   :  { %v4855_v35 = vadd.f32 %v7632_v6, %v8326_v27  ;;  %v4870_v53 = vmax.f32 %v4844_v62, 0.0  ;;  %v4865_v6 = vmax.f32 %v4823_v58, 0.0  ;;  %v4815_v62 = vadd.f32 %v4814_v32, %v8351_v61 }
0x20bd   :  { %v4846_v52 = vpop.f32.mrf.mxu1  ;;  %v4878_v55 = vpack.c.bf16 %v4867_v60, %v4866_v8 }
0x20be   :  { %v4873_v1 = vmax.f32 %v4855_v35, 0.0  ;;  %v4847_v37 = vadd.f32 %v4846_v52, %v8331_v31  ;;  %v4864_v35 = vmax.f32 %v4820_v47, 0.0  ;;  %v4812_v52 = vadd.f32 %v4811_v21, %v8355_v56 }
0x20bf   :  { %v4863_v5 = vmax.f32 %v4815_v62, 0.0 }
0x20c0   :  { %v4881_v41 = vpack.c.bf16 %v4873_v1, %v4872_v0  ;;  %v4871_v11 = vmax.f32 %v4847_v37, 0.0  ;;  %v4877_v14 = vpack.c.bf16 %v4865_v6, %v4864_v35  ;;  %v4804_v0 = vadd.f32 %v7619_v28, %v8363_v59 }
0x20c1   :  { %v4862_v1 = vmax.f32 %v4812_v52, 0.0  ;;  %v4799_v37 = vadd.f32 %v4798_v36, %v8368_v16 }
0x20c2   :  { %v4880_v50 = vpack.c.bf16 %v4871_v11, %v4870_v53  ;;  %7633 = vmatprep.subr.bf16.mxu0 %v4881_v41  ;;  %v4860_v32 = vmax.f32 %v4804_v0, 0.0  ;;  %v4796_v53 = vadd.f32 %v4795_v48, %v8373_v13 }
0x20c3   :  { %7634 = vmatpush3.bf16.msra.mxu0 %v4881_v41  ;;  %v4876_v12 = vpack.c.bf16 %v4863_v5, %v4862_v1  ;;  %v4859_v41 = vmax.f32 %v4799_v37, 0.0 }
0x20c4   :  { %7635 = vmatprep.subr.bf16.mxu0 %v4880_v50  ;;  %v4875_v21 = vpack.c.bf16 %v4861_v15, %v4860_v32  ;;  %v4858_v22 = vmax.f32 %v4796_v53, 0.0 }
0x20c6   :  { %v4874_v11 = vpack.c.bf16 %v4859_v41, %v4858_v22 }
0x20c7   :  { %7636 = vmatpush3.bf16.msra.mxu0 %v4880_v50 }
0x20c8   :  { %7637 = vmatprep.subr.bf16.mxu0 %v4879_v25 }
0x20cb   :  { %7638 = vmatpush3.bf16.msra.mxu0 %v4879_v25 }
0x20cc   :  { %7639 = vmatprep.subr.bf16.mxu0 %v4878_v55 }
0x20cf   :  { %7640 = vmatpush3.bf16.msra.mxu0 %v4878_v55 }
0x20d0   :  { %7641 = vmatprep.subr.bf16.mxu0 %v4877_v14 }
0x20d3   :  { %7642 = vmatpush3.bf16.msra.mxu0 %v4877_v14 }
0x20d4   :  { %7643 = vmatprep.subr.bf16.mxu0 %v4876_v12 }
0x20d7   :  { %7644 = vmatpush3.bf16.msra.mxu0 %v4876_v12 }
0x20d8   :  { %7645 = vmatprep.subr.bf16.mxu0 %v4875_v21 }
0x20db   :  { %7646 = vmatpush3.bf16.msra.mxu0 %v4875_v21 }
0x20dc   :  { %7647 = vmatprep.subr.bf16.mxu0 %v4874_v11 }
0x20df   :  { %7648 = vmatpush3.bf16.msra.mxu0 %v4874_v11 }
0x20e2   :  { %7650 = vmatmul.mubr.bf16.vlgmr.msra.gmra.mxu0 %v9110_v2 }
0x20e3   :  { %7653 = vmatprep.mubr.bf16.mxu0 %v9116_v29 }
0x20ea   :  { %7654 = vmatmul.mubr.bf16.gmra.mxu0 %v9122_v23 }
0x20eb   :  { %7657 = vmatprep.mubr.bf16.mxu0 %v9128_v43 }
0x20f2   :  { %7658 = vmatmul.mubr.bf16.gmra.mxu0 %v9134_v42 }
0x20f3   :  { %7661 = vmatprep.mubr.bf16.mxu0 %v9140_v44 }
0x20fa   :  { %7662 = vmatmul.mubr.bf16.gmra.mxu0 %v9146_v10 }
0x20fb   :  { %7713 = vmatprep.mubr.bf16.mxu0 %v9152_v38 }
0x21a2   :  { %v7651_v28 = vpop.f32.mrf.mxu0 }
0x21a4   :  { %v4916_v48 = vpop.f32.mrf.mxu0 }
0x21a6   :  { %v7652_v36 = vpop.f32.mrf.mxu0 }
0x21a7   :  { %v4980_v50 = vpack.c.bf16 %v7652_v36, %v7651_v28 }
0x21a8   :  { %v4919_v17 = vpop.f32.mrf.mxu0 }
0x21a9   :  { %v4979_v49 = vpack.c.bf16 %v4919_v17, %v4916_v48 }
0x21aa   :  { %v7655_v18 = vpop.f32.mrf.mxu0 }
0x21ab   :  { %7681 = vmatprep.mubr.bf16.mxu1 %v4979_v49 }
0x21ac   :  { %v4932_v57 = vpop.f32.mrf.mxu0  ;;  %7682 = vmatmul.mubr.bf16.vlgmr.msra.gmra.mxu1 %v4980_v50 }
0x21ad   :  { %7730 = vmatpush3.bf16.msra.mxu1 %v9155_v7 }
0x21ae   :  { %v7656_v58 = vpop.f32.mrf.mxu0  ;;  %7731 = vmatprep.subr.bf16.mxu1 %v9198_v19 }
0x21af   :  { %v4982_v38 = vpack.c.bf16 %v7656_v58, %v7655_v18 }
0x21b0   :  { %v4935_v25 = vpop.f32.mrf.mxu0 }
0x21b1   :  { %v4981_v60 = vpack.c.bf16 %v4935_v25, %v4932_v57  ;;  %7732 = vmatpush3.bf16.msra.mxu1 %v9198_v19 }
0x21b2   :  { %v7659_v47 = vpop.f32.mrf.mxu0  ;;  %7733 = vmatprep.subr.bf16.mxu1 %v9202_v45 }
0x21b3   :  { %7685 = vmatprep.mubr.bf16.mxu1 %v4981_v60 }
0x21b4   :  { %v4948_v8 = vpop.f32.mrf.mxu0  ;;  %7686 = vmatmul.mubr.bf16.gmra.mxu1 %v4982_v38 }
0x21b5   :  { %7734 = vmatpush3.bf16.msra.mxu1 %v9202_v45 }
0x21b6   :  { %v7660_v6 = vpop.f32.mrf.mxu0  ;;  %7735 = vmatprep.subr.bf16.mxu1 %v9206_v39 }
0x21b7   :  { %v4984_v55 = vpack.c.bf16 %v7660_v6, %v7659_v47 }
0x21b8   :  { %v4951_v7 = vpop.f32.mrf.mxu0 }
0x21b9   :  { %v4983_v62 = vpack.c.bf16 %v4951_v7, %v4948_v8  ;;  %7736 = vmatpush3.bf16.msra.mxu1 %v9206_v39 }
0x21ba   :  { %v7663_v35 = vpop.f32.mrf.mxu0  ;;  %7737 = vmatprep.subr.bf16.mxu1 %v9210_v4 }
0x21bb   :  { %7689 = vmatprep.mubr.bf16.mxu1 %v4983_v62 }
0x21bc   :  { %v4964_v19 = vpop.f32.mrf.mxu0  ;;  %7690 = vmatmul.mubr.bf16.gmra.mxu1 %v4984_v55 }
0x21bd   :  { %7738 = vmatpush3.bf16.msra.mxu1 %v9210_v4 }
0x21be   :  { %v7664_v52 = vpop.f32.mrf.mxu0  ;;  %7739 = vmatprep.subr.bf16.mxu1 %v9214_v51 }
0x21bf   :  { %v4986_v14 = vpack.c.bf16 %v7664_v52, %v7663_v35 }
0x21c0   :  { %v4967_v45 = vpop.f32.mrf.mxu0 }
0x21c1   :  { %v4985_v9 = vpack.c.bf16 %v4967_v45, %v4964_v19  ;;  %7740 = vmatpush3.bf16.msra.mxu1 %v9214_v51 }
0x21c2   :  { %7741 = vmatprep.subr.bf16.mxu1 %v9218_v46 }
0x21c3   :  { %7693 = vmatprep.mubr.bf16.mxu1 %v4985_v9 }
0x21c4   :  { %7694 = vmatmul.mubr.bf16.gmra.mxu1 %v4986_v14 }
0x21c5   :  { %7742 = vmatpush3.bf16.msra.mxu1 %v9218_v46 }
0x21c6   :  { %7743 = vmatprep.subr.bf16.mxu1 %v9222_v33 }
0x21c9   :  { %7744 = vmatpush3.bf16.msra.mxu1 %v9222_v33 }
0x226c   :  { %v7683_v39 = vpop.f32.mrf.mxu1 }
0x226e   :  { %v5021_v4 = vpop.f32.mrf.mxu1 }
0x2270   :  { %v7684_v5 = vpop.f32.mrf.mxu1 }
0x2272   :  { %v5024_v0 = vpop.f32.mrf.mxu1 }
0x2274   :  { %v7687_v1 = vpop.f32.mrf.mxu1 }
0x2275   :  { %v5046_v35 = vadd.f32 %v7687_v1, %v8348_v63 }
0x2276   :  { %v5037_v15 = vpop.f32.mrf.mxu1 }
0x2277   :  { %v5090_v14 = vmax.f32 %v5046_v35, 0.0 }
0x2278   :  { %v7688_v37 = vpop.f32.mrf.mxu1 }
0x2279   :  { %v5049_v7 = vadd.f32 %v7688_v37, %v8345_v20 }
0x227a   :  { %v5040_v12 = vpop.f32.mrf.mxu1 }
0x227b   :  { %v5091_v52 = vmax.f32 %v5049_v7, 0.0  ;;  %v5041_v45 = vadd.f32 %v5040_v12, %v8351_v61 }
0x227c   :  { %v7691_v51 = vpop.f32.mrf.mxu1 }
0x227d   :  { %v5062_v18 = vadd.f32 %v7691_v51, %v8335_v34  ;;  %v5038_v51 = vadd.f32 %v5037_v15, %v8355_v56  ;;  %v5089_v37 = vmax.f32 %v5041_v45, 0.0  ;;  %v7865_v45 = vld [vmem:[#allocation11 + $0x8] sm:$0xff]  }
0x227e   :  { %v5053_v32 = vpop.f32.mrf.mxu1 }
0x227f   :  { %v5094_v8 = vmax.f32 %v5062_v18, 0.0  ;;  %v5054_v6 = vadd.f32 %v5053_v32, %v8342_v3  ;;  %v5033_v32 = vadd.f32 %v7684_v5, %v8359_v54 }
0x2280   :  { %v7692_v53 = vpop.f32.mrf.mxu1 }
0x2281   :  { %v5065_v36 = vadd.f32 %v7692_v53, %v8329_v30  ;;  %v5092_v19 = vmax.f32 %v5054_v6, 0.0  ;;  %v5103_v53 = vpack.c.bf16 %v5091_v52, %v5090_v14  ;;  %v5087_v1 = vmax.f32 %v5033_v32, 0.0  ;;  %v7864_v52 = vld [vmem:[#allocation11 + $0x10] sm:$0xff]  }
0x2282   :  { %v5056_v21 = vpop.f32.mrf.mxu1 }
0x2283   :  { %v5095_v60 = vmax.f32 %v5065_v36, 0.0  ;;  %v5057_v38 = vadd.f32 %v5056_v21, %v8339_v40  ;;  %v5030_v21 = vadd.f32 %v7683_v39, %v8363_v59  ;;  %v7859_v39 = vld [vmem:[#allocation11 + $0x38] sm:$0xff]  }
0x2284   :  { %v7695_v41 = vpop.f32.mrf.mxu1  ;;  %7793 = vmatprep.subr.bf16.mxu1 %v7859_v39 }
0x2285   :  { %v5078_v46 = vadd.f32 %v7695_v41, %v8322_v24  ;;  %v5105_v62 = vpack.c.bf16 %v5095_v60, %v5094_v8  ;;  %v5093_v55 = vmax.f32 %v5057_v38, 0.0  ;;  %v5088_v41 = vmax.f32 %v5038_v51, 0.0 }
0x2286   :  { %v5069_v22 = vpop.f32.mrf.mxu1  ;;  %v5086_v12 = vmax.f32 %v5030_v21, 0.0 }
0x2287   :  { %v5070_v28 = vadd.f32 %v5069_v22, %v8324_v26  ;;  %v5098_v17 = vmax.f32 %v5078_v46, 0.0  ;;  %v5104_v9 = vpack.c.bf16 %v5093_v55, %v5092_v19  ;;  %v5025_v22 = vadd.f32 %v5024_v0, %v8368_v16  ;;  %v7861_v0 = vld [vmem:[#allocation11 + $0x28] sm:$0xff]  }
0x2288   :  { %v7696_v11 = vpop.f32.mrf.mxu1  ;;  %v5102_v46 = vpack.c.bf16 %v5089_v37, %v5088_v41  ;;  %v5101_v15 = vpack.c.bf16 %v5087_v1, %v5086_v12 }
0x2289   :  { %v5081_v33 = vadd.f32 %v7696_v11, %v8326_v27  ;;  %v5096_v57 = vmax.f32 %v5070_v28, 0.0  ;;  %v5022_v11 = vadd.f32 %v5021_v4, %v8373_v13  ;;  %v5085_v28 = vmax.f32 %v5025_v22, 0.0  ;;  %v7860_v4 = vld [vmem:[#allocation11 + $0x30] sm:$0xff]  }
0x228a   :  { %v5072_v48 = vpop.f32.mrf.mxu1 }
0x228b   :  { %v5099_v49 = vmax.f32 %v5081_v33, 0.0  ;;  %v5073_v50 = vadd.f32 %v5072_v48, %v8331_v31  ;;  %v5084_v5 = vmax.f32 %v5022_v11, 0.0 }
0x228d   :  { %v5107_v58 = vpack.c.bf16 %v5099_v49, %v5098_v17  ;;  %v5097_v25 = vmax.f32 %v5073_v50, 0.0  ;;  %v5100_v33 = vpack.c.bf16 %v5085_v28, %v5084_v5 }
0x228f   :  { %v5106_v47 = vpack.c.bf16 %v5097_v25, %v5096_v57  ;;  %7697 = vmatprep.subr.bf16.mxu0 %v5107_v58 }
0x2290   :  { %7698 = vmatpush3.bf16.msra.mxu0 %v5107_v58 }
0x2291   :  { %7699 = vmatprep.subr.bf16.mxu0 %v5106_v47 }
0x2294   :  { %7700 = vmatpush3.bf16.msra.mxu0 %v5106_v47 }
0x2295   :  { %7701 = vmatprep.subr.bf16.mxu0 %v5105_v62 }
0x2298   :  { %7702 = vmatpush3.bf16.msra.mxu0 %v5105_v62 }
0x2299   :  { %7703 = vmatprep.subr.bf16.mxu0 %v5104_v9 }
0x229c   :  { %7704 = vmatpush3.bf16.msra.mxu0 %v5104_v9  ;;  %v7866_v9 = vld [vmem:[#allocation11] sm:$0xff]  }
0x229d   :  { %7705 = vmatprep.subr.bf16.mxu0 %v5103_v53 }
0x22a0   :  { %7706 = vmatpush3.bf16.msra.mxu0 %v5103_v53 }
0x22a1   :  { %7707 = vmatprep.subr.bf16.mxu0 %v5102_v46 }
0x22a4   :  { %7708 = vmatpush3.bf16.msra.mxu0 %v5102_v46 }
0x22a5   :  { %7709 = vmatprep.subr.bf16.mxu0 %v5101_v15 }
0x22a8   :  { %7710 = vmatpush3.bf16.msra.mxu0 %v5101_v15 }
0x22a9   :  { %7711 = vmatprep.subr.bf16.mxu0 %v5100_v33 }
0x22ac   :  { %7712 = vmatpush3.bf16.msra.mxu0 %v5100_v33 }
0x22ad   :  { %7761 = vmatprep.subr.bf16.mxu0 %v7859_v39 }
0x22af   :  { %7714 = vmatmul.mubr.bf16.vlgmr.msra.gmra.mxu0 %v9110_v2  ;;  %v7862_v2 = vld [vmem:[#allocation11 + $0x20] sm:$0xff]  }
0x22b0   :  { %7717 = vmatprep.mubr.bf16.mxu0 %v9116_v29  ;;  %7762 = vmatpush3.bf16.msra.mxu0 %v7859_v39  ;;  %v7863_v29 = vld [vmem:[#allocation11 + $0x18] sm:$0xff]  }
0x22b1   :  { %7763 = vmatprep.subr.bf16.mxu0 %v7860_v4 }
0x22b4   :  { %7764 = vmatpush3.bf16.msra.mxu0 %v7860_v4 }
0x22b5   :  { %7765 = vmatprep.subr.bf16.mxu0 %v7861_v0 }
0x22b7   :  { %7718 = vmatmul.mubr.bf16.gmra.mxu0 %v9122_v23 }
0x22b8   :  { %7721 = vmatprep.mubr.bf16.mxu0 %v9128_v43  ;;  %7766 = vmatpush3.bf16.msra.mxu0 %v7861_v0 }
0x22b9   :  { %7767 = vmatprep.subr.bf16.mxu0 %v7862_v2 }
0x22bc   :  { %7768 = vmatpush3.bf16.msra.mxu0 %v7862_v2 }
0x22bd   :  { %7769 = vmatprep.subr.bf16.mxu0 %v7863_v29 }
0x22bf   :  { %7722 = vmatmul.mubr.bf16.gmra.mxu0 %v9134_v42 }
0x22c0   :  { %7725 = vmatprep.mubr.bf16.mxu0 %v9140_v44  ;;  %7770 = vmatpush3.bf16.msra.mxu0 %v7863_v29 }
0x22c1   :  { %7771 = vmatprep.subr.bf16.mxu0 %v7864_v52 }
0x22c4   :  { %7772 = vmatpush3.bf16.msra.mxu0 %v7864_v52 }
0x22c5   :  { %7773 = vmatprep.subr.bf16.mxu0 %v7865_v45 }
0x22c7   :  { %7726 = vmatmul.mubr.bf16.gmra.mxu0 %v9146_v10 }
0x22c8   :  { %7774 = vmatpush3.bf16.msra.mxu0 %v7865_v45 }
0x22c9   :  { %7775 = vmatprep.subr.bf16.mxu0 %v7866_v9 }
0x22cc   :  { %7776 = vmatpush3.bf16.msra.mxu0 %v7866_v9 }
0x236f   :  { %v7715_v23 = vpop.f32.mrf.mxu0 }
0x2371   :  { %v5142_v43 = vpop.f32.mrf.mxu0 }
0x2373   :  { %v7716_v42 = vpop.f32.mrf.mxu0 }
0x2374   :  { %v5206_v48 = vpack.c.bf16 %v7716_v42, %v7715_v23 }
0x2375   :  { %v5145_v44 = vpop.f32.mrf.mxu0 }
0x2376   :  { %v5205_v10 = vpack.c.bf16 %v5145_v44, %v5142_v43 }
0x2377   :  { %v7719_v36 = vpop.f32.mrf.mxu0 }
0x2378   :  { %7745 = vmatprep.mubr.bf16.mxu1 %v5205_v10 }
0x2379   :  { %v5158_v17 = vpop.f32.mrf.mxu0  ;;  %7746 = vmatmul.mubr.bf16.vlgmr.msra.gmra.mxu1 %v5206_v48 }
0x237a   :  { %7801 = vmatpush3.bf16.msra.mxu1 %v7859_v39 }
0x237b   :  { %v7720_v49 = vpop.f32.mrf.mxu0  ;;  %7794 = vmatprep.subr.bf16.mxu1 %v7860_v4 }
0x237c   :  { %v5208_v57 = vpack.c.bf16 %v7720_v49, %v7719_v36 }
0x237d   :  { %v5161_v50 = vpop.f32.mrf.mxu0 }
0x237e   :  { %v5207_v18 = vpack.c.bf16 %v5161_v50, %v5158_v17  ;;  %7802 = vmatpush3.bf16.msra.mxu1 %v7860_v4 }
0x237f   :  { %v7723_v58 = vpop.f32.mrf.mxu0  ;;  %7795 = vmatprep.subr.bf16.mxu1 %v7861_v0 }
0x2380   :  { %7749 = vmatprep.mubr.bf16.mxu1 %v5207_v18 }
0x2381   :  { %v5174_v25 = vpop.f32.mrf.mxu0  ;;  %7750 = vmatmul.mubr.bf16.gmra.mxu1 %v5208_v57 }
0x2382   :  { %7803 = vmatpush3.bf16.msra.mxu1 %v7861_v0 }
0x2383   :  { %v7724_v60 = vpop.f32.mrf.mxu0  ;;  %7796 = vmatprep.subr.bf16.mxu1 %v7862_v2 }
0x2384   :  { %v5210_v8 = vpack.c.bf16 %v7724_v60, %v7723_v58 }
0x2385   :  { %v5177_v38 = vpop.f32.mrf.mxu0 }
0x2386   :  { %v5209_v47 = vpack.c.bf16 %v5177_v38, %v5174_v25  ;;  %7804 = vmatpush3.bf16.msra.mxu1 %v7862_v2 }
0x2387   :  { %v7727_v6 = vpop.f32.mrf.mxu0  ;;  %7797 = vmatprep.subr.bf16.mxu1 %v7863_v29 }
0x2388   :  { %7753 = vmatprep.mubr.bf16.mxu1 %v5209_v47 }
0x2389   :  { %v5190_v7 = vpop.f32.mrf.mxu0  ;;  %7754 = vmatmul.mubr.bf16.gmra.mxu1 %v5210_v8 }
0x238a   :  { %7805 = vmatpush3.bf16.msra.mxu1 %v7863_v29 }
0x238b   :  { %v7728_v62 = vpop.f32.mrf.mxu0  ;;  %7798 = vmatprep.subr.bf16.mxu1 %v7864_v52 }
0x238c   :  { %v5212_v19 = vpack.c.bf16 %v7728_v62, %v7727_v6 }
0x238d   :  { %v5193_v55 = vpop.f32.mrf.mxu0 }
0x238e   :  { %v5211_v35 = vpack.c.bf16 %v5193_v55, %v5190_v7  ;;  %7806 = vmatpush3.bf16.msra.mxu1 %v7864_v52 }
0x238f   :  { %7799 = vmatprep.subr.bf16.mxu1 %v7865_v45 }
0x2390   :  { %7757 = vmatprep.mubr.bf16.mxu1 %v5211_v35 }
0x2391   :  { %7758 = vmatmul.mubr.bf16.gmra.mxu1 %v5212_v19 }
0x2392   :  { %7807 = vmatpush3.bf16.msra.mxu1 %v7865_v45 }
0x2393   :  { %7800 = vmatprep.subr.bf16.mxu1 %v7866_v9 }
0x2396   :  { %7808 = vmatpush3.bf16.msra.mxu1 %v7866_v9 }
0x2439   :  { %v7747_v14 = vpop.f32.mrf.mxu1 }
0x243a   :  { %v5256_v51 = vadd.f32 %v7747_v14, %v8363_v59 }
0x243b   :  { %v5247_v32 = vpop.f32.mrf.mxu1 }
0x243c   :  { %v5312_v53 = vmax.f32 %v5256_v51, 0.0  ;;  %v5248_v37 = vadd.f32 %v5247_v32, %v8373_v13 }
0x243d   :  { %v7748_v21 = vpop.f32.mrf.mxu1 }
0x243e   :  { %5328 = vst [vmem:[#allocation13 + $0x10] sm:$0xff] %v5312_v53  ;;  %v5310_v41 = vmax.f32 %v5248_v37, 0.0  ;;  %v5259_v1 = vadd.f32 %v7748_v21, %v8359_v54 }
0x243f   :  { %v5250_v22 = vpop.f32.mrf.mxu1 }
0x2440   :  { %5326 = vst [vmem:[#allocation13] sm:$0xff] %v5310_v41  ;;  %v5313_v46 = vmax.f32 %v5259_v1, 0.0  ;;  %v5251_v12 = vadd.f32 %v5250_v22, %v8368_v16 }
0x2441   :  { %v7751_v11 = vpop.f32.mrf.mxu1 }
0x2442   :  { %5329 = vst [vmem:[#allocation13 + $0x18] sm:$0xff] %v5313_v46  ;;  %v5311_v15 = vmax.f32 %v5251_v12, 0.0  ;;  %v5272_v28 = vadd.f32 %v7751_v11, %v8348_v63  ;;  %v5343_v39 = vpack.c.bf16 %v5313_v46, %v5312_v53 }
0x2443   :  { %v5263_v59 = vpop.f32.mrf.mxu1 }
0x2444   :  { %5327 = vst [vmem:[#allocation13 + $0x8] sm:$0xff] %v5311_v15  ;;  %v5342_v5 = vpack.c.bf16 %v5311_v15, %v5310_v41  ;;  %v5316_v33 = vmax.f32 %v5272_v28, 0.0  ;;  %v5264_v13 = vadd.f32 %v5263_v59, %v8355_v56 }
0x2445   :  { %v7752_v4 = vpop.f32.mrf.mxu1 }
0x2446   :  { %5332 = vst [vmem:[#allocation13 + $0x30] sm:$0xff] %v5316_v33  ;;  %v5314_v54 = vmax.f32 %v5264_v13, 0.0  ;;  %v5275_v0 = vadd.f32 %v7752_v4, %v8345_v20  ;;  %7777 = vmatprep.mubr.bf16.mxu0 %v5342_v5 }
0x2447   :  { %v5266_v2 = vpop.f32.mrf.mxu1  ;;  %7778 = vmatmul.mubr.bf16.vlgmr.msra.gmra.mxu0 %v5343_v39 }
0x2448   :  { %5330 = vst [vmem:[#allocation13 + $0x20] sm:$0xff] %v5314_v54  ;;  %v5317_v16 = vmax.f32 %v5275_v0, 0.0  ;;  %v5267_v29 = vadd.f32 %v5266_v2, %v8351_v61 }
0x2449   :  { %v7755_v63 = vpop.f32.mrf.mxu1 }
0x244a   :  { %5333 = vst [vmem:[#allocation13 + $0x38] sm:$0xff] %v5317_v16  ;;  %v5315_v23 = vmax.f32 %v5267_v29, 0.0  ;;  %v5288_v43 = vadd.f32 %v7755_v63, %v8335_v34  ;;  %v5345_v48 = vpack.c.bf16 %v5317_v16, %v5316_v33 }
0x244b   :  { %v5279_v42 = vpop.f32.mrf.mxu1 }
0x244c   :  { %5331 = vst [vmem:[#allocation13 + $0x28] sm:$0xff] %v5315_v23  ;;  %v5344_v56 = vpack.c.bf16 %v5315_v23, %v5314_v54  ;;  %v5320_v44 = vmax.f32 %v5288_v43, 0.0  ;;  %v5280_v10 = vadd.f32 %v5279_v42, %v8342_v3 }
0x244d   :  { %v7756_v20 = vpop.f32.mrf.mxu1 }
0x244e   :  { %5336 = vst [vmem:[#allocation13 + $0x50] sm:$0xff] %v5320_v44  ;;  %v5318_v36 = vmax.f32 %v5280_v10, 0.0  ;;  %v5291_v17 = vadd.f32 %v7756_v20, %v8329_v30  ;;  %7781 = vmatprep.mubr.bf16.mxu0 %v5344_v56 }
0x244f   :  { %v5282_v49 = vpop.f32.mrf.mxu1  ;;  %7782 = vmatmul.mubr.bf16.gmra.mxu0 %v5345_v48 }
0x2450   :  { %5334 = vst [vmem:[#allocation13 + $0x40] sm:$0xff] %v5318_v36  ;;  %v5321_v61 = vmax.f32 %v5291_v17, 0.0  ;;  %v5283_v50 = vadd.f32 %v5282_v49, %v8339_v40 }
0x2451   :  { %v7759_v34 = vpop.f32.mrf.mxu1 }
0x2452   :  { %5337 = vst [vmem:[#allocation13 + $0x58] sm:$0xff] %v5321_v61  ;;  %v5319_v18 = vmax.f32 %v5283_v50, 0.0  ;;  %v5304_v57 = vadd.f32 %v7759_v34, %v8322_v24  ;;  %v5347_v38 = vpack.c.bf16 %v5321_v61, %v5320_v44 }
0x2453   :  { %v5295_v58 = vpop.f32.mrf.mxu1 }
0x2454   :  { %5335 = vst [vmem:[#allocation13 + $0x48] sm:$0xff] %v5319_v18  ;;  %v5346_v3 = vpack.c.bf16 %v5319_v18, %v5318_v36  ;;  %v5324_v25 = vmax.f32 %v5304_v57, 0.0  ;;  %v5296_v60 = vadd.f32 %v5295_v58, %v8324_v26 }
0x2455   :  { %v7760_v30 = vpop.f32.mrf.mxu1 }
0x2456   :  { %5340 = vst [vmem:[#allocation13 + $0x70] sm:$0xff] %v5324_v25  ;;  %v5322_v47 = vmax.f32 %v5296_v60, 0.0  ;;  %v5307_v8 = vadd.f32 %v7760_v30, %v8326_v27  ;;  %7785 = vmatprep.mubr.bf16.mxu1 %v5346_v3 }
0x2457   :  { %v5298_v6 = vpop.f32.mrf.mxu1  ;;  %7786 = vmatmul.mubr.bf16.vlgmr.msra.gmra.mxu1 %v5347_v38 }
0x2458   :  { %5338 = vst [vmem:[#allocation13 + $0x60] sm:$0xff] %v5322_v47  ;;  %v5325_v40 = vmax.f32 %v5307_v8, 0.0  ;;  %v5299_v7 = vadd.f32 %v5298_v6, %v8331_v31 }
0x245a   :  { %5341 = vst [vmem:[#allocation13 + $0x78] sm:$0xff] %v5325_v40  ;;  %v5323_v24 = vmax.f32 %v5299_v7, 0.0  ;;  %v5349_v55 = vpack.c.bf16 %v5325_v40, %v5324_v25 }
0x245c   :  { %5339 = vst [vmem:[#allocation13 + $0x68] sm:$0xff] %v5323_v24  ;;  %v5348_v62 = vpack.c.bf16 %v5323_v24, %v5322_v47 }
0x245e   :  { %7789 = vmatprep.mubr.bf16.mxu1 %v5348_v62 }
0x245f   :  { %7790 = vmatmul.mubr.bf16.gmra.mxu1 %v5349_v55 }
0x2460   :  { %8014 = shalt.err (!%p8011_p10)
}
0x2461   :  { %5550 = dma.vmem_to_hbm [thread:$0]  %s5545_s12, 2048, %s9366_s9, [#allocation14], %s8058_s6, %s8058_s6, %s8059_s23  }
0x2462   :  { %s8062_s9 = smov [#allocation12]  }
0x2463   :  { %s5532_s15 = sshll.u32 %s8062_s9, 4  ;;  %s5533_s15 = int_to_ptr.vmem [resolvable:$true] %s5532_s15 }
0x2464   :  { %s8023_s16 = scalar_lea.vmem %s5533_s15, 2048  ;;  %p8028_p12 = scmp.lt.s32.totalorder %s5533_s15, %s5533_s15 }
0x2465   :  { %p8024_p11 = scmp.ne.s32.totalorder %s5533_s15, %s8023_s16  ;;  %p8029_p13 = scmp.lt.s32.totalorder %s8023_s16, %s8023_s16 }
0x2467   :  { %p8030_p0 = por %p8029_p13, %p8028_p12 }
0x2469   :  { %p8031_p1 = pnand %p8030_p0, %p8024_p11 }
0x2507   :  { %v7779_v26 = vpop.f32.mrf.mxu0 }
0x2508   :  { %5513 = vst [vmem:[#allocation12 + $0x10] sm:$0xff] %v7779_v26 }
0x2509   :  { %v5448_v27 = vpop.f32.mrf.mxu0 }
0x250a   :  { %5511 = vst [vmem:[#allocation12] sm:$0xff] %v5448_v27 }
0x250b   :  { %v7780_v31 = vpop.f32.mrf.mxu0 }
0x250c   :  { %5514 = vst [vmem:[#allocation12 + $0x18] sm:$0xff] %v7780_v31 }
0x250d   :  { %v5451_v35 = vpop.f32.mrf.mxu0 }
0x250e   :  { %5512 = vst [vmem:[#allocation12 + $0x8] sm:$0xff] %v5451_v35 }
0x250f   :  { %v7783_v19 = vpop.f32.mrf.mxu0 }
0x2510   :  { %5517 = vst [vmem:[#allocation12 + $0x30] sm:$0xff] %v7783_v19 }
0x2511   :  { %v5464_v52 = vpop.f32.mrf.mxu0 }
0x2512   :  { %5515 = vst [vmem:[#allocation12 + $0x20] sm:$0xff] %v5464_v52 }
0x2513   :  { %v7784_v45 = vpop.f32.mrf.mxu0 }
0x2514   :  { %5518 = vst [vmem:[#allocation12 + $0x38] sm:$0xff] %v7784_v45 }
0x2515   :  { %v5467_v9 = vpop.f32.mrf.mxu0 }
0x2516   :  { %5516 = vst [vmem:[#allocation12 + $0x28] sm:$0xff] %v5467_v9 }
0x2517   :  { %v7787_v14 = vpop.f32.mrf.mxu1 }
0x2518   :  { %5521 = vst [vmem:[#allocation12 + $0x50] sm:$0xff] %v7787_v14 }
0x2519   :  { %v5480_v51 = vpop.f32.mrf.mxu1 }
0x251a   :  { %5519 = vst [vmem:[#allocation12 + $0x40] sm:$0xff] %v5480_v51 }
0x251b   :  { %v7788_v32 = vpop.f32.mrf.mxu1 }
0x251c   :  { %5522 = vst [vmem:[#allocation12 + $0x58] sm:$0xff] %v7788_v32 }
0x251d   :  { %v5483_v53 = vpop.f32.mrf.mxu1 }
0x251e   :  { %5520 = vst [vmem:[#allocation12 + $0x48] sm:$0xff] %v5483_v53 }
0x251f   :  { %v7791_v37 = vpop.f32.mrf.mxu1 }
0x2520   :  { %5525 = vst [vmem:[#allocation12 + $0x70] sm:$0xff] %v7791_v37 }
0x2521   :  { %v5496_v21 = vpop.f32.mrf.mxu1 }
0x2522   :  { %5523 = vst [vmem:[#allocation12 + $0x60] sm:$0xff] %v5496_v21 }
0x2523   :  { %v7792_v41 = vpop.f32.mrf.mxu1 }
0x2524   :  { %5526 = vst [vmem:[#allocation12 + $0x78] sm:$0xff] %v7792_v41 }
0x2525   :  { %v5499_v1 = vpop.f32.mrf.mxu1 }
0x2526   :  { %5524 = vst [vmem:[#allocation12 + $0x68] sm:$0xff] %v5499_v1 }
0x2527   :  { %8034 = shalt.err (!%p8031_p1)
}
0x2528   :  { %5538 = dma.vmem_to_hbm [thread:$0]  %s5533_s15, 2048, %s9365_s8, [#allocation6], %s8058_s6, %s8058_s6, %s8059_s23  }
0x2529   :  { %8049 = dma.done.wait [#allocation6], 2048  }
0x252a   :  { %8050 = vsyncadd [#allocation6], 4294965248 }
0x252b   :  { %8051 = dma.done.wait [#allocation14], 2048  }
0x252c   :  { %8052 = vsyncadd [#allocation14], 4294965248 }
0x252d   :  { %5557 = vsyncpa [#allocation5], 1 }
0x252e   :  { %5558 = vsyncpa [#allocation10], 1 }
0x252f   :  { %5559 = vsyncpa [#allocation6], 1 }
0x2530   :  { %5560 = vsyncpa [#allocation14], 1 }
0x2531   :  { %5561 = vsyncpa [#allocation7], 1 }

</bundles_post_ra>
